<compile_context>
chip_gen: v5e
topology: v5e:2x2
jax: 0.10.0
libtpu: 0.0.40
codegen_flags: <defaults>
</compile_context>

<pallas_src>
import jax
import jax.numpy as jnp
from jax.experimental import pallas as pl
from jax.experimental.pallas import tpu as pltpu


def _make_kernel(Wp, Lp, NB, G, ngroups):
    """Kernel closure. Wp: padded row width, Lp: padded flat length,
    NB: images per block, G: ci planes stacked per roll, ngroups = 4 // G."""
    S = G * NB
    taps2 = [(dy, dx) for dy in (-1, 0, 1) for dx in (-1, 0, 1)]
    taps3 = [(dy, dx) for dy in (-2, -1, 0, 1, 2) for dx in (-2, -1, 0, 1, 2)]

    def kernel(xr_ref, mask_ref, actc_ref, wc2_ref, wc3_ref,
               p1_ref, pB_ref, p4_ref, o_ref):
        xr = xr_ref[...]        # (S, Lp)  image planes replicated G times (j-major)
        mask = mask_ref[...]    # (1, Lp)  1.0 on interior pixels, 0.0 elsewhere
        actc = actc_ref[...]    # (S, 4*ngroups)  per-sublane 1x1+BN affine columns
        x = xr[0:NB, :]         # (NB, Lp) the actual (un-replicated) image planes

        def shift(a, dy, dx):
            # shifted[f] = a[f + dy*Wp + dx]; wraparound only reaches the zero
            # tail or masked-zero data (guaranteed by Lp - L >= 2*Wp + 2).
            s = dy * Wp + dx
            if s == 0:
                return a
            return pltpu.roll(a, (-s) % Lp, axis=1)

        # ---- branch 1: 1x1 conv (1->4) + BN + ReLU folded to an affine; its
        #      contribution flows through the (linear) folded 1x1 conv4.
        acc4 = jnp.zeros((NB, Lp), jnp.float32)
        for c in range(4):
            y = jnp.maximum(x * p1_ref[c] + p1_ref[4 + c], 0.0)
            acc4 = acc4 + p4_ref[c] * y

        # ---- branches 2/3: 1x1+BN+ReLU then KxK conv + BN + ReLU, with the
        #      ci planes stacked on sublanes (one roll per tap per group) and
        #      per-sublane weight columns for the co FMAs.
        def conv_branch(taps, wc_ref, act_base, pb_base):
            nonlocal acc4
            nt = len(taps)
            wc = wc_ref[...]                                   # (S, ngroups*nt*4)
            acc = [jnp.zeros((S, Lp), jnp.float32) for _ in range(4)]
            for g in range(ngroups):
                sc = actc[:, (act_base + g) * 2:(act_base + g) * 2 + 1]      # (S,1)
                tc = actc[:, (act_base + g) * 2 + 1:(act_base + g) * 2 + 2]  # (S,1)
                a = mask * jnp.maximum(xr * sc + tc, 0.0)      # stacked activations
                for t, (dy, dx) in enumerate(taps):
                    sh = shift(a, dy, dx)
                    c0 = (g * nt + t) * 4
                    wt = wc[:, c0:c0 + 4]                      # (S, 4) weight cols
                    for co in range(4):
                        acc[co] = acc[co] + sh * wt[:, co:co + 1]
            # reduce the G stacked ci planes, apply folded bias+BN+ReLU, and
            # fold into the 1x1 conv4 accumulator.
            for co in range(4):
                r = acc[co][0:NB, :]
                for j in range(1, G):
                    r = r + acc[co][j * NB:(j + 1) * NB, :]
                y = jnp.maximum(
                    r * pB_ref[pb_base + co] + pB_ref[pb_base + 4 + co], 0.0)
                acc4 = acc4 + p4_ref[co] * y

        conv_branch(taps2, wc2_ref, 0, 0)         # 3x3, pad=1
        conv_branch(taps3, wc3_ref, ngroups, 8)   # 5x5, pad=2

        # ---- conv4: 1x1 conv (4->1) + BN + ReLU (weights/bias/BN folded).
        o_ref[...] = jnp.maximum(acc4 + p4_ref[4], 0.0)

    return kernel


def spital_inception(x, params):
    N, C, H, W = x.shape
    assert C == 1
    eps = 1e-5

    def bn_fold(p):
        g, b, m, v = p
        s = g / jnp.sqrt(v + eps)
        return s, b - m * s

    s1bn, t1bn = bn_fold(params['bn1'])
    s2abn, t2abn = bn_fold(params['bn2a'])
    s2bbn, t2bbn = bn_fold(params['bn2b'])
    s3abn, t3abn = bn_fold(params['bn3a'])
    s3bbn, t3bbn = bn_fold(params['bn3b'])
    s4bn, t4bn = bn_fold(params['bn4'])

    w1 = params['w1'].reshape(4)
    w2a = params['w2a'].reshape(4)
    w3a = params['w3a'].reshape(4)

    # 1x1 conv (1->4) + BN folded: a = relu(x * s + t)
    s1 = w1 * s1bn
    t1 = params['b1'] * s1bn + t1bn
    s2a = w2a * s2abn
    t2a = params['b2a'] * s2abn + t2abn
    s3a = w3a * s3abn
    t3a = params['b3a'] * s3abn + t3abn

    # KxK conv bias + BN folded: y = relu(conv_nobias(a) * s + t)
    s2b, t2b = s2bbn, params['b2b'] * s2bbn + t2bbn
    s3b, t3b = s3bbn, params['b3b'] * s3bbn + t3bbn

    # conv4 (1x1, 4->1) + BN folded
    w4 = params['w4'].reshape(4)
    w4_eff = w4 * s4bn[0]
    t4 = (params['b4'] * s4bn + t4bn)[0]

    p1 = jnp.concatenate([s1, t1]).astype(jnp.float32)                  # (8,)
    pB = jnp.concatenate([s2b, t2b, s3b, t3b]).astype(jnp.float32)      # (16,)
    p4 = jnp.concatenate([w4_eff, t4[None]]).astype(jnp.float32)        # (5,)

    # --- lane-dense packed layout (no vertical pad; tail is the halo) ---
    Wp = W + 4
    L = H * Wp
    Lp = ((L + 127) // 128) * 128
    while Lp - L < 2 * Wp + 2:        # mandatory: tail must absorb roll wraps
        Lp += 128
    assert Lp - L >= 2 * Wp + 2

    NB = N if N <= 8 else 8           # images per block (sublane rows)
    nblk = -(-N // NB)
    Np = NB * nblk
    G = min(4, max(1, 8 // NB))       # ci planes stacked per roll (divides 4)
    ngroups = 4 // G
    S = G * NB

    xp = jnp.pad(x[:, 0].astype(jnp.float32), ((0, Np - N), (0, 0), (2, 2)))
    xp = xp.reshape(Np, L)
    xp = jnp.pad(xp, ((0, 0), (0, Lp - L)))                             # (Np, Lp)

    # Replicate each block's NB planes G times along sublanes (j-major): row
    # j*NB + n of block i holds image i*NB + n.
    xr = xp.reshape(nblk, 1, NB, Lp)
    xr = jnp.broadcast_to(xr, (nblk, G, NB, Lp)).reshape(nblk * S, Lp)

    # Interior mask: 1.0 on real image pixels (needed because the folded
    # 1x1+BN affine is nonzero on zero-padded / tail lanes).
    cols = jnp.arange(Wp)
    col_ok = ((cols >= 2) & (cols < W + 2)).astype(jnp.float32)
    m2d = jnp.broadcast_to(col_ok[None, :], (H, Wp))
    mask = jnp.pad(m2d.reshape(1, L), ((0, 0), (0, Lp - L)))            # (1, Lp)

    # Per-sublane activation affine columns: for branch b in (2,3), group g,
    # columns (b*ngroups+g)*2 and +1 hold scale/shift for ci = g*G + j on
    # sublane row j*NB + n.
    act_cols = []
    for (sv, tv) in ((s2a, t2a), (s3a, t3a)):
        for g in range(ngroups):
            act_cols += [sv[g * G:(g + 1) * G], tv[g * G:(g + 1) * G]]
    actc = jnp.stack([jnp.repeat(v, NB) for v in act_cols],
                     axis=1).astype(jnp.float32)                        # (S, 4*ngroups)

    # Per-sublane weight columns: column (g*n_taps + t)*4 + co holds
    # w[co, g*G + j, ky, kx] on sublane row j*NB + n.
    def build_wcols(w, K):
        half = K // 2
        cols_ = []
        for g in range(ngroups):
            for dy in range(-half, half + 1):
                for dx in range(-half, half + 1):
                    for co in range(4):
                        cols_.append(jnp.repeat(
                            w[co, g * G:(g + 1) * G, dy + half, dx + half], NB))
        return jnp.stack(cols_, axis=1).astype(jnp.float32)

    wc2 = build_wcols(params['w2b'], 3)   # (S, ngroups*36)
    wc3 = build_wcols(params['w3b'], 5)   # (S, ngroups*100)

    kernel = _make_kernel(Wp, Lp, NB, G, ngroups)
    smem = pl.BlockSpec(memory_space=pltpu.MemorySpace.SMEM)

    out_flat = pl.pallas_call(
        kernel,
        out_shape=jax.ShapeDtypeStruct((Np, Lp), jnp.float32),
        grid_spec=pltpu.PrefetchScalarGridSpec(
            num_scalar_prefetch=0,
            grid=(nblk,),
            in_specs=[
                pl.BlockSpec((S, Lp), lambda i: (i, 0)),            # stacked planes
                pl.BlockSpec((1, Lp), lambda i: (0, 0)),            # interior mask
                pl.BlockSpec((S, 4 * ngroups), lambda i: (0, 0)),   # 1x1 affine cols
                pl.BlockSpec((S, ngroups * 36), lambda i: (0, 0)),  # 3x3 weight cols
                pl.BlockSpec((S, ngroups * 100), lambda i: (0, 0)), # 5x5 weight cols
                smem, smem, smem,                                   # p1, pB, p4
            ],
            out_specs=pl.BlockSpec((NB, Lp), lambda i: (i, 0)),
        ),
        compiler_params=pltpu.CompilerParams(
            dimension_semantics=("parallel",)),
    )(xr, mask, actc, wc2, wc3, p1, pB, p4)

    out = out_flat[:N, :L].reshape(N, H, Wp)[:, :, 2:2 + W]
    return out.reshape(N, 1, H, W)


def reference(x, params):
    """Pure-JAX (eval-mode) reference for the PyTorch forward pass."""
    eps = 1e-5

    def conv(z, w, b, pad):
        y = jax.lax.conv_general_dilated(
            z, w, (1, 1), [(pad, pad), (pad, pad)],
            dimension_numbers=('NCHW', 'OIHW', 'NCHW'))
        return y + b[None, :, None, None]

    def bn(z, p):
        g, b, m, v = p
        return ((z - m[None, :, None, None])
                / jnp.sqrt(v[None, :, None, None] + eps)
                * g[None, :, None, None] + b[None, :, None, None])

    relu = lambda z: jnp.maximum(z, 0.0)

    out1 = relu(bn(conv(x, params['w1'], params['b1'], 0), params['bn1']))
    a2 = relu(bn(conv(x, params['w2a'], params['b2a'], 0), params['bn2a']))
    out2 = relu(bn(conv(a2, params['w2b'], params['b2b'], 1), params['bn2b']))
    a3 = relu(bn(conv(x, params['w3a'], params['b3a'], 0), params['bn3a']))
    out3 = relu(bn(conv(a3, params['w3b'], params['b3b'], 2), params['bn3b']))
    out = out1 + out2 + out3
    out = relu(bn(conv(out, params['w4'], params['b4'], 0), params['bn4']))
    return out


def init_params(key):
    ks = jax.random.split(key, 18)

    def normal(k, shape, scale=0.1):
        return (scale * jax.random.normal(k, shape)).astype(jnp.float32)

    def bn_params(k, c):
        k1, k2, k3, k4 = jax.random.split(k, 4)
        gamma = jax.random.uniform(k1, (c,), minval=0.5, maxval=1.5)
        beta = normal(k2, (c,))
        mean = normal(k3, (c,))
        var = jax.random.uniform(k4, (c,), minval=0.5, maxval=1.5)
        return (gamma.astype(jnp.float32), beta, mean, var.astype(jnp.float32))

    return dict(
        w1=normal(ks[0], (4, 1, 1, 1), 0.5), b1=normal(ks[1], (4,)),
        bn1=bn_params(ks[2], 4),
        w2a=normal(ks[3], (4, 1, 1, 1), 0.5), b2a=normal(ks[4], (4,)),
        bn2a=bn_params(ks[5], 4),
        w2b=normal(ks[6], (4, 4, 3, 3), 0.3), b2b=normal(ks[7], (4,)),
        bn2b=bn_params(ks[8], 4),
        w3a=normal(ks[9], (4, 1, 1, 1), 0.5), b3a=normal(ks[10], (4,)),
        bn3a=bn_params(ks[11], 4),
        w3b=normal(ks[12], (4, 4, 5, 5), 0.2), b3b=normal(ks[13], (4,)),
        bn3b=bn_params(ks[14], 4),
        w4=normal(ks[15], (1, 4, 1, 1), 0.5), b4=normal(ks[16], (4,))[:1],
        bn4=bn_params(ks[17], 1),
    )


if __name__ == "__main__":
    key = jax.random.PRNGKey(0)
    kx, kp = jax.random.split(key)
    N, H, W = 2, 16, 16
    x = jax.random.normal(kx, (N, 1, H, W), dtype=jnp.float32)
    params = init_params(kp)

    out = spital_inception(x, params)
    out = jax.block_until_ready(out)

    ref = reference(x, params)
    assert out.shape == (N, 1, H, W)
    max_err = float(jnp.max(jnp.abs(out - ref)))
    assert jnp.allclose(out, ref, atol=1e-4, rtol=1e-4), max_err
    print("KERNEL_OK")
</pallas_src>

<mosaic_0001>
module attributes {stable_mosaic.version = 11 : i64} {
  func.func @kernel(%arg0: i32, %arg1: memref<8x384xf32, #tpu.memory_space<vmem>>, %arg2: memref<1x384xf32, #tpu.memory_space<vmem>>, %arg3: memref<8x4xf32, #tpu.memory_space<vmem>>, %arg4: memref<8x36xf32, #tpu.memory_space<vmem>>, %arg5: memref<8x100xf32, #tpu.memory_space<vmem>>, %arg6: memref<8xf32, #tpu.memory_space<smem>>, %arg7: memref<16xf32, #tpu.memory_space<smem>>, %arg8: memref<5xf32, #tpu.memory_space<smem>>, %arg9: memref<2x384xf32, #tpu.memory_space<vmem>>) attributes {dimension_semantics = [#tpu.dimension_semantics<parallel>], iteration_bounds = array<i64: 1>, scalar_prefetch = 0 : i64, scratch_operands = 0 : i64, tpu.core_type = #tpu.core_type<tc>, window_params = [{transform_indices = @transform_0, window_bounds = array<i64: 8, 384>}, {pipeline_mode = #tpu.pipeline_mode<synchronous>, transform_indices = @transform_1, window_bounds = array<i64: 1, 384>}, {pipeline_mode = #tpu.pipeline_mode<synchronous>, transform_indices = @transform_2, window_bounds = array<i64: 8, 4>}, {pipeline_mode = #tpu.pipeline_mode<synchronous>, transform_indices = @transform_3, window_bounds = array<i64: 8, 36>}, {pipeline_mode = #tpu.pipeline_mode<synchronous>, transform_indices = @transform_4, window_bounds = array<i64: 8, 100>}, {transform_indices = @transform_5, window_bounds = array<i64: 8>}, {transform_indices = @transform_6, window_bounds = array<i64: 16>}, {transform_indices = @transform_7, window_bounds = array<i64: 5>}, {transform_indices = @transform_8, window_bounds = array<i64: 2, 384>}]} {
    %c0 = arith.constant 0 : index
    %c0_0 = arith.constant 0 : index
    %0 = vector.load %arg1[%c0, %c0_0] : memref<8x384xf32, #tpu.memory_space<vmem>>, vector<8x384xf32>
    %c0_1 = arith.constant 0 : index
    %c0_2 = arith.constant 0 : index
    %1 = vector.load %arg2[%c0_1, %c0_2] : memref<1x384xf32, #tpu.memory_space<vmem>>, vector<1x384xf32>
    %c0_3 = arith.constant 0 : index
    %c0_4 = arith.constant 0 : index
    %2 = vector.load %arg3[%c0_3, %c0_4] : memref<8x4xf32, #tpu.memory_space<vmem>>, vector<8x4xf32>
    %3 = vector.extract_strided_slice %0 {offsets = [0, 0], sizes = [2, 384], strides = [1, 1]} : vector<8x384xf32> to vector<2x384xf32>
    %cst = arith.constant 0.000000e+00 : f32
    %4 = vector.broadcast %cst : f32 to vector<2x384xf32>
    %c0_5 = arith.constant 0 : index
    %5 = memref.load %arg6[%c0_5] : memref<8xf32, #tpu.memory_space<smem>>
    %6 = vector.broadcast %5 : f32 to vector<2x384xf32>
    %7 = arith.mulf %3, %6 : vector<2x384xf32>
    %c4 = arith.constant 4 : index
    %8 = memref.load %arg6[%c4] : memref<8xf32, #tpu.memory_space<smem>>
    %9 = vector.broadcast %8 : f32 to vector<2x384xf32>
    %10 = arith.addf %7, %9 : vector<2x384xf32>
    %cst_6 = arith.constant 0.000000e+00 : f32
    %11 = vector.broadcast %cst_6 : f32 to vector<2x384xf32>
    %12 = arith.maximumf %10, %11 : vector<2x384xf32>
    %c0_7 = arith.constant 0 : index
    %13 = memref.load %arg8[%c0_7] : memref<5xf32, #tpu.memory_space<smem>>
    %14 = vector.broadcast %13 : f32 to vector<2x384xf32>
    %15 = arith.mulf %14, %12 : vector<2x384xf32>
    %16 = arith.addf %4, %15 : vector<2x384xf32>
    %c1 = arith.constant 1 : index
    %17 = memref.load %arg6[%c1] : memref<8xf32, #tpu.memory_space<smem>>
    %18 = vector.broadcast %17 : f32 to vector<2x384xf32>
    %19 = arith.mulf %3, %18 : vector<2x384xf32>
    %c5 = arith.constant 5 : index
    %20 = memref.load %arg6[%c5] : memref<8xf32, #tpu.memory_space<smem>>
    %21 = vector.broadcast %20 : f32 to vector<2x384xf32>
    %22 = arith.addf %19, %21 : vector<2x384xf32>
    %cst_8 = arith.constant 0.000000e+00 : f32
    %23 = vector.broadcast %cst_8 : f32 to vector<2x384xf32>
    %24 = arith.maximumf %22, %23 : vector<2x384xf32>
    %c1_9 = arith.constant 1 : index
    %25 = memref.load %arg8[%c1_9] : memref<5xf32, #tpu.memory_space<smem>>
    %26 = vector.broadcast %25 : f32 to vector<2x384xf32>
    %27 = arith.mulf %26, %24 : vector<2x384xf32>
    %28 = arith.addf %16, %27 : vector<2x384xf32>
    %c2 = arith.constant 2 : index
    %29 = memref.load %arg6[%c2] : memref<8xf32, #tpu.memory_space<smem>>
    %30 = vector.broadcast %29 : f32 to vector<2x384xf32>
    %31 = arith.mulf %3, %30 : vector<2x384xf32>
    %c6 = arith.constant 6 : index
    %32 = memref.load %arg6[%c6] : memref<8xf32, #tpu.memory_space<smem>>
    %33 = vector.broadcast %32 : f32 to vector<2x384xf32>
    %34 = arith.addf %31, %33 : vector<2x384xf32>
    %cst_10 = arith.constant 0.000000e+00 : f32
    %35 = vector.broadcast %cst_10 : f32 to vector<2x384xf32>
    %36 = arith.maximumf %34, %35 : vector<2x384xf32>
    %c2_11 = arith.constant 2 : index
    %37 = memref.load %arg8[%c2_11] : memref<5xf32, #tpu.memory_space<smem>>
    %38 = vector.broadcast %37 : f32 to vector<2x384xf32>
    %39 = arith.mulf %38, %36 : vector<2x384xf32>
    %40 = arith.addf %28, %39 : vector<2x384xf32>
    %c3 = arith.constant 3 : index
    %41 = memref.load %arg6[%c3] : memref<8xf32, #tpu.memory_space<smem>>
    %42 = vector.broadcast %41 : f32 to vector<2x384xf32>
    %43 = arith.mulf %3, %42 : vector<2x384xf32>
    %c7 = arith.constant 7 : index
    %44 = memref.load %arg6[%c7] : memref<8xf32, #tpu.memory_space<smem>>
    %45 = vector.broadcast %44 : f32 to vector<2x384xf32>
    %46 = arith.addf %43, %45 : vector<2x384xf32>
    %cst_12 = arith.constant 0.000000e+00 : f32
    %47 = vector.broadcast %cst_12 : f32 to vector<2x384xf32>
    %48 = arith.maximumf %46, %47 : vector<2x384xf32>
    %c3_13 = arith.constant 3 : index
    %49 = memref.load %arg8[%c3_13] : memref<5xf32, #tpu.memory_space<smem>>
    %50 = vector.broadcast %49 : f32 to vector<2x384xf32>
    %51 = arith.mulf %50, %48 : vector<2x384xf32>
    %52 = arith.addf %40, %51 : vector<2x384xf32>
    %c0_14 = arith.constant 0 : index
    %c0_15 = arith.constant 0 : index
    %53 = vector.load %arg4[%c0_14, %c0_15] : memref<8x36xf32, #tpu.memory_space<vmem>>, vector<8x36xf32>
    %cst_16 = arith.constant 0.000000e+00 : f32
    %54 = vector.broadcast %cst_16 : f32 to vector<8x384xf32>
    %cst_17 = arith.constant 0.000000e+00 : f32
    %55 = vector.broadcast %cst_17 : f32 to vector<8x384xf32>
    %cst_18 = arith.constant 0.000000e+00 : f32
    %56 = vector.broadcast %cst_18 : f32 to vector<8x384xf32>
    %cst_19 = arith.constant 0.000000e+00 : f32
    %57 = vector.broadcast %cst_19 : f32 to vector<8x384xf32>
    %58 = vector.extract_strided_slice %2 {offsets = [0, 0], sizes = [8, 1], strides = [1, 1]} : vector<8x4xf32> to vector<8x1xf32>
    %59 = vector.extract_strided_slice %2 {offsets = [0, 1], sizes = [8, 1], strides = [1, 1]} : vector<8x4xf32> to vector<8x1xf32>
    %60 = vector.broadcast %58 : vector<8x1xf32> to vector<8x384xf32>
    %61 = arith.mulf %0, %60 : vector<8x384xf32>
    %62 = vector.broadcast %59 : vector<8x1xf32> to vector<8x384xf32>
    %63 = arith.addf %61, %62 : vector<8x384xf32>
    %cst_20 = arith.constant 0.000000e+00 : f32
    %64 = vector.broadcast %cst_20 : f32 to vector<8x384xf32>
    %65 = arith.maximumf %63, %64 : vector<8x384xf32>
    %66 = vector.broadcast %1 : vector<1x384xf32> to vector<8x384xf32>
    %67 = arith.mulf %66, %65 : vector<8x384xf32>
    %c21_i32 = arith.constant 21 : i32
    %68 = tpu.dynamic_rotate %67 by %c21_i32 dim 1 : vector<8x384xf32>, i32 -> vector<8x384xf32>
    %69 = vector.extract_strided_slice %53 {offsets = [0, 0], sizes = [8, 4], strides = [1, 1]} : vector<8x36xf32> to vector<8x4xf32>
    %70 = vector.extract_strided_slice %69 {offsets = [0, 0], sizes = [8, 1], strides = [1, 1]} : vector<8x4xf32> to vector<8x1xf32>
    %71 = vector.broadcast %70 : vector<8x1xf32> to vector<8x384xf32>
    %72 = arith.mulf %68, %71 : vector<8x384xf32>
    %73 = arith.addf %54, %72 : vector<8x384xf32>
    %74 = vector.extract_strided_slice %69 {offsets = [0, 1], sizes = [8, 1], strides = [1, 1]} : vector<8x4xf32> to vector<8x1xf32>
    %75 = vector.broadcast %74 : vector<8x1xf32> to vector<8x384xf32>
    %76 = arith.mulf %68, %75 : vector<8x384xf32>
    %77 = arith.addf %55, %76 : vector<8x384xf32>
    %78 = vector.extract_strided_slice %69 {offsets = [0, 2], sizes = [8, 1], strides = [1, 1]} : vector<8x4xf32> to vector<8x1xf32>
    %79 = vector.broadcast %78 : vector<8x1xf32> to vector<8x384xf32>
    %80 = arith.mulf %68, %79 : vector<8x384xf32>
    %81 = arith.addf %56, %80 : vector<8x384xf32>
    %82 = vector.extract_strided_slice %69 {offsets = [0, 3], sizes = [8, 1], strides = [1, 1]} : vector<8x4xf32> to vector<8x1xf32>
    %83 = vector.broadcast %82 : vector<8x1xf32> to vector<8x384xf32>
    %84 = arith.mulf %68, %83 : vector<8x384xf32>
    %85 = arith.addf %57, %84 : vector<8x384xf32>
    %c20_i32 = arith.constant 20 : i32
    %86 = tpu.dynamic_rotate %67 by %c20_i32 dim 1 : vector<8x384xf32>, i32 -> vector<8x384xf32>
    %87 = vector.extract_strided_slice %53 {offsets = [0, 4], sizes = [8, 4], strides = [1, 1]} : vector<8x36xf32> to vector<8x4xf32>
    %88 = vector.extract_strided_slice %87 {offsets = [0, 0], sizes = [8, 1], strides = [1, 1]} : vector<8x4xf32> to vector<8x1xf32>
    %89 = vector.broadcast %88 : vector<8x1xf32> to vector<8x384xf32>
    %90 = arith.mulf %86, %89 : vector<8x384xf32>
    %91 = arith.addf %73, %90 : vector<8x384xf32>
    %92 = vector.extract_strided_slice %87 {offsets = [0, 1], sizes = [8, 1], strides = [1, 1]} : vector<8x4xf32> to vector<8x1xf32>
    %93 = vector.broadcast %92 : vector<8x1xf32> to vector<8x384xf32>
    %94 = arith.mulf %86, %93 : vector<8x384xf32>
    %95 = arith.addf %77, %94 : vector<8x384xf32>
    %96 = vector.extract_strided_slice %87 {offsets = [0, 2], sizes = [8, 1], strides = [1, 1]} : vector<8x4xf32> to vector<8x1xf32>
    %97 = vector.broadcast %96 : vector<8x1xf32> to vector<8x384xf32>
    %98 = arith.mulf %86, %97 : vector<8x384xf32>
    %99 = arith.addf %81, %98 : vector<8x384xf32>
    %100 = vector.extract_strided_slice %87 {offsets = [0, 3], sizes = [8, 1], strides = [1, 1]} : vector<8x4xf32> to vector<8x1xf32>
    %101 = vector.broadcast %100 : vector<8x1xf32> to vector<8x384xf32>
    %102 = arith.mulf %86, %101 : vector<8x384xf32>
    %103 = arith.addf %85, %102 : vector<8x384xf32>
    %c19_i32 = arith.constant 19 : i32
    %104 = tpu.dynamic_rotate %67 by %c19_i32 dim 1 : vector<8x384xf32>, i32 -> vector<8x384xf32>
    %105 = vector.extract_strided_slice %53 {offsets = [0, 8], sizes = [8, 4], strides = [1, 1]} : vector<8x36xf32> to vector<8x4xf32>
    %106 = vector.extract_strided_slice %105 {offsets = [0, 0], sizes = [8, 1], strides = [1, 1]} : vector<8x4xf32> to vector<8x1xf32>
    %107 = vector.broadcast %106 : vector<8x1xf32> to vector<8x384xf32>
    %108 = arith.mulf %104, %107 : vector<8x384xf32>
    %109 = arith.addf %91, %108 : vector<8x384xf32>
    %110 = vector.extract_strided_slice %105 {offsets = [0, 1], sizes = [8, 1], strides = [1, 1]} : vector<8x4xf32> to vector<8x1xf32>
    %111 = vector.broadcast %110 : vector<8x1xf32> to vector<8x384xf32>
    %112 = arith.mulf %104, %111 : vector<8x384xf32>
    %113 = arith.addf %95, %112 : vector<8x384xf32>
    %114 = vector.extract_strided_slice %105 {offsets = [0, 2], sizes = [8, 1], strides = [1, 1]} : vector<8x4xf32> to vector<8x1xf32>
    %115 = vector.broadcast %114 : vector<8x1xf32> to vector<8x384xf32>
    %116 = arith.mulf %104, %115 : vector<8x384xf32>
    %117 = arith.addf %99, %116 : vector<8x384xf32>
    %118 = vector.extract_strided_slice %105 {offsets = [0, 3], sizes = [8, 1], strides = [1, 1]} : vector<8x4xf32> to vector<8x1xf32>
    %119 = vector.broadcast %118 : vector<8x1xf32> to vector<8x384xf32>
    %120 = arith.mulf %104, %119 : vector<8x384xf32>
    %121 = arith.addf %103, %120 : vector<8x384xf32>
    %c1_i32 = arith.constant 1 : i32
    %122 = tpu.dynamic_rotate %67 by %c1_i32 dim 1 : vector<8x384xf32>, i32 -> vector<8x384xf32>
    %123 = vector.extract_strided_slice %53 {offsets = [0, 12], sizes = [8, 4], strides = [1, 1]} : vector<8x36xf32> to vector<8x4xf32>
    %124 = vector.extract_strided_slice %123 {offsets = [0, 0], sizes = [8, 1], strides = [1, 1]} : vector<8x4xf32> to vector<8x1xf32>
    %125 = vector.broadcast %124 : vector<8x1xf32> to vector<8x384xf32>
    %126 = arith.mulf %122, %125 : vector<8x384xf32>
    %127 = arith.addf %109, %126 : vector<8x384xf32>
    %128 = vector.extract_strided_slice %123 {offsets = [0, 1], sizes = [8, 1], strides = [1, 1]} : vector<8x4xf32> to vector<8x1xf32>
    %129 = vector.broadcast %128 : vector<8x1xf32> to vector<8x384xf32>
    %130 = arith.mulf %122, %129 : vector<8x384xf32>
    %131 = arith.addf %113, %130 : vector<8x384xf32>
    %132 = vector.extract_strided_slice %123 {offsets = [0, 2], sizes = [8, 1], strides = [1, 1]} : vector<8x4xf32> to vector<8x1xf32>
    %133 = vector.broadcast %132 : vector<8x1xf32> to vector<8x384xf32>
    %134 = arith.mulf %122, %133 : vector<8x384xf32>
    %135 = arith.addf %117, %134 : vector<8x384xf32>
    %136 = vector.extract_strided_slice %123 {offsets = [0, 3], sizes = [8, 1], strides = [1, 1]} : vector<8x4xf32> to vector<8x1xf32>
    %137 = vector.broadcast %136 : vector<8x1xf32> to vector<8x384xf32>
    %138 = arith.mulf %122, %137 : vector<8x384xf32>
    %139 = arith.addf %121, %138 : vector<8x384xf32>
    %140 = vector.extract_strided_slice %53 {offsets = [0, 16], sizes = [8, 4], strides = [1, 1]} : vector<8x36xf32> to vector<8x4xf32>
    %141 = vector.extract_strided_slice %140 {offsets = [0, 0], sizes = [8, 1], strides = [1, 1]} : vector<8x4xf32> to vector<8x1xf32>
    %142 = vector.broadcast %141 : vector<8x1xf32> to vector<8x384xf32>
    %143 = arith.mulf %67, %142 : vector<8x384xf32>
    %144 = arith.addf %127, %143 : vector<8x384xf32>
    %145 = vector.extract_strided_slice %140 {offsets = [0, 1], sizes = [8, 1], strides = [1, 1]} : vector<8x4xf32> to vector<8x1xf32>
    %146 = vector.broadcast %145 : vector<8x1xf32> to vector<8x384xf32>
    %147 = arith.mulf %67, %146 : vector<8x384xf32>
    %148 = arith.addf %131, %147 : vector<8x384xf32>
    %149 = vector.extract_strided_slice %140 {offsets = [0, 2], sizes = [8, 1], strides = [1, 1]} : vector<8x4xf32> to vector<8x1xf32>
    %150 = vector.broadcast %149 : vector<8x1xf32> to vector<8x384xf32>
    %151 = arith.mulf %67, %150 : vector<8x384xf32>
    %152 = arith.addf %135, %151 : vector<8x384xf32>
    %153 = vector.extract_strided_slice %140 {offsets = [0, 3], sizes = [8, 1], strides = [1, 1]} : vector<8x4xf32> to vector<8x1xf32>
    %154 = vector.broadcast %153 : vector<8x1xf32> to vector<8x384xf32>
    %155 = arith.mulf %67, %154 : vector<8x384xf32>
    %156 = arith.addf %139, %155 : vector<8x384xf32>
    %c383_i32 = arith.constant 383 : i32
    %157 = tpu.dynamic_rotate %67 by %c383_i32 dim 1 : vector<8x384xf32>, i32 -> vector<8x384xf32>
    %158 = vector.extract_strided_slice %53 {offsets = [0, 20], sizes = [8, 4], strides = [1, 1]} : vector<8x36xf32> to vector<8x4xf32>
    %159 = vector.extract_strided_slice %158 {offsets = [0, 0], sizes = [8, 1], strides = [1, 1]} : vector<8x4xf32> to vector<8x1xf32>
    %160 = vector.broadcast %159 : vector<8x1xf32> to vector<8x384xf32>
    %161 = arith.mulf %157, %160 : vector<8x384xf32>
    %162 = arith.addf %144, %161 : vector<8x384xf32>
    %163 = vector.extract_strided_slice %158 {offsets = [0, 1], sizes = [8, 1], strides = [1, 1]} : vector<8x4xf32> to vector<8x1xf32>
    %164 = vector.broadcast %163 : vector<8x1xf32> to vector<8x384xf32>
    %165 = arith.mulf %157, %164 : vector<8x384xf32>
    %166 = arith.addf %148, %165 : vector<8x384xf32>
    %167 = vector.extract_strided_slice %158 {offsets = [0, 2], sizes = [8, 1], strides = [1, 1]} : vector<8x4xf32> to vector<8x1xf32>
    %168 = vector.broadcast %167 : vector<8x1xf32> to vector<8x384xf32>
    %169 = arith.mulf %157, %168 : vector<8x384xf32>
    %170 = arith.addf %152, %169 : vector<8x384xf32>
    %171 = vector.extract_strided_slice %158 {offsets = [0, 3], sizes = [8, 1], strides = [1, 1]} : vector<8x4xf32> to vector<8x1xf32>
    %172 = vector.broadcast %171 : vector<8x1xf32> to vector<8x384xf32>
    %173 = arith.mulf %157, %172 : vector<8x384xf32>
    %174 = arith.addf %156, %173 : vector<8x384xf32>
    %c365_i32 = arith.constant 365 : i32
    %175 = tpu.dynamic_rotate %67 by %c365_i32 dim 1 : vector<8x384xf32>, i32 -> vector<8x384xf32>
    %176 = vector.extract_strided_slice %53 {offsets = [0, 24], sizes = [8, 4], strides = [1, 1]} : vector<8x36xf32> to vector<8x4xf32>
    %177 = vector.extract_strided_slice %176 {offsets = [0, 0], sizes = [8, 1], strides = [1, 1]} : vector<8x4xf32> to vector<8x1xf32>
    %178 = vector.broadcast %177 : vector<8x1xf32> to vector<8x384xf32>
    %179 = arith.mulf %175, %178 : vector<8x384xf32>
    %180 = arith.addf %162, %179 : vector<8x384xf32>
    %181 = vector.extract_strided_slice %176 {offsets = [0, 1], sizes = [8, 1], strides = [1, 1]} : vector<8x4xf32> to vector<8x1xf32>
    %182 = vector.broadcast %181 : vector<8x1xf32> to vector<8x384xf32>
    %183 = arith.mulf %175, %182 : vector<8x384xf32>
    %184 = arith.addf %166, %183 : vector<8x384xf32>
    %185 = vector.extract_strided_slice %176 {offsets = [0, 2], sizes = [8, 1], strides = [1, 1]} : vector<8x4xf32> to vector<8x1xf32>
    %186 = vector.broadcast %185 : vector<8x1xf32> to vector<8x384xf32>
    %187 = arith.mulf %175, %186 : vector<8x384xf32>
    %188 = arith.addf %170, %187 : vector<8x384xf32>
    %189 = vector.extract_strided_slice %176 {offsets = [0, 3], sizes = [8, 1], strides = [1, 1]} : vector<8x4xf32> to vector<8x1xf32>
    %190 = vector.broadcast %189 : vector<8x1xf32> to vector<8x384xf32>
    %191 = arith.mulf %175, %190 : vector<8x384xf32>
    %192 = arith.addf %174, %191 : vector<8x384xf32>
    %c364_i32 = arith.constant 364 : i32
    %193 = tpu.dynamic_rotate %67 by %c364_i32 dim 1 : vector<8x384xf32>, i32 -> vector<8x384xf32>
    %194 = vector.extract_strided_slice %53 {offsets = [0, 28], sizes = [8, 4], strides = [1, 1]} : vector<8x36xf32> to vector<8x4xf32>
    %195 = vector.extract_strided_slice %194 {offsets = [0, 0], sizes = [8, 1], strides = [1, 1]} : vector<8x4xf32> to vector<8x1xf32>
    %196 = vector.broadcast %195 : vector<8x1xf32> to vector<8x384xf32>
    %197 = arith.mulf %193, %196 : vector<8x384xf32>
    %198 = arith.addf %180, %197 : vector<8x384xf32>
    %199 = vector.extract_strided_slice %194 {offsets = [0, 1], sizes = [8, 1], strides = [1, 1]} : vector<8x4xf32> to vector<8x1xf32>
    %200 = vector.broadcast %199 : vector<8x1xf32> to vector<8x384xf32>
    %201 = arith.mulf %193, %200 : vector<8x384xf32>
    %202 = arith.addf %184, %201 : vector<8x384xf32>
    %203 = vector.extract_strided_slice %194 {offsets = [0, 2], sizes = [8, 1], strides = [1, 1]} : vector<8x4xf32> to vector<8x1xf32>
    %204 = vector.broadcast %203 : vector<8x1xf32> to vector<8x384xf32>
    %205 = arith.mulf %193, %204 : vector<8x384xf32>
    %206 = arith.addf %188, %205 : vector<8x384xf32>
    %207 = vector.extract_strided_slice %194 {offsets = [0, 3], sizes = [8, 1], strides = [1, 1]} : vector<8x4xf32> to vector<8x1xf32>
    %208 = vector.broadcast %207 : vector<8x1xf32> to vector<8x384xf32>
    %209 = arith.mulf %193, %208 : vector<8x384xf32>
    %210 = arith.addf %192, %209 : vector<8x384xf32>
    %c363_i32 = arith.constant 363 : i32
    %211 = tpu.dynamic_rotate %67 by %c363_i32 dim 1 : vector<8x384xf32>, i32 -> vector<8x384xf32>
    %212 = vector.extract_strided_slice %53 {offsets = [0, 32], sizes = [8, 4], strides = [1, 1]} : vector<8x36xf32> to vector<8x4xf32>
    %213 = vector.extract_strided_slice %212 {offsets = [0, 0], sizes = [8, 1], strides = [1, 1]} : vector<8x4xf32> to vector<8x1xf32>
    %214 = vector.broadcast %213 : vector<8x1xf32> to vector<8x384xf32>
    %215 = arith.mulf %211, %214 : vector<8x384xf32>
    %216 = arith.addf %198, %215 : vector<8x384xf32>
    %217 = vector.extract_strided_slice %212 {offsets = [0, 1], sizes = [8, 1], strides = [1, 1]} : vector<8x4xf32> to vector<8x1xf32>
    %218 = vector.broadcast %217 : vector<8x1xf32> to vector<8x384xf32>
    %219 = arith.mulf %211, %218 : vector<8x384xf32>
    %220 = arith.addf %202, %219 : vector<8x384xf32>
    %221 = vector.extract_strided_slice %212 {offsets = [0, 2], sizes = [8, 1], strides = [1, 1]} : vector<8x4xf32> to vector<8x1xf32>
    %222 = vector.broadcast %221 : vector<8x1xf32> to vector<8x384xf32>
    %223 = arith.mulf %211, %222 : vector<8x384xf32>
    %224 = arith.addf %206, %223 : vector<8x384xf32>
    %225 = vector.extract_strided_slice %212 {offsets = [0, 3], sizes = [8, 1], strides = [1, 1]} : vector<8x4xf32> to vector<8x1xf32>
    %226 = vector.broadcast %225 : vector<8x1xf32> to vector<8x384xf32>
    %227 = arith.mulf %211, %226 : vector<8x384xf32>
    %228 = arith.addf %210, %227 : vector<8x384xf32>
    %229 = vector.extract_strided_slice %216 {offsets = [0, 0], sizes = [2, 384], strides = [1, 1]} : vector<8x384xf32> to vector<2x384xf32>
    %230 = vector.extract_strided_slice %216 {offsets = [2, 0], sizes = [2, 384], strides = [1, 1]} : vector<8x384xf32> to vector<2x384xf32>
    %231 = arith.addf %229, %230 : vector<2x384xf32>
    %232 = vector.extract_strided_slice %216 {offsets = [4, 0], sizes = [2, 384], strides = [1, 1]} : vector<8x384xf32> to vector<2x384xf32>
    %233 = arith.addf %231, %232 : vector<2x384xf32>
    %234 = vector.extract_strided_slice %216 {offsets = [6, 0], sizes = [2, 384], strides = [1, 1]} : vector<8x384xf32> to vector<2x384xf32>
    %235 = arith.addf %233, %234 : vector<2x384xf32>
    %c0_21 = arith.constant 0 : index
    %236 = memref.load %arg7[%c0_21] : memref<16xf32, #tpu.memory_space<smem>>
    %237 = vector.broadcast %236 : f32 to vector<2x384xf32>
    %238 = arith.mulf %235, %237 : vector<2x384xf32>
    %c4_22 = arith.constant 4 : index
    %239 = memref.load %arg7[%c4_22] : memref<16xf32, #tpu.memory_space<smem>>
    %240 = vector.broadcast %239 : f32 to vector<2x384xf32>
    %241 = arith.addf %238, %240 : vector<2x384xf32>
    %cst_23 = arith.constant 0.000000e+00 : f32
    %242 = vector.broadcast %cst_23 : f32 to vector<2x384xf32>
    %243 = arith.maximumf %241, %242 : vector<2x384xf32>
    %c0_24 = arith.constant 0 : index
    %244 = memref.load %arg8[%c0_24] : memref<5xf32, #tpu.memory_space<smem>>
    %245 = vector.broadcast %244 : f32 to vector<2x384xf32>
    %246 = arith.mulf %245, %243 : vector<2x384xf32>
    %247 = arith.addf %52, %246 : vector<2x384xf32>
    %248 = vector.extract_strided_slice %220 {offsets = [0, 0], sizes = [2, 384], strides = [1, 1]} : vector<8x384xf32> to vector<2x384xf32>
    %249 = vector.extract_strided_slice %220 {offsets = [2, 0], sizes = [2, 384], strides = [1, 1]} : vector<8x384xf32> to vector<2x384xf32>
    %250 = arith.addf %248, %249 : vector<2x384xf32>
    %251 = vector.extract_strided_slice %220 {offsets = [4, 0], sizes = [2, 384], strides = [1, 1]} : vector<8x384xf32> to vector<2x384xf32>
    %252 = arith.addf %250, %251 : vector<2x384xf32>
    %253 = vector.extract_strided_slice %220 {offsets = [6, 0], sizes = [2, 384], strides = [1, 1]} : vector<8x384xf32> to vector<2x384xf32>
    %254 = arith.addf %252, %253 : vector<2x384xf32>
    %c1_25 = arith.constant 1 : index
    %255 = memref.load %arg7[%c1_25] : memref<16xf32, #tpu.memory_space<smem>>
    %256 = vector.broadcast %255 : f32 to vector<2x384xf32>
    %257 = arith.mulf %254, %256 : vector<2x384xf32>
    %c5_26 = arith.constant 5 : index
    %258 = memref.load %arg7[%c5_26] : memref<16xf32, #tpu.memory_space<smem>>
    %259 = vector.broadcast %258 : f32 to vector<2x384xf32>
    %260 = arith.addf %257, %259 : vector<2x384xf32>
    %cst_27 = arith.constant 0.000000e+00 : f32
    %261 = vector.broadcast %cst_27 : f32 to vector<2x384xf32>
    %262 = arith.maximumf %260, %261 : vector<2x384xf32>
    %c1_28 = arith.constant 1 : index
    %263 = memref.load %arg8[%c1_28] : memref<5xf32, #tpu.memory_space<smem>>
    %264 = vector.broadcast %263 : f32 to vector<2x384xf32>
    %265 = arith.mulf %264, %262 : vector<2x384xf32>
    %266 = arith.addf %247, %265 : vector<2x384xf32>
    %267 = vector.extract_strided_slice %224 {offsets = [0, 0], sizes = [2, 384], strides = [1, 1]} : vector<8x384xf32> to vector<2x384xf32>
    %268 = vector.extract_strided_slice %224 {offsets = [2, 0], sizes = [2, 384], strides = [1, 1]} : vector<8x384xf32> to vector<2x384xf32>
    %269 = arith.addf %267, %268 : vector<2x384xf32>
    %270 = vector.extract_strided_slice %224 {offsets = [4, 0], sizes = [2, 384], strides = [1, 1]} : vector<8x384xf32> to vector<2x384xf32>
    %271 = arith.addf %269, %270 : vector<2x384xf32>
    %272 = vector.extract_strided_slice %224 {offsets = [6, 0], sizes = [2, 384], strides = [1, 1]} : vector<8x384xf32> to vector<2x384xf32>
    %273 = arith.addf %271, %272 : vector<2x384xf32>
    %c2_29 = arith.constant 2 : index
    %274 = memref.load %arg7[%c2_29] : memref<16xf32, #tpu.memory_space<smem>>
    %275 = vector.broadcast %274 : f32 to vector<2x384xf32>
    %276 = arith.mulf %273, %275 : vector<2x384xf32>
    %c6_30 = arith.constant 6 : index
    %277 = memref.load %arg7[%c6_30] : memref<16xf32, #tpu.memory_space<smem>>
    %278 = vector.broadcast %277 : f32 to vector<2x384xf32>
    %279 = arith.addf %276, %278 : vector<2x384xf32>
    %cst_31 = arith.constant 0.000000e+00 : f32
    %280 = vector.broadcast %cst_31 : f32 to vector<2x384xf32>
    %281 = arith.maximumf %279, %280 : vector<2x384xf32>
    %c2_32 = arith.constant 2 : index
    %282 = memref.load %arg8[%c2_32] : memref<5xf32, #tpu.memory_space<smem>>
    %283 = vector.broadcast %282 : f32 to vector<2x384xf32>
    %284 = arith.mulf %283, %281 : vector<2x384xf32>
    %285 = arith.addf %266, %284 : vector<2x384xf32>
    %286 = vector.extract_strided_slice %228 {offsets = [0, 0], sizes = [2, 384], strides = [1, 1]} : vector<8x384xf32> to vector<2x384xf32>
    %287 = vector.extract_strided_slice %228 {offsets = [2, 0], sizes = [2, 384], strides = [1, 1]} : vector<8x384xf32> to vector<2x384xf32>
    %288 = arith.addf %286, %287 : vector<2x384xf32>
    %289 = vector.extract_strided_slice %228 {offsets = [4, 0], sizes = [2, 384], strides = [1, 1]} : vector<8x384xf32> to vector<2x384xf32>
    %290 = arith.addf %288, %289 : vector<2x384xf32>
    %291 = vector.extract_strided_slice %228 {offsets = [6, 0], sizes = [2, 384], strides = [1, 1]} : vector<8x384xf32> to vector<2x384xf32>
    %292 = arith.addf %290, %291 : vector<2x384xf32>
    %c3_33 = arith.constant 3 : index
    %293 = memref.load %arg7[%c3_33] : memref<16xf32, #tpu.memory_space<smem>>
    %294 = vector.broadcast %293 : f32 to vector<2x384xf32>
    %295 = arith.mulf %292, %294 : vector<2x384xf32>
    %c7_34 = arith.constant 7 : index
    %296 = memref.load %arg7[%c7_34] : memref<16xf32, #tpu.memory_space<smem>>
    %297 = vector.broadcast %296 : f32 to vector<2x384xf32>
    %298 = arith.addf %295, %297 : vector<2x384xf32>
    %cst_35 = arith.constant 0.000000e+00 : f32
    %299 = vector.broadcast %cst_35 : f32 to vector<2x384xf32>
    %300 = arith.maximumf %298, %299 : vector<2x384xf32>
    %c3_36 = arith.constant 3 : index
    %301 = memref.load %arg8[%c3_36] : memref<5xf32, #tpu.memory_space<smem>>
    %302 = vector.broadcast %301 : f32 to vector<2x384xf32>
    %303 = arith.mulf %302, %300 : vector<2x384xf32>
    %304 = arith.addf %285, %303 : vector<2x384xf32>
    %c0_37 = arith.constant 0 : index
    %c0_38 = arith.constant 0 : index
    %305 = vector.load %arg5[%c0_37, %c0_38] : memref<8x100xf32, #tpu.memory_space<vmem>>, vector<8x100xf32>
    %cst_39 = arith.constant 0.000000e+00 : f32
    %306 = vector.broadcast %cst_39 : f32 to vector<8x384xf32>
    %cst_40 = arith.constant 0.000000e+00 : f32
    %307 = vector.broadcast %cst_40 : f32 to vector<8x384xf32>
    %cst_41 = arith.constant 0.000000e+00 : f32
    %308 = vector.broadcast %cst_41 : f32 to vector<8x384xf32>
    %cst_42 = arith.constant 0.000000e+00 : f32
    %309 = vector.broadcast %cst_42 : f32 to vector<8x384xf32>
    %310 = vector.extract_strided_slice %2 {offsets = [0, 2], sizes = [8, 1], strides = [1, 1]} : vector<8x4xf32> to vector<8x1xf32>
    %311 = vector.extract_strided_slice %2 {offsets = [0, 3], sizes = [8, 1], strides = [1, 1]} : vector<8x4xf32> to vector<8x1xf32>
    %312 = vector.broadcast %310 : vector<8x1xf32> to vector<8x384xf32>
    %313 = arith.mulf %0, %312 : vector<8x384xf32>
    %314 = vector.broadcast %311 : vector<8x1xf32> to vector<8x384xf32>
    %315 = arith.addf %313, %314 : vector<8x384xf32>
    %cst_43 = arith.constant 0.000000e+00 : f32
    %316 = vector.broadcast %cst_43 : f32 to vector<8x384xf32>
    %317 = arith.maximumf %315, %316 : vector<8x384xf32>
    %318 = vector.broadcast %1 : vector<1x384xf32> to vector<8x384xf32>
    %319 = arith.mulf %318, %317 : vector<8x384xf32>
    %c42_i32 = arith.constant 42 : i32
    %320 = tpu.dynamic_rotate %319 by %c42_i32 dim 1 : vector<8x384xf32>, i32 -> vector<8x384xf32>
    %321 = vector.extract_strided_slice %305 {offsets = [0, 0], sizes = [8, 4], strides = [1, 1]} : vector<8x100xf32> to vector<8x4xf32>
    %322 = vector.extract_strided_slice %321 {offsets = [0, 0], sizes = [8, 1], strides = [1, 1]} : vector<8x4xf32> to vector<8x1xf32>
    %323 = vector.broadcast %322 : vector<8x1xf32> to vector<8x384xf32>
    %324 = arith.mulf %320, %323 : vector<8x384xf32>
    %325 = arith.addf %306, %324 : vector<8x384xf32>
    %326 = vector.extract_strided_slice %321 {offsets = [0, 1], sizes = [8, 1], strides = [1, 1]} : vector<8x4xf32> to vector<8x1xf32>
    %327 = vector.broadcast %326 : vector<8x1xf32> to vector<8x384xf32>
    %328 = arith.mulf %320, %327 : vector<8x384xf32>
    %329 = arith.addf %307, %328 : vector<8x384xf32>
    %330 = vector.extract_strided_slice %321 {offsets = [0, 2], sizes = [8, 1], strides = [1, 1]} : vector<8x4xf32> to vector<8x1xf32>
    %331 = vector.broadcast %330 : vector<8x1xf32> to vector<8x384xf32>
    %332 = arith.mulf %320, %331 : vector<8x384xf32>
    %333 = arith.addf %308, %332 : vector<8x384xf32>
    %334 = vector.extract_strided_slice %321 {offsets = [0, 3], sizes = [8, 1], strides = [1, 1]} : vector<8x4xf32> to vector<8x1xf32>
    %335 = vector.broadcast %334 : vector<8x1xf32> to vector<8x384xf32>
    %336 = arith.mulf %320, %335 : vector<8x384xf32>
    %337 = arith.addf %309, %336 : vector<8x384xf32>
    %c41_i32 = arith.constant 41 : i32
    %338 = tpu.dynamic_rotate %319 by %c41_i32 dim 1 : vector<8x384xf32>, i32 -> vector<8x384xf32>
    %339 = vector.extract_strided_slice %305 {offsets = [0, 4], sizes = [8, 4], strides = [1, 1]} : vector<8x100xf32> to vector<8x4xf32>
    %340 = vector.extract_strided_slice %339 {offsets = [0, 0], sizes = [8, 1], strides = [1, 1]} : vector<8x4xf32> to vector<8x1xf32>
    %341 = vector.broadcast %340 : vector<8x1xf32> to vector<8x384xf32>
    %342 = arith.mulf %338, %341 : vector<8x384xf32>
    %343 = arith.addf %325, %342 : vector<8x384xf32>
    %344 = vector.extract_strided_slice %339 {offsets = [0, 1], sizes = [8, 1], strides = [1, 1]} : vector<8x4xf32> to vector<8x1xf32>
    %345 = vector.broadcast %344 : vector<8x1xf32> to vector<8x384xf32>
    %346 = arith.mulf %338, %345 : vector<8x384xf32>
    %347 = arith.addf %329, %346 : vector<8x384xf32>
    %348 = vector.extract_strided_slice %339 {offsets = [0, 2], sizes = [8, 1], strides = [1, 1]} : vector<8x4xf32> to vector<8x1xf32>
    %349 = vector.broadcast %348 : vector<8x1xf32> to vector<8x384xf32>
    %350 = arith.mulf %338, %349 : vector<8x384xf32>
    %351 = arith.addf %333, %350 : vector<8x384xf32>
    %352 = vector.extract_strided_slice %339 {offsets = [0, 3], sizes = [8, 1], strides = [1, 1]} : vector<8x4xf32> to vector<8x1xf32>
    %353 = vector.broadcast %352 : vector<8x1xf32> to vector<8x384xf32>
    %354 = arith.mulf %338, %353 : vector<8x384xf32>
    %355 = arith.addf %337, %354 : vector<8x384xf32>
    %c40_i32 = arith.constant 40 : i32
    %356 = tpu.dynamic_rotate %319 by %c40_i32 dim 1 : vector<8x384xf32>, i32 -> vector<8x384xf32>
    %357 = vector.extract_strided_slice %305 {offsets = [0, 8], sizes = [8, 4], strides = [1, 1]} : vector<8x100xf32> to vector<8x4xf32>
    %358 = vector.extract_strided_slice %357 {offsets = [0, 0], sizes = [8, 1], strides = [1, 1]} : vector<8x4xf32> to vector<8x1xf32>
    %359 = vector.broadcast %358 : vector<8x1xf32> to vector<8x384xf32>
    %360 = arith.mulf %356, %359 : vector<8x384xf32>
    %361 = arith.addf %343, %360 : vector<8x384xf32>
    %362 = vector.extract_strided_slice %357 {offsets = [0, 1], sizes = [8, 1], strides = [1, 1]} : vector<8x4xf32> to vector<8x1xf32>
    %363 = vector.broadcast %362 : vector<8x1xf32> to vector<8x384xf32>
    %364 = arith.mulf %356, %363 : vector<8x384xf32>
    %365 = arith.addf %347, %364 : vector<8x384xf32>
    %366 = vector.extract_strided_slice %357 {offsets = [0, 2], sizes = [8, 1], strides = [1, 1]} : vector<8x4xf32> to vector<8x1xf32>
    %367 = vector.broadcast %366 : vector<8x1xf32> to vector<8x384xf32>
    %368 = arith.mulf %356, %367 : vector<8x384xf32>
    %369 = arith.addf %351, %368 : vector<8x384xf32>
    %370 = vector.extract_strided_slice %357 {offsets = [0, 3], sizes = [8, 1], strides = [1, 1]} : vector<8x4xf32> to vector<8x1xf32>
    %371 = vector.broadcast %370 : vector<8x1xf32> to vector<8x384xf32>
    %372 = arith.mulf %356, %371 : vector<8x384xf32>
    %373 = arith.addf %355, %372 : vector<8x384xf32>
    %c39_i32 = arith.constant 39 : i32
    %374 = tpu.dynamic_rotate %319 by %c39_i32 dim 1 : vector<8x384xf32>, i32 -> vector<8x384xf32>
    %375 = vector.extract_strided_slice %305 {offsets = [0, 12], sizes = [8, 4], strides = [1, 1]} : vector<8x100xf32> to vector<8x4xf32>
    %376 = vector.extract_strided_slice %375 {offsets = [0, 0], sizes = [8, 1], strides = [1, 1]} : vector<8x4xf32> to vector<8x1xf32>
    %377 = vector.broadcast %376 : vector<8x1xf32> to vector<8x384xf32>
    %378 = arith.mulf %374, %377 : vector<8x384xf32>
    %379 = arith.addf %361, %378 : vector<8x384xf32>
    %380 = vector.extract_strided_slice %375 {offsets = [0, 1], sizes = [8, 1], strides = [1, 1]} : vector<8x4xf32> to vector<8x1xf32>
    %381 = vector.broadcast %380 : vector<8x1xf32> to vector<8x384xf32>
    %382 = arith.mulf %374, %381 : vector<8x384xf32>
    %383 = arith.addf %365, %382 : vector<8x384xf32>
    %384 = vector.extract_strided_slice %375 {offsets = [0, 2], sizes = [8, 1], strides = [1, 1]} : vector<8x4xf32> to vector<8x1xf32>
    %385 = vector.broadcast %384 : vector<8x1xf32> to vector<8x384xf32>
    %386 = arith.mulf %374, %385 : vector<8x384xf32>
    %387 = arith.addf %369, %386 : vector<8x384xf32>
    %388 = vector.extract_strided_slice %375 {offsets = [0, 3], sizes = [8, 1], strides = [1, 1]} : vector<8x4xf32> to vector<8x1xf32>
    %389 = vector.broadcast %388 : vector<8x1xf32> to vector<8x384xf32>
    %390 = arith.mulf %374, %389 : vector<8x384xf32>
    %391 = arith.addf %373, %390 : vector<8x384xf32>
    %c38_i32 = arith.constant 38 : i32
    %392 = tpu.dynamic_rotate %319 by %c38_i32 dim 1 : vector<8x384xf32>, i32 -> vector<8x384xf32>
    %393 = vector.extract_strided_slice %305 {offsets = [0, 16], sizes = [8, 4], strides = [1, 1]} : vector<8x100xf32> to vector<8x4xf32>
    %394 = vector.extract_strided_slice %393 {offsets = [0, 0], sizes = [8, 1], strides = [1, 1]} : vector<8x4xf32> to vector<8x1xf32>
    %395 = vector.broadcast %394 : vector<8x1xf32> to vector<8x384xf32>
    %396 = arith.mulf %392, %395 : vector<8x384xf32>
    %397 = arith.addf %379, %396 : vector<8x384xf32>
    %398 = vector.extract_strided_slice %393 {offsets = [0, 1], sizes = [8, 1], strides = [1, 1]} : vector<8x4xf32> to vector<8x1xf32>
    %399 = vector.broadcast %398 : vector<8x1xf32> to vector<8x384xf32>
    %400 = arith.mulf %392, %399 : vector<8x384xf32>
    %401 = arith.addf %383, %400 : vector<8x384xf32>
    %402 = vector.extract_strided_slice %393 {offsets = [0, 2], sizes = [8, 1], strides = [1, 1]} : vector<8x4xf32> to vector<8x1xf32>
    %403 = vector.broadcast %402 : vector<8x1xf32> to vector<8x384xf32>
    %404 = arith.mulf %392, %403 : vector<8x384xf32>
    %405 = arith.addf %387, %404 : vector<8x384xf32>
    %406 = vector.extract_strided_slice %393 {offsets = [0, 3], sizes = [8, 1], strides = [1, 1]} : vector<8x4xf32> to vector<8x1xf32>
    %407 = vector.broadcast %406 : vector<8x1xf32> to vector<8x384xf32>
    %408 = arith.mulf %392, %407 : vector<8x384xf32>
    %409 = arith.addf %391, %408 : vector<8x384xf32>
    %c22_i32 = arith.constant 22 : i32
    %410 = tpu.dynamic_rotate %319 by %c22_i32 dim 1 : vector<8x384xf32>, i32 -> vector<8x384xf32>
    %411 = vector.extract_strided_slice %305 {offsets = [0, 20], sizes = [8, 4], strides = [1, 1]} : vector<8x100xf32> to vector<8x4xf32>
    %412 = vector.extract_strided_slice %411 {offsets = [0, 0], sizes = [8, 1], strides = [1, 1]} : vector<8x4xf32> to vector<8x1xf32>
    %413 = vector.broadcast %412 : vector<8x1xf32> to vector<8x384xf32>
    %414 = arith.mulf %410, %413 : vector<8x384xf32>
    %415 = arith.addf %397, %414 : vector<8x384xf32>
    %416 = vector.extract_strided_slice %411 {offsets = [0, 1], sizes = [8, 1], strides = [1, 1]} : vector<8x4xf32> to vector<8x1xf32>
    %417 = vector.broadcast %416 : vector<8x1xf32> to vector<8x384xf32>
    %418 = arith.mulf %410, %417 : vector<8x384xf32>
    %419 = arith.addf %401, %418 : vector<8x384xf32>
    %420 = vector.extract_strided_slice %411 {offsets = [0, 2], sizes = [8, 1], strides = [1, 1]} : vector<8x4xf32> to vector<8x1xf32>
    %421 = vector.broadcast %420 : vector<8x1xf32> to vector<8x384xf32>
    %422 = arith.mulf %410, %421 : vector<8x384xf32>
    %423 = arith.addf %405, %422 : vector<8x384xf32>
    %424 = vector.extract_strided_slice %411 {offsets = [0, 3], sizes = [8, 1], strides = [1, 1]} : vector<8x4xf32> to vector<8x1xf32>
    %425 = vector.broadcast %424 : vector<8x1xf32> to vector<8x384xf32>
    %426 = arith.mulf %410, %425 : vector<8x384xf32>
    %427 = arith.addf %409, %426 : vector<8x384xf32>
    %c21_i32_44 = arith.constant 21 : i32
    %428 = tpu.dynamic_rotate %319 by %c21_i32_44 dim 1 : vector<8x384xf32>, i32 -> vector<8x384xf32>
    %429 = vector.extract_strided_slice %305 {offsets = [0, 24], sizes = [8, 4], strides = [1, 1]} : vector<8x100xf32> to vector<8x4xf32>
    %430 = vector.extract_strided_slice %429 {offsets = [0, 0], sizes = [8, 1], strides = [1, 1]} : vector<8x4xf32> to vector<8x1xf32>
    %431 = vector.broadcast %430 : vector<8x1xf32> to vector<8x384xf32>
    %432 = arith.mulf %428, %431 : vector<8x384xf32>
    %433 = arith.addf %415, %432 : vector<8x384xf32>
    %434 = vector.extract_strided_slice %429 {offsets = [0, 1], sizes = [8, 1], strides = [1, 1]} : vector<8x4xf32> to vector<8x1xf32>
    %435 = vector.broadcast %434 : vector<8x1xf32> to vector<8x384xf32>
    %436 = arith.mulf %428, %435 : vector<8x384xf32>
    %437 = arith.addf %419, %436 : vector<8x384xf32>
    %438 = vector.extract_strided_slice %429 {offsets = [0, 2], sizes = [8, 1], strides = [1, 1]} : vector<8x4xf32> to vector<8x1xf32>
    %439 = vector.broadcast %438 : vector<8x1xf32> to vector<8x384xf32>
    %440 = arith.mulf %428, %439 : vector<8x384xf32>
    %441 = arith.addf %423, %440 : vector<8x384xf32>
    %442 = vector.extract_strided_slice %429 {offsets = [0, 3], sizes = [8, 1], strides = [1, 1]} : vector<8x4xf32> to vector<8x1xf32>
    %443 = vector.broadcast %442 : vector<8x1xf32> to vector<8x384xf32>
    %444 = arith.mulf %428, %443 : vector<8x384xf32>
    %445 = arith.addf %427, %444 : vector<8x384xf32>
    %c20_i32_45 = arith.constant 20 : i32
    %446 = tpu.dynamic_rotate %319 by %c20_i32_45 dim 1 : vector<8x384xf32>, i32 -> vector<8x384xf32>
    %447 = vector.extract_strided_slice %305 {offsets = [0, 28], sizes = [8, 4], strides = [1, 1]} : vector<8x100xf32> to vector<8x4xf32>
    %448 = vector.extract_strided_slice %447 {offsets = [0, 0], sizes = [8, 1], strides = [1, 1]} : vector<8x4xf32> to vector<8x1xf32>
    %449 = vector.broadcast %448 : vector<8x1xf32> to vector<8x384xf32>
    %450 = arith.mulf %446, %449 : vector<8x384xf32>
    %451 = arith.addf %433, %450 : vector<8x384xf32>
    %452 = vector.extract_strided_slice %447 {offsets = [0, 1], sizes = [8, 1], strides = [1, 1]} : vector<8x4xf32> to vector<8x1xf32>
    %453 = vector.broadcast %452 : vector<8x1xf32> to vector<8x384xf32>
    %454 = arith.mulf %446, %453 : vector<8x384xf32>
    %455 = arith.addf %437, %454 : vector<8x384xf32>
    %456 = vector.extract_strided_slice %447 {offsets = [0, 2], sizes = [8, 1], strides = [1, 1]} : vector<8x4xf32> to vector<8x1xf32>
    %457 = vector.broadcast %456 : vector<8x1xf32> to vector<8x384xf32>
    %458 = arith.mulf %446, %457 : vector<8x384xf32>
    %459 = arith.addf %441, %458 : vector<8x384xf32>
    %460 = vector.extract_strided_slice %447 {offsets = [0, 3], sizes = [8, 1], strides = [1, 1]} : vector<8x4xf32> to vector<8x1xf32>
    %461 = vector.broadcast %460 : vector<8x1xf32> to vector<8x384xf32>
    %462 = arith.mulf %446, %461 : vector<8x384xf32>
    %463 = arith.addf %445, %462 : vector<8x384xf32>
    %c19_i32_46 = arith.constant 19 : i32
    %464 = tpu.dynamic_rotate %319 by %c19_i32_46 dim 1 : vector<8x384xf32>, i32 -> vector<8x384xf32>
    %465 = vector.extract_strided_slice %305 {offsets = [0, 32], sizes = [8, 4], strides = [1, 1]} : vector<8x100xf32> to vector<8x4xf32>
    %466 = vector.extract_strided_slice %465 {offsets = [0, 0], sizes = [8, 1], strides = [1, 1]} : vector<8x4xf32> to vector<8x1xf32>
    %467 = vector.broadcast %466 : vector<8x1xf32> to vector<8x384xf32>
    %468 = arith.mulf %464, %467 : vector<8x384xf32>
    %469 = arith.addf %451, %468 : vector<8x384xf32>
    %470 = vector.extract_strided_slice %465 {offsets = [0, 1], sizes = [8, 1], strides = [1, 1]} : vector<8x4xf32> to vector<8x1xf32>
    %471 = vector.broadcast %470 : vector<8x1xf32> to vector<8x384xf32>
    %472 = arith.mulf %464, %471 : vector<8x384xf32>
    %473 = arith.addf %455, %472 : vector<8x384xf32>
    %474 = vector.extract_strided_slice %465 {offsets = [0, 2], sizes = [8, 1], strides = [1, 1]} : vector<8x4xf32> to vector<8x1xf32>
    %475 = vector.broadcast %474 : vector<8x1xf32> to vector<8x384xf32>
    %476 = arith.mulf %464, %475 : vector<8x384xf32>
    %477 = arith.addf %459, %476 : vector<8x384xf32>
    %478 = vector.extract_strided_slice %465 {offsets = [0, 3], sizes = [8, 1], strides = [1, 1]} : vector<8x4xf32> to vector<8x1xf32>
    %479 = vector.broadcast %478 : vector<8x1xf32> to vector<8x384xf32>
    %480 = arith.mulf %464, %479 : vector<8x384xf32>
    %481 = arith.addf %463, %480 : vector<8x384xf32>
    %c18_i32 = arith.constant 18 : i32
    %482 = tpu.dynamic_rotate %319 by %c18_i32 dim 1 : vector<8x384xf32>, i32 -> vector<8x384xf32>
    %483 = vector.extract_strided_slice %305 {offsets = [0, 36], sizes = [8, 4], strides = [1, 1]} : vector<8x100xf32> to vector<8x4xf32>
    %484 = vector.extract_strided_slice %483 {offsets = [0, 0], sizes = [8, 1], strides = [1, 1]} : vector<8x4xf32> to vector<8x1xf32>
    %485 = vector.broadcast %484 : vector<8x1xf32> to vector<8x384xf32>
    %486 = arith.mulf %482, %485 : vector<8x384xf32>
    %487 = arith.addf %469, %486 : vector<8x384xf32>
    %488 = vector.extract_strided_slice %483 {offsets = [0, 1], sizes = [8, 1], strides = [1, 1]} : vector<8x4xf32> to vector<8x1xf32>
    %489 = vector.broadcast %488 : vector<8x1xf32> to vector<8x384xf32>
    %490 = arith.mulf %482, %489 : vector<8x384xf32>
    %491 = arith.addf %473, %490 : vector<8x384xf32>
    %492 = vector.extract_strided_slice %483 {offsets = [0, 2], sizes = [8, 1], strides = [1, 1]} : vector<8x4xf32> to vector<8x1xf32>
    %493 = vector.broadcast %492 : vector<8x1xf32> to vector<8x384xf32>
    %494 = arith.mulf %482, %493 : vector<8x384xf32>
    %495 = arith.addf %477, %494 : vector<8x384xf32>
    %496 = vector.extract_strided_slice %483 {offsets = [0, 3], sizes = [8, 1], strides = [1, 1]} : vector<8x4xf32> to vector<8x1xf32>
    %497 = vector.broadcast %496 : vector<8x1xf32> to vector<8x384xf32>
    %498 = arith.mulf %482, %497 : vector<8x384xf32>
    %499 = arith.addf %481, %498 : vector<8x384xf32>
    %c2_i32 = arith.constant 2 : i32
    %500 = tpu.dynamic_rotate %319 by %c2_i32 dim 1 : vector<8x384xf32>, i32 -> vector<8x384xf32>
    %501 = vector.extract_strided_slice %305 {offsets = [0, 40], sizes = [8, 4], strides = [1, 1]} : vector<8x100xf32> to vector<8x4xf32>
    %502 = vector.extract_strided_slice %501 {offsets = [0, 0], sizes = [8, 1], strides = [1, 1]} : vector<8x4xf32> to vector<8x1xf32>
    %503 = vector.broadcast %502 : vector<8x1xf32> to vector<8x384xf32>
    %504 = arith.mulf %500, %503 : vector<8x384xf32>
    %505 = arith.addf %487, %504 : vector<8x384xf32>
    %506 = vector.extract_strided_slice %501 {offsets = [0, 1], sizes = [8, 1], strides = [1, 1]} : vector<8x4xf32> to vector<8x1xf32>
    %507 = vector.broadcast %506 : vector<8x1xf32> to vector<8x384xf32>
    %508 = arith.mulf %500, %507 : vector<8x384xf32>
    %509 = arith.addf %491, %508 : vector<8x384xf32>
    %510 = vector.extract_strided_slice %501 {offsets = [0, 2], sizes = [8, 1], strides = [1, 1]} : vector<8x4xf32> to vector<8x1xf32>
    %511 = vector.broadcast %510 : vector<8x1xf32> to vector<8x384xf32>
    %512 = arith.mulf %500, %511 : vector<8x384xf32>
    %513 = arith.addf %495, %512 : vector<8x384xf32>
    %514 = vector.extract_strided_slice %501 {offsets = [0, 3], sizes = [8, 1], strides = [1, 1]} : vector<8x4xf32> to vector<8x1xf32>
    %515 = vector.broadcast %514 : vector<8x1xf32> to vector<8x384xf32>
    %516 = arith.mulf %500, %515 : vector<8x384xf32>
    %517 = arith.addf %499, %516 : vector<8x384xf32>
    %c1_i32_47 = arith.constant 1 : i32
    %518 = tpu.dynamic_rotate %319 by %c1_i32_47 dim 1 : vector<8x384xf32>, i32 -> vector<8x384xf32>
    %519 = vector.extract_strided_slice %305 {offsets = [0, 44], sizes = [8, 4], strides = [1, 1]} : vector<8x100xf32> to vector<8x4xf32>
    %520 = vector.extract_strided_slice %519 {offsets = [0, 0], sizes = [8, 1], strides = [1, 1]} : vector<8x4xf32> to vector<8x1xf32>
    %521 = vector.broadcast %520 : vector<8x1xf32> to vector<8x384xf32>
    %522 = arith.mulf %518, %521 : vector<8x384xf32>
    %523 = arith.addf %505, %522 : vector<8x384xf32>
    %524 = vector.extract_strided_slice %519 {offsets = [0, 1], sizes = [8, 1], strides = [1, 1]} : vector<8x4xf32> to vector<8x1xf32>
    %525 = vector.broadcast %524 : vector<8x1xf32> to vector<8x384xf32>
    %526 = arith.mulf %518, %525 : vector<8x384xf32>
    %527 = arith.addf %509, %526 : vector<8x384xf32>
    %528 = vector.extract_strided_slice %519 {offsets = [0, 2], sizes = [8, 1], strides = [1, 1]} : vector<8x4xf32> to vector<8x1xf32>
    %529 = vector.broadcast %528 : vector<8x1xf32> to vector<8x384xf32>
    %530 = arith.mulf %518, %529 : vector<8x384xf32>
    %531 = arith.addf %513, %530 : vector<8x384xf32>
    %532 = vector.extract_strided_slice %519 {offsets = [0, 3], sizes = [8, 1], strides = [1, 1]} : vector<8x4xf32> to vector<8x1xf32>
    %533 = vector.broadcast %532 : vector<8x1xf32> to vector<8x384xf32>
    %534 = arith.mulf %518, %533 : vector<8x384xf32>
    %535 = arith.addf %517, %534 : vector<8x384xf32>
    %536 = vector.extract_strided_slice %305 {offsets = [0, 48], sizes = [8, 4], strides = [1, 1]} : vector<8x100xf32> to vector<8x4xf32>
    %537 = vector.extract_strided_slice %536 {offsets = [0, 0], sizes = [8, 1], strides = [1, 1]} : vector<8x4xf32> to vector<8x1xf32>
    %538 = vector.broadcast %537 : vector<8x1xf32> to vector<8x384xf32>
    %539 = arith.mulf %319, %538 : vector<8x384xf32>
    %540 = arith.addf %523, %539 : vector<8x384xf32>
    %541 = vector.extract_strided_slice %536 {offsets = [0, 1], sizes = [8, 1], strides = [1, 1]} : vector<8x4xf32> to vector<8x1xf32>
    %542 = vector.broadcast %541 : vector<8x1xf32> to vector<8x384xf32>
    %543 = arith.mulf %319, %542 : vector<8x384xf32>
    %544 = arith.addf %527, %543 : vector<8x384xf32>
    %545 = vector.extract_strided_slice %536 {offsets = [0, 2], sizes = [8, 1], strides = [1, 1]} : vector<8x4xf32> to vector<8x1xf32>
    %546 = vector.broadcast %545 : vector<8x1xf32> to vector<8x384xf32>
    %547 = arith.mulf %319, %546 : vector<8x384xf32>
    %548 = arith.addf %531, %547 : vector<8x384xf32>
    %549 = vector.extract_strided_slice %536 {offsets = [0, 3], sizes = [8, 1], strides = [1, 1]} : vector<8x4xf32> to vector<8x1xf32>
    %550 = vector.broadcast %549 : vector<8x1xf32> to vector<8x384xf32>
    %551 = arith.mulf %319, %550 : vector<8x384xf32>
    %552 = arith.addf %535, %551 : vector<8x384xf32>
    %c383_i32_48 = arith.constant 383 : i32
    %553 = tpu.dynamic_rotate %319 by %c383_i32_48 dim 1 : vector<8x384xf32>, i32 -> vector<8x384xf32>
    %554 = vector.extract_strided_slice %305 {offsets = [0, 52], sizes = [8, 4], strides = [1, 1]} : vector<8x100xf32> to vector<8x4xf32>
    %555 = vector.extract_strided_slice %554 {offsets = [0, 0], sizes = [8, 1], strides = [1, 1]} : vector<8x4xf32> to vector<8x1xf32>
    %556 = vector.broadcast %555 : vector<8x1xf32> to vector<8x384xf32>
    %557 = arith.mulf %553, %556 : vector<8x384xf32>
    %558 = arith.addf %540, %557 : vector<8x384xf32>
    %559 = vector.extract_strided_slice %554 {offsets = [0, 1], sizes = [8, 1], strides = [1, 1]} : vector<8x4xf32> to vector<8x1xf32>
    %560 = vector.broadcast %559 : vector<8x1xf32> to vector<8x384xf32>
    %561 = arith.mulf %553, %560 : vector<8x384xf32>
    %562 = arith.addf %544, %561 : vector<8x384xf32>
    %563 = vector.extract_strided_slice %554 {offsets = [0, 2], sizes = [8, 1], strides = [1, 1]} : vector<8x4xf32> to vector<8x1xf32>
    %564 = vector.broadcast %563 : vector<8x1xf32> to vector<8x384xf32>
    %565 = arith.mulf %553, %564 : vector<8x384xf32>
    %566 = arith.addf %548, %565 : vector<8x384xf32>
    %567 = vector.extract_strided_slice %554 {offsets = [0, 3], sizes = [8, 1], strides = [1, 1]} : vector<8x4xf32> to vector<8x1xf32>
    %568 = vector.broadcast %567 : vector<8x1xf32> to vector<8x384xf32>
    %569 = arith.mulf %553, %568 : vector<8x384xf32>
    %570 = arith.addf %552, %569 : vector<8x384xf32>
    %c382_i32 = arith.constant 382 : i32
    %571 = tpu.dynamic_rotate %319 by %c382_i32 dim 1 : vector<8x384xf32>, i32 -> vector<8x384xf32>
    %572 = vector.extract_strided_slice %305 {offsets = [0, 56], sizes = [8, 4], strides = [1, 1]} : vector<8x100xf32> to vector<8x4xf32>
    %573 = vector.extract_strided_slice %572 {offsets = [0, 0], sizes = [8, 1], strides = [1, 1]} : vector<8x4xf32> to vector<8x1xf32>
    %574 = vector.broadcast %573 : vector<8x1xf32> to vector<8x384xf32>
    %575 = arith.mulf %571, %574 : vector<8x384xf32>
    %576 = arith.addf %558, %575 : vector<8x384xf32>
    %577 = vector.extract_strided_slice %572 {offsets = [0, 1], sizes = [8, 1], strides = [1, 1]} : vector<8x4xf32> to vector<8x1xf32>
    %578 = vector.broadcast %577 : vector<8x1xf32> to vector<8x384xf32>
    %579 = arith.mulf %571, %578 : vector<8x384xf32>
    %580 = arith.addf %562, %579 : vector<8x384xf32>
    %581 = vector.extract_strided_slice %572 {offsets = [0, 2], sizes = [8, 1], strides = [1, 1]} : vector<8x4xf32> to vector<8x1xf32>
    %582 = vector.broadcast %581 : vector<8x1xf32> to vector<8x384xf32>
    %583 = arith.mulf %571, %582 : vector<8x384xf32>
    %584 = arith.addf %566, %583 : vector<8x384xf32>
    %585 = vector.extract_strided_slice %572 {offsets = [0, 3], sizes = [8, 1], strides = [1, 1]} : vector<8x4xf32> to vector<8x1xf32>
    %586 = vector.broadcast %585 : vector<8x1xf32> to vector<8x384xf32>
    %587 = arith.mulf %571, %586 : vector<8x384xf32>
    %588 = arith.addf %570, %587 : vector<8x384xf32>
    %c366_i32 = arith.constant 366 : i32
    %589 = tpu.dynamic_rotate %319 by %c366_i32 dim 1 : vector<8x384xf32>, i32 -> vector<8x384xf32>
    %590 = vector.extract_strided_slice %305 {offsets = [0, 60], sizes = [8, 4], strides = [1, 1]} : vector<8x100xf32> to vector<8x4xf32>
    %591 = vector.extract_strided_slice %590 {offsets = [0, 0], sizes = [8, 1], strides = [1, 1]} : vector<8x4xf32> to vector<8x1xf32>
    %592 = vector.broadcast %591 : vector<8x1xf32> to vector<8x384xf32>
    %593 = arith.mulf %589, %592 : vector<8x384xf32>
    %594 = arith.addf %576, %593 : vector<8x384xf32>
    %595 = vector.extract_strided_slice %590 {offsets = [0, 1], sizes = [8, 1], strides = [1, 1]} : vector<8x4xf32> to vector<8x1xf32>
    %596 = vector.broadcast %595 : vector<8x1xf32> to vector<8x384xf32>
    %597 = arith.mulf %589, %596 : vector<8x384xf32>
    %598 = arith.addf %580, %597 : vector<8x384xf32>
    %599 = vector.extract_strided_slice %590 {offsets = [0, 2], sizes = [8, 1], strides = [1, 1]} : vector<8x4xf32> to vector<8x1xf32>
    %600 = vector.broadcast %599 : vector<8x1xf32> to vector<8x384xf32>
    %601 = arith.mulf %589, %600 : vector<8x384xf32>
    %602 = arith.addf %584, %601 : vector<8x384xf32>
    %603 = vector.extract_strided_slice %590 {offsets = [0, 3], sizes = [8, 1], strides = [1, 1]} : vector<8x4xf32> to vector<8x1xf32>
    %604 = vector.broadcast %603 : vector<8x1xf32> to vector<8x384xf32>
    %605 = arith.mulf %589, %604 : vector<8x384xf32>
    %606 = arith.addf %588, %605 : vector<8x384xf32>
    %c365_i32_49 = arith.constant 365 : i32
    %607 = tpu.dynamic_rotate %319 by %c365_i32_49 dim 1 : vector<8x384xf32>, i32 -> vector<8x384xf32>
    %608 = vector.extract_strided_slice %305 {offsets = [0, 64], sizes = [8, 4], strides = [1, 1]} : vector<8x100xf32> to vector<8x4xf32>
    %609 = vector.extract_strided_slice %608 {offsets = [0, 0], sizes = [8, 1], strides = [1, 1]} : vector<8x4xf32> to vector<8x1xf32>
    %610 = vector.broadcast %609 : vector<8x1xf32> to vector<8x384xf32>
    %611 = arith.mulf %607, %610 : vector<8x384xf32>
    %612 = arith.addf %594, %611 : vector<8x384xf32>
    %613 = vector.extract_strided_slice %608 {offsets = [0, 1], sizes = [8, 1], strides = [1, 1]} : vector<8x4xf32> to vector<8x1xf32>
    %614 = vector.broadcast %613 : vector<8x1xf32> to vector<8x384xf32>
    %615 = arith.mulf %607, %614 : vector<8x384xf32>
    %616 = arith.addf %598, %615 : vector<8x384xf32>
    %617 = vector.extract_strided_slice %608 {offsets = [0, 2], sizes = [8, 1], strides = [1, 1]} : vector<8x4xf32> to vector<8x1xf32>
    %618 = vector.broadcast %617 : vector<8x1xf32> to vector<8x384xf32>
    %619 = arith.mulf %607, %618 : vector<8x384xf32>
    %620 = arith.addf %602, %619 : vector<8x384xf32>
    %621 = vector.extract_strided_slice %608 {offsets = [0, 3], sizes = [8, 1], strides = [1, 1]} : vector<8x4xf32> to vector<8x1xf32>
    %622 = vector.broadcast %621 : vector<8x1xf32> to vector<8x384xf32>
    %623 = arith.mulf %607, %622 : vector<8x384xf32>
    %624 = arith.addf %606, %623 : vector<8x384xf32>
    %c364_i32_50 = arith.constant 364 : i32
    %625 = tpu.dynamic_rotate %319 by %c364_i32_50 dim 1 : vector<8x384xf32>, i32 -> vector<8x384xf32>
    %626 = vector.extract_strided_slice %305 {offsets = [0, 68], sizes = [8, 4], strides = [1, 1]} : vector<8x100xf32> to vector<8x4xf32>
    %627 = vector.extract_strided_slice %626 {offsets = [0, 0], sizes = [8, 1], strides = [1, 1]} : vector<8x4xf32> to vector<8x1xf32>
    %628 = vector.broadcast %627 : vector<8x1xf32> to vector<8x384xf32>
    %629 = arith.mulf %625, %628 : vector<8x384xf32>
    %630 = arith.addf %612, %629 : vector<8x384xf32>
    %631 = vector.extract_strided_slice %626 {offsets = [0, 1], sizes = [8, 1], strides = [1, 1]} : vector<8x4xf32> to vector<8x1xf32>
    %632 = vector.broadcast %631 : vector<8x1xf32> to vector<8x384xf32>
    %633 = arith.mulf %625, %632 : vector<8x384xf32>
    %634 = arith.addf %616, %633 : vector<8x384xf32>
    %635 = vector.extract_strided_slice %626 {offsets = [0, 2], sizes = [8, 1], strides = [1, 1]} : vector<8x4xf32> to vector<8x1xf32>
    %636 = vector.broadcast %635 : vector<8x1xf32> to vector<8x384xf32>
    %637 = arith.mulf %625, %636 : vector<8x384xf32>
    %638 = arith.addf %620, %637 : vector<8x384xf32>
    %639 = vector.extract_strided_slice %626 {offsets = [0, 3], sizes = [8, 1], strides = [1, 1]} : vector<8x4xf32> to vector<8x1xf32>
    %640 = vector.broadcast %639 : vector<8x1xf32> to vector<8x384xf32>
    %641 = arith.mulf %625, %640 : vector<8x384xf32>
    %642 = arith.addf %624, %641 : vector<8x384xf32>
    %c363_i32_51 = arith.constant 363 : i32
    %643 = tpu.dynamic_rotate %319 by %c363_i32_51 dim 1 : vector<8x384xf32>, i32 -> vector<8x384xf32>
    %644 = vector.extract_strided_slice %305 {offsets = [0, 72], sizes = [8, 4], strides = [1, 1]} : vector<8x100xf32> to vector<8x4xf32>
    %645 = vector.extract_strided_slice %644 {offsets = [0, 0], sizes = [8, 1], strides = [1, 1]} : vector<8x4xf32> to vector<8x1xf32>
    %646 = vector.broadcast %645 : vector<8x1xf32> to vector<8x384xf32>
    %647 = arith.mulf %643, %646 : vector<8x384xf32>
    %648 = arith.addf %630, %647 : vector<8x384xf32>
    %649 = vector.extract_strided_slice %644 {offsets = [0, 1], sizes = [8, 1], strides = [1, 1]} : vector<8x4xf32> to vector<8x1xf32>
    %650 = vector.broadcast %649 : vector<8x1xf32> to vector<8x384xf32>
    %651 = arith.mulf %643, %650 : vector<8x384xf32>
    %652 = arith.addf %634, %651 : vector<8x384xf32>
    %653 = vector.extract_strided_slice %644 {offsets = [0, 2], sizes = [8, 1], strides = [1, 1]} : vector<8x4xf32> to vector<8x1xf32>
    %654 = vector.broadcast %653 : vector<8x1xf32> to vector<8x384xf32>
    %655 = arith.mulf %643, %654 : vector<8x384xf32>
    %656 = arith.addf %638, %655 : vector<8x384xf32>
    %657 = vector.extract_strided_slice %644 {offsets = [0, 3], sizes = [8, 1], strides = [1, 1]} : vector<8x4xf32> to vector<8x1xf32>
    %658 = vector.broadcast %657 : vector<8x1xf32> to vector<8x384xf32>
    %659 = arith.mulf %643, %658 : vector<8x384xf32>
    %660 = arith.addf %642, %659 : vector<8x384xf32>
    %c362_i32 = arith.constant 362 : i32
    %661 = tpu.dynamic_rotate %319 by %c362_i32 dim 1 : vector<8x384xf32>, i32 -> vector<8x384xf32>
    %662 = vector.extract_strided_slice %305 {offsets = [0, 76], sizes = [8, 4], strides = [1, 1]} : vector<8x100xf32> to vector<8x4xf32>
    %663 = vector.extract_strided_slice %662 {offsets = [0, 0], sizes = [8, 1], strides = [1, 1]} : vector<8x4xf32> to vector<8x1xf32>
    %664 = vector.broadcast %663 : vector<8x1xf32> to vector<8x384xf32>
    %665 = arith.mulf %661, %664 : vector<8x384xf32>
    %666 = arith.addf %648, %665 : vector<8x384xf32>
    %667 = vector.extract_strided_slice %662 {offsets = [0, 1], sizes = [8, 1], strides = [1, 1]} : vector<8x4xf32> to vector<8x1xf32>
    %668 = vector.broadcast %667 : vector<8x1xf32> to vector<8x384xf32>
    %669 = arith.mulf %661, %668 : vector<8x384xf32>
    %670 = arith.addf %652, %669 : vector<8x384xf32>
    %671 = vector.extract_strided_slice %662 {offsets = [0, 2], sizes = [8, 1], strides = [1, 1]} : vector<8x4xf32> to vector<8x1xf32>
    %672 = vector.broadcast %671 : vector<8x1xf32> to vector<8x384xf32>
    %673 = arith.mulf %661, %672 : vector<8x384xf32>
    %674 = arith.addf %656, %673 : vector<8x384xf32>
    %675 = vector.extract_strided_slice %662 {offsets = [0, 3], sizes = [8, 1], strides = [1, 1]} : vector<8x4xf32> to vector<8x1xf32>
    %676 = vector.broadcast %675 : vector<8x1xf32> to vector<8x384xf32>
    %677 = arith.mulf %661, %676 : vector<8x384xf32>
    %678 = arith.addf %660, %677 : vector<8x384xf32>
    %c346_i32 = arith.constant 346 : i32
    %679 = tpu.dynamic_rotate %319 by %c346_i32 dim 1 : vector<8x384xf32>, i32 -> vector<8x384xf32>
    %680 = vector.extract_strided_slice %305 {offsets = [0, 80], sizes = [8, 4], strides = [1, 1]} : vector<8x100xf32> to vector<8x4xf32>
    %681 = vector.extract_strided_slice %680 {offsets = [0, 0], sizes = [8, 1], strides = [1, 1]} : vector<8x4xf32> to vector<8x1xf32>
    %682 = vector.broadcast %681 : vector<8x1xf32> to vector<8x384xf32>
    %683 = arith.mulf %679, %682 : vector<8x384xf32>
    %684 = arith.addf %666, %683 : vector<8x384xf32>
    %685 = vector.extract_strided_slice %680 {offsets = [0, 1], sizes = [8, 1], strides = [1, 1]} : vector<8x4xf32> to vector<8x1xf32>
    %686 = vector.broadcast %685 : vector<8x1xf32> to vector<8x384xf32>
    %687 = arith.mulf %679, %686 : vector<8x384xf32>
    %688 = arith.addf %670, %687 : vector<8x384xf32>
    %689 = vector.extract_strided_slice %680 {offsets = [0, 2], sizes = [8, 1], strides = [1, 1]} : vector<8x4xf32> to vector<8x1xf32>
    %690 = vector.broadcast %689 : vector<8x1xf32> to vector<8x384xf32>
    %691 = arith.mulf %679, %690 : vector<8x384xf32>
    %692 = arith.addf %674, %691 : vector<8x384xf32>
    %693 = vector.extract_strided_slice %680 {offsets = [0, 3], sizes = [8, 1], strides = [1, 1]} : vector<8x4xf32> to vector<8x1xf32>
    %694 = vector.broadcast %693 : vector<8x1xf32> to vector<8x384xf32>
    %695 = arith.mulf %679, %694 : vector<8x384xf32>
    %696 = arith.addf %678, %695 : vector<8x384xf32>
    %c345_i32 = arith.constant 345 : i32
    %697 = tpu.dynamic_rotate %319 by %c345_i32 dim 1 : vector<8x384xf32>, i32 -> vector<8x384xf32>
    %698 = vector.extract_strided_slice %305 {offsets = [0, 84], sizes = [8, 4], strides = [1, 1]} : vector<8x100xf32> to vector<8x4xf32>
    %699 = vector.extract_strided_slice %698 {offsets = [0, 0], sizes = [8, 1], strides = [1, 1]} : vector<8x4xf32> to vector<8x1xf32>
    %700 = vector.broadcast %699 : vector<8x1xf32> to vector<8x384xf32>
    %701 = arith.mulf %697, %700 : vector<8x384xf32>
    %702 = arith.addf %684, %701 : vector<8x384xf32>
    %703 = vector.extract_strided_slice %698 {offsets = [0, 1], sizes = [8, 1], strides = [1, 1]} : vector<8x4xf32> to vector<8x1xf32>
    %704 = vector.broadcast %703 : vector<8x1xf32> to vector<8x384xf32>
    %705 = arith.mulf %697, %704 : vector<8x384xf32>
    %706 = arith.addf %688, %705 : vector<8x384xf32>
    %707 = vector.extract_strided_slice %698 {offsets = [0, 2], sizes = [8, 1], strides = [1, 1]} : vector<8x4xf32> to vector<8x1xf32>
    %708 = vector.broadcast %707 : vector<8x1xf32> to vector<8x384xf32>
    %709 = arith.mulf %697, %708 : vector<8x384xf32>
    %710 = arith.addf %692, %709 : vector<8x384xf32>
    %711 = vector.extract_strided_slice %698 {offsets = [0, 3], sizes = [8, 1], strides = [1, 1]} : vector<8x4xf32> to vector<8x1xf32>
    %712 = vector.broadcast %711 : vector<8x1xf32> to vector<8x384xf32>
    %713 = arith.mulf %697, %712 : vector<8x384xf32>
    %714 = arith.addf %696, %713 : vector<8x384xf32>
    %c344_i32 = arith.constant 344 : i32
    %715 = tpu.dynamic_rotate %319 by %c344_i32 dim 1 : vector<8x384xf32>, i32 -> vector<8x384xf32>
    %716 = vector.extract_strided_slice %305 {offsets = [0, 88], sizes = [8, 4], strides = [1, 1]} : vector<8x100xf32> to vector<8x4xf32>
    %717 = vector.extract_strided_slice %716 {offsets = [0, 0], sizes = [8, 1], strides = [1, 1]} : vector<8x4xf32> to vector<8x1xf32>
    %718 = vector.broadcast %717 : vector<8x1xf32> to vector<8x384xf32>
    %719 = arith.mulf %715, %718 : vector<8x384xf32>
    %720 = arith.addf %702, %719 : vector<8x384xf32>
    %721 = vector.extract_strided_slice %716 {offsets = [0, 1], sizes = [8, 1], strides = [1, 1]} : vector<8x4xf32> to vector<8x1xf32>
    %722 = vector.broadcast %721 : vector<8x1xf32> to vector<8x384xf32>
    %723 = arith.mulf %715, %722 : vector<8x384xf32>
    %724 = arith.addf %706, %723 : vector<8x384xf32>
    %725 = vector.extract_strided_slice %716 {offsets = [0, 2], sizes = [8, 1], strides = [1, 1]} : vector<8x4xf32> to vector<8x1xf32>
    %726 = vector.broadcast %725 : vector<8x1xf32> to vector<8x384xf32>
    %727 = arith.mulf %715, %726 : vector<8x384xf32>
    %728 = arith.addf %710, %727 : vector<8x384xf32>
    %729 = vector.extract_strided_slice %716 {offsets = [0, 3], sizes = [8, 1], strides = [1, 1]} : vector<8x4xf32> to vector<8x1xf32>
    %730 = vector.broadcast %729 : vector<8x1xf32> to vector<8x384xf32>
    %731 = arith.mulf %715, %730 : vector<8x384xf32>
    %732 = arith.addf %714, %731 : vector<8x384xf32>
    %c343_i32 = arith.constant 343 : i32
    %733 = tpu.dynamic_rotate %319 by %c343_i32 dim 1 : vector<8x384xf32>, i32 -> vector<8x384xf32>
    %734 = vector.extract_strided_slice %305 {offsets = [0, 92], sizes = [8, 4], strides = [1, 1]} : vector<8x100xf32> to vector<8x4xf32>
    %735 = vector.extract_strided_slice %734 {offsets = [0, 0], sizes = [8, 1], strides = [1, 1]} : vector<8x4xf32> to vector<8x1xf32>
    %736 = vector.broadcast %735 : vector<8x1xf32> to vector<8x384xf32>
    %737 = arith.mulf %733, %736 : vector<8x384xf32>
    %738 = arith.addf %720, %737 : vector<8x384xf32>
    %739 = vector.extract_strided_slice %734 {offsets = [0, 1], sizes = [8, 1], strides = [1, 1]} : vector<8x4xf32> to vector<8x1xf32>
    %740 = vector.broadcast %739 : vector<8x1xf32> to vector<8x384xf32>
    %741 = arith.mulf %733, %740 : vector<8x384xf32>
    %742 = arith.addf %724, %741 : vector<8x384xf32>
    %743 = vector.extract_strided_slice %734 {offsets = [0, 2], sizes = [8, 1], strides = [1, 1]} : vector<8x4xf32> to vector<8x1xf32>
    %744 = vector.broadcast %743 : vector<8x1xf32> to vector<8x384xf32>
    %745 = arith.mulf %733, %744 : vector<8x384xf32>
    %746 = arith.addf %728, %745 : vector<8x384xf32>
    %747 = vector.extract_strided_slice %734 {offsets = [0, 3], sizes = [8, 1], strides = [1, 1]} : vector<8x4xf32> to vector<8x1xf32>
    %748 = vector.broadcast %747 : vector<8x1xf32> to vector<8x384xf32>
    %749 = arith.mulf %733, %748 : vector<8x384xf32>
    %750 = arith.addf %732, %749 : vector<8x384xf32>
    %c342_i32 = arith.constant 342 : i32
    %751 = tpu.dynamic_rotate %319 by %c342_i32 dim 1 : vector<8x384xf32>, i32 -> vector<8x384xf32>
    %752 = vector.extract_strided_slice %305 {offsets = [0, 96], sizes = [8, 4], strides = [1, 1]} : vector<8x100xf32> to vector<8x4xf32>
    %753 = vector.extract_strided_slice %752 {offsets = [0, 0], sizes = [8, 1], strides = [1, 1]} : vector<8x4xf32> to vector<8x1xf32>
    %754 = vector.broadcast %753 : vector<8x1xf32> to vector<8x384xf32>
    %755 = arith.mulf %751, %754 : vector<8x384xf32>
    %756 = arith.addf %738, %755 : vector<8x384xf32>
    %757 = vector.extract_strided_slice %752 {offsets = [0, 1], sizes = [8, 1], strides = [1, 1]} : vector<8x4xf32> to vector<8x1xf32>
    %758 = vector.broadcast %757 : vector<8x1xf32> to vector<8x384xf32>
    %759 = arith.mulf %751, %758 : vector<8x384xf32>
    %760 = arith.addf %742, %759 : vector<8x384xf32>
    %761 = vector.extract_strided_slice %752 {offsets = [0, 2], sizes = [8, 1], strides = [1, 1]} : vector<8x4xf32> to vector<8x1xf32>
    %762 = vector.broadcast %761 : vector<8x1xf32> to vector<8x384xf32>
    %763 = arith.mulf %751, %762 : vector<8x384xf32>
    %764 = arith.addf %746, %763 : vector<8x384xf32>
    %765 = vector.extract_strided_slice %752 {offsets = [0, 3], sizes = [8, 1], strides = [1, 1]} : vector<8x4xf32> to vector<8x1xf32>
    %766 = vector.broadcast %765 : vector<8x1xf32> to vector<8x384xf32>
    %767 = arith.mulf %751, %766 : vector<8x384xf32>
    %768 = arith.addf %750, %767 : vector<8x384xf32>
    %769 = vector.extract_strided_slice %756 {offsets = [0, 0], sizes = [2, 384], strides = [1, 1]} : vector<8x384xf32> to vector<2x384xf32>
    %770 = vector.extract_strided_slice %756 {offsets = [2, 0], sizes = [2, 384], strides = [1, 1]} : vector<8x384xf32> to vector<2x384xf32>
    %771 = arith.addf %769, %770 : vector<2x384xf32>
    %772 = vector.extract_strided_slice %756 {offsets = [4, 0], sizes = [2, 384], strides = [1, 1]} : vector<8x384xf32> to vector<2x384xf32>
    %773 = arith.addf %771, %772 : vector<2x384xf32>
    %774 = vector.extract_strided_slice %756 {offsets = [6, 0], sizes = [2, 384], strides = [1, 1]} : vector<8x384xf32> to vector<2x384xf32>
    %775 = arith.addf %773, %774 : vector<2x384xf32>
    %c8 = arith.constant 8 : index
    %776 = memref.load %arg7[%c8] : memref<16xf32, #tpu.memory_space<smem>>
    %777 = vector.broadcast %776 : f32 to vector<2x384xf32>
    %778 = arith.mulf %775, %777 : vector<2x384xf32>
    %c12 = arith.constant 12 : index
    %779 = memref.load %arg7[%c12] : memref<16xf32, #tpu.memory_space<smem>>
    %780 = vector.broadcast %779 : f32 to vector<2x384xf32>
    %781 = arith.addf %778, %780 : vector<2x384xf32>
    %cst_52 = arith.constant 0.000000e+00 : f32
    %782 = vector.broadcast %cst_52 : f32 to vector<2x384xf32>
    %783 = arith.maximumf %781, %782 : vector<2x384xf32>
    %c0_53 = arith.constant 0 : index
    %784 = memref.load %arg8[%c0_53] : memref<5xf32, #tpu.memory_space<smem>>
    %785 = vector.broadcast %784 : f32 to vector<2x384xf32>
    %786 = arith.mulf %785, %783 : vector<2x384xf32>
    %787 = arith.addf %304, %786 : vector<2x384xf32>
    %788 = vector.extract_strided_slice %760 {offsets = [0, 0], sizes = [2, 384], strides = [1, 1]} : vector<8x384xf32> to vector<2x384xf32>
    %789 = vector.extract_strided_slice %760 {offsets = [2, 0], sizes = [2, 384], strides = [1, 1]} : vector<8x384xf32> to vector<2x384xf32>
    %790 = arith.addf %788, %789 : vector<2x384xf32>
    %791 = vector.extract_strided_slice %760 {offsets = [4, 0], sizes = [2, 384], strides = [1, 1]} : vector<8x384xf32> to vector<2x384xf32>
    %792 = arith.addf %790, %791 : vector<2x384xf32>
    %793 = vector.extract_strided_slice %760 {offsets = [6, 0], sizes = [2, 384], strides = [1, 1]} : vector<8x384xf32> to vector<2x384xf32>
    %794 = arith.addf %792, %793 : vector<2x384xf32>
    %c9 = arith.constant 9 : index
    %795 = memref.load %arg7[%c9] : memref<16xf32, #tpu.memory_space<smem>>
    %796 = vector.broadcast %795 : f32 to vector<2x384xf32>
    %797 = arith.mulf %794, %796 : vector<2x384xf32>
    %c13 = arith.constant 13 : index
    %798 = memref.load %arg7[%c13] : memref<16xf32, #tpu.memory_space<smem>>
    %799 = vector.broadcast %798 : f32 to vector<2x384xf32>
    %800 = arith.addf %797, %799 : vector<2x384xf32>
    %cst_54 = arith.constant 0.000000e+00 : f32
    %801 = vector.broadcast %cst_54 : f32 to vector<2x384xf32>
    %802 = arith.maximumf %800, %801 : vector<2x384xf32>
    %c1_55 = arith.constant 1 : index
    %803 = memref.load %arg8[%c1_55] : memref<5xf32, #tpu.memory_space<smem>>
    %804 = vector.broadcast %803 : f32 to vector<2x384xf32>
    %805 = arith.mulf %804, %802 : vector<2x384xf32>
    %806 = arith.addf %787, %805 : vector<2x384xf32>
    %807 = vector.extract_strided_slice %764 {offsets = [0, 0], sizes = [2, 384], strides = [1, 1]} : vector<8x384xf32> to vector<2x384xf32>
    %808 = vector.extract_strided_slice %764 {offsets = [2, 0], sizes = [2, 384], strides = [1, 1]} : vector<8x384xf32> to vector<2x384xf32>
    %809 = arith.addf %807, %808 : vector<2x384xf32>
    %810 = vector.extract_strided_slice %764 {offsets = [4, 0], sizes = [2, 384], strides = [1, 1]} : vector<8x384xf32> to vector<2x384xf32>
    %811 = arith.addf %809, %810 : vector<2x384xf32>
    %812 = vector.extract_strided_slice %764 {offsets = [6, 0], sizes = [2, 384], strides = [1, 1]} : vector<8x384xf32> to vector<2x384xf32>
    %813 = arith.addf %811, %812 : vector<2x384xf32>
    %c10 = arith.constant 10 : index
    %814 = memref.load %arg7[%c10] : memref<16xf32, #tpu.memory_space<smem>>
    %815 = vector.broadcast %814 : f32 to vector<2x384xf32>
    %816 = arith.mulf %813, %815 : vector<2x384xf32>
    %c14 = arith.constant 14 : index
    %817 = memref.load %arg7[%c14] : memref<16xf32, #tpu.memory_space<smem>>
    %818 = vector.broadcast %817 : f32 to vector<2x384xf32>
    %819 = arith.addf %816, %818 : vector<2x384xf32>
    %cst_56 = arith.constant 0.000000e+00 : f32
    %820 = vector.broadcast %cst_56 : f32 to vector<2x384xf32>
    %821 = arith.maximumf %819, %820 : vector<2x384xf32>
    %c2_57 = arith.constant 2 : index
    %822 = memref.load %arg8[%c2_57] : memref<5xf32, #tpu.memory_space<smem>>
    %823 = vector.broadcast %822 : f32 to vector<2x384xf32>
    %824 = arith.mulf %823, %821 : vector<2x384xf32>
    %825 = arith.addf %806, %824 : vector<2x384xf32>
    %826 = vector.extract_strided_slice %768 {offsets = [0, 0], sizes = [2, 384], strides = [1, 1]} : vector<8x384xf32> to vector<2x384xf32>
    %827 = vector.extract_strided_slice %768 {offsets = [2, 0], sizes = [2, 384], strides = [1, 1]} : vector<8x384xf32> to vector<2x384xf32>
    %828 = arith.addf %826, %827 : vector<2x384xf32>
    %829 = vector.extract_strided_slice %768 {offsets = [4, 0], sizes = [2, 384], strides = [1, 1]} : vector<8x384xf32> to vector<2x384xf32>
    %830 = arith.addf %828, %829 : vector<2x384xf32>
    %831 = vector.extract_strided_slice %768 {offsets = [6, 0], sizes = [2, 384], strides = [1, 1]} : vector<8x384xf32> to vector<2x384xf32>
    %832 = arith.addf %830, %831 : vector<2x384xf32>
    %c11 = arith.constant 11 : index
    %833 = memref.load %arg7[%c11] : memref<16xf32, #tpu.memory_space<smem>>
    %834 = vector.broadcast %833 : f32 to vector<2x384xf32>
    %835 = arith.mulf %832, %834 : vector<2x384xf32>
    %c15 = arith.constant 15 : index
    %836 = memref.load %arg7[%c15] : memref<16xf32, #tpu.memory_space<smem>>
    %837 = vector.broadcast %836 : f32 to vector<2x384xf32>
    %838 = arith.addf %835, %837 : vector<2x384xf32>
    %cst_58 = arith.constant 0.000000e+00 : f32
    %839 = vector.broadcast %cst_58 : f32 to vector<2x384xf32>
    %840 = arith.maximumf %838, %839 : vector<2x384xf32>
    %c3_59 = arith.constant 3 : index
    %841 = memref.load %arg8[%c3_59] : memref<5xf32, #tpu.memory_space<smem>>
    %842 = vector.broadcast %841 : f32 to vector<2x384xf32>
    %843 = arith.mulf %842, %840 : vector<2x384xf32>
    %844 = arith.addf %825, %843 : vector<2x384xf32>
    %c4_60 = arith.constant 4 : index
    %845 = memref.load %arg8[%c4_60] : memref<5xf32, #tpu.memory_space<smem>>
    %846 = vector.broadcast %845 : f32 to vector<2x384xf32>
    %847 = arith.addf %844, %846 : vector<2x384xf32>
    %cst_61 = arith.constant 0.000000e+00 : f32
    %848 = vector.broadcast %cst_61 : f32 to vector<2x384xf32>
    %849 = arith.maximumf %847, %848 : vector<2x384xf32>
    %c0_62 = arith.constant 0 : index
    %c0_63 = arith.constant 0 : index
    %850 = vector.load %arg9[%c0_62, %c0_63] : memref<2x384xf32, #tpu.memory_space<vmem>>, vector<2x384xf32>
    tpu.vector_store %arg9[%c0_62, %c0_63], %849 {strides = array<i32>} : memref<2x384xf32, #tpu.memory_space<vmem>>, vector<2x384xf32>,
    return
  }
  func.func @transform_0(%arg0: i32) -> (i32, i32) {
    %c0_i32 = arith.constant 0 : i32
    %c0_i32_0 = arith.constant 0 : i32
    return %arg0, %c0_i32 : i32, i32
  }
  func.func @transform_1(%arg0: i32) -> (i32, i32) {
    %c0_i32 = arith.constant 0 : i32
    %c0_i32_0 = arith.constant 0 : i32
    %c0_i32_1 = arith.constant 0 : i32
    return %c0_i32, %c0_i32_0 : i32, i32
  }
  func.func @transform_2(%arg0: i32) -> (i32, i32) {
    %c0_i32 = arith.constant 0 : i32
    %c0_i32_0 = arith.constant 0 : i32
    %c0_i32_1 = arith.constant 0 : i32
    return %c0_i32, %c0_i32_0 : i32, i32
  }
  func.func @transform_3(%arg0: i32) -> (i32, i32) {
    %c0_i32 = arith.constant 0 : i32
    %c0_i32_0 = arith.constant 0 : i32
    %c0_i32_1 = arith.constant 0 : i32
    return %c0_i32, %c0_i32_0 : i32, i32
  }
  func.func @transform_4(%arg0: i32) -> (i32, i32) {
    %c0_i32 = arith.constant 0 : i32
    %c0_i32_0 = arith.constant 0 : i32
    %c0_i32_1 = arith.constant 0 : i32
    return %c0_i32, %c0_i32_0 : i32, i32
  }
  func.func @transform_5(%arg0: i32) -> i32 {
    %c0_i32 = arith.constant 0 : i32
    %c0_i32_0 = arith.constant 0 : i32
    return %c0_i32 : i32
  }
  func.func @transform_6(%arg0: i32) -> i32 {
    %c0_i32 = arith.constant 0 : i32
    %c0_i32_0 = arith.constant 0 : i32
    return %c0_i32 : i32
  }
  func.func @transform_7(%arg0: i32) -> i32 {
    %c0_i32 = arith.constant 0 : i32
    %c0_i32_0 = arith.constant 0 : i32
    return %c0_i32 : i32
  }
  func.func @transform_8(%arg0: i32) -> (i32, i32) {
    %c0_i32 = arith.constant 0 : i32
    %c0_i32_0 = arith.constant 0 : i32
    return %arg0, %c0_i32 : i32, i32
  }
}

</mosaic_0001>

<bundles_post_ra>
// kernel: tpu_custom_call.1
= control target key start
LH: loop header
LB: loop body
LE: loop exit
PB: predicated region body
PF: predicated region fallthrough
CT: control target
= control target key end

     0   :  { %13 = vsyncpa [#allocation3], 0  ;;  %s4967_s0 = inlined_call_operand.hbm [shape: f32[8,384], index: 0, kind: input, shape index: {}]   ;;  %s4968_s1 = inlined_call_operand.vmem [shape: f32[1,384], index: 1, kind: input, shape index: {}]   ;;  %s4969_s2 = inlined_call_operand.vmem [shape: f32[8,4], index: 2, kind: input, shape index: {}]   ;;  %s4970_s3 = inlined_call_operand.vmem [shape: f32[8,36], index: 3, kind: input, shape index: {}]   ;;  %s4971_s4 = inlined_call_operand.hbm [shape: f32[8,100], index: 4, kind: input, shape index: {}]   ;;  %s4972_s5 = inlined_call_operand.vmem [shape: f32[8], index: 5, kind: input, shape index: {}]   ;;  %s4973_s6 = inlined_call_operand.vmem [shape: f32[16], index: 6, kind: input, shape index: {}]   ;;  %s4974_s7 = inlined_call_operand.vmem [shape: f32[5], index: 7, kind: input, shape index: {}]   ;;  %s4975_s8 = inlined_call_operand.hbm [shape: f32[2,384], index: 8, kind: output, shape index: {}]  }
   0x1   :  { %14 = vsyncpa [#allocation7], 0 }
   0x2   :  { %15 = vsyncpa [#allocation5], 0 }
   0x3   :  { %16 = vsyncpa [#allocation10], 0  ;;  %s60_s29 = sshll.u32 %s4973_s6, 4  ;;  %s61_s29 = int_to_ptr.vmem [resolvable:$true] %s60_s29 }
   0x4   :  { %17 = vsyncpa [#allocation4], 0  ;;  %s23_s10 = sshll.u32 %s4967_s0, 4  ;;  %s2756_s11 = smov [#allocation9]   ;;  %s24_s10 = int_to_ptr.hbm [resolvable:$true] %s23_s10 }
   0x5   :  { %63 = dma.vmem_to_smem %s61_s29, 16, %s2756_s11, [#allocation10]  }
   0x6   :  { %s2757_s12 = smov [#allocation2]   ;;  %s40_s16 = sshll.u32 %s4971_s4, 4  ;;  %s41_s16 = int_to_ptr.hbm [resolvable:$true] %s40_s16 }
   0x7   :  { %s25_s13 = sshll.u32 %s2757_s12, 4  ;;  %s51_s18 = sshll.u32 %s4972_s5, 4  ;;  %s26_s13 = int_to_ptr.vmem [resolvable:$true] %s25_s13  ;;  %s52_s18 = int_to_ptr.vmem [resolvable:$true] %s51_s18 }
   0x8   :  { %28 = dma.hbm_to_vmem [thread:$0]  %s24_s10, 384, %s26_s13, [#allocation3]  }
   0x9   :  { %s2758_s19 = smov [#allocation6]   ;;  %s2759_s0 = smov [#allocation8]  }
   0xa   :  { %s42_s20 = sshll.u32 %s2758_s19, 4  ;;  %s69_s23 = sshll.u32 %s4974_s7, 4  ;;  %s43_s20 = int_to_ptr.vmem [resolvable:$true] %s42_s20  ;;  %s70_s23 = int_to_ptr.vmem [resolvable:$true] %s69_s23 }
   0xb   :  { %45 = dma.hbm_to_vmem [thread:$0]  %s41_s16, 128, %s43_s20, [#allocation7]  }
   0xc   :  { %54 = dma.vmem_to_smem %s52_s18, 16, %s2759_s0, [#allocation5]  }
   0xd   :  { %s2760_s4 = smov [#allocation11]  }
   0xe   :  { %72 = dma.vmem_to_smem %s70_s23, 16, %s2760_s4, [#allocation10]  }
   0xf   :  { %2746 = dma.done.wait [#allocation3], 384  }
  0x10   :  { %2747 = vsyncadd [#allocation3], 4294966912 }
  0x11   :  { %2748 = dma.done.wait [#allocation7], 128  }
  0x12   :  { %2749 = vsyncadd [#allocation7], 4294967168 }
  0x13   :  { %2750 = dma.done.wait [#allocation5], 16  }
  0x14   :  { %2751 = vsyncadd [#allocation5], 4294967280 }
  0x15   :  { %2752 = dma.done.wait [#allocation10], 32  }
  0x16   :  { %2753 = vsyncadd [#allocation10], 4294967264 }
  0x17   :  { %93 = sfence }
  0x18   :  { %v2949_v0 = vld [vmem:[%s4970_s3] sm:$0xff]  ;;  %v2761_v2 = vmov 1   ;;  %v2762_v3 = vmov 0   ;;  %v5007_v4 = vmov 6   ;;  %v2764_v5 = vmov 2   ;;  %v3007_v27 = vld [vmem:[#allocation2 + $0x10] sm:$0xff] }
  0x19   :  { %v2954_v1 = vld [vmem:[%s4969_s2] sm:$0xff]  ;;  %2499 = vset.pattern.permute.xlu1 %v2761_v2  ;;  %2498 = vset.pattern.permute.xlu2 %v2762_v3  ;;  %v5004_v6 = vmov 8   ;;  %v5006_v7 = vmov 4   ;;  %v5008_v8 = vmov 3   ;;  %v4999_v9 = vmov 11   ;;  %5050 = vst [vmem:[#allocation19_spill] sm:$0xff] %v3007_v27 }
  0x1a   :  { %2496 = vset.pattern.permute.xlu0 %v2762_v3  ;;  %236 = vperm.xlu1 %2499, %v2949_v0   ;;  %v5003_v10 = vmov 7   ;;  %v5005_v11 = vmov 5   ;;  %v5001_v12 = vmov 13   ;;  %v5000_v13 = vmov 9   ;;  %v3005_v26 = vld [vmem:[#allocation2] sm:$0xff]  ;;  %v3016_v31 = vld [vmem:[#allocation2 + $0x8] sm:$0xff] }
  0x1b   :  { %226 = vperm.xlu2 %2498, %v2949_v0   ;;  %186 = vperm.xlu0 %2496, %v2954_v1   ;;  %v5002_v14 = vmov 10   ;;  %v4993_v15 = vmov 15   ;;  %v4996_v16 = vmov 14   ;;  %v4997_v17 = vmov 12   ;;  %5049 = vst [vmem:[#allocation18_spill] sm:$0xff] %v3005_v26  ;;  %s2785_s7 = smov 21  }
  0x1c   :  { %v4998_v18 = vmov 18   ;;  %v4991_v19 = vmov 16   ;;  %v4989_v20 = vmov 17   ;;  %v4988_v21 = vmov 19   ;;  %v3012_v28 = vld [vmem:[%s4968_s1] sm:$0x7] }
  0x1d   :  { %v4995_v22 = vmov 20   ;;  %v4985_v23 = vmov 21   ;;  %v4986_v25 = vmov 22   ;;  %5051 = vst [vmem:[#allocation20_spill] sm:$0xff] %v3012_v28  ;;  %v5011_v35 = vperm.slane %v3012_v28, 0  ;;  %s2784_s1 = smov 19  }
  0x1e   :  { %5052 = vst [vmem:[#allocation21_spill] sm:$0xff] %v3016_v31  ;;  %v5009_v36 = vperm.slane %v3012_v28, 2  ;;  %v5010_v45 = vperm.slane %v3012_v28, 1  ;;  %s2786_s27 = smov 127   ;;  %s2787_s28 = smov 20   ;;  %v4983_v48 = vmov 23  }
  0x1f   :  { %v4982_v50 = vmov 24   ;;  %s2790_s29 = smov 1   ;;  %v4981_v51 = vmov 26   ;;  %s2792_s30 = smov 108   ;;  %v4977_v53 = vmov 29   ;;  %v4976_v57 = vmov 34  }
  0x20   :  { %s2794_s9 = smov 109   ;;  %s2795_s10 = smov 107   ;;  %v4992_v62 = vmov 25  }
  0x21   :  { %s99_s11 = sld [smem:[#allocation8]]  ;;  %s2805_s2 = smov 42  }
  0x22   :  { %2504 = vset.pattern.permute.xlu1 %v5007_v4  ;;  %s2340_s12 = sld [smem:[#allocation8 + $0x4]]  ;;  %s2806_s3 = smov 41  }
  0x23   :  { %2500 = vset.pattern.permute.xlu2 %v2764_v5  ;;  %2497 = vset.pattern.permute.xlu0 %v2761_v2  ;;  %s3277_s13 = sld [smem:[#allocation11]] }
  0x24   :  { %296 = vperm.xlu1 %2504, %v2949_v0   ;;  %246 = vperm.xlu2 %2500, %v2949_v0   ;;  %s3285_s14 = sld [smem:[#allocation8 + $0x1]] }
  0x25   :  { %193 = vperm.xlu0 %2497, %v2954_v1   ;;  %s3290_s15 = sld [smem:[#allocation8 + $0x5]] }
  0x26   :  { %s3301_s16 = sld [smem:[#allocation11 + $0x1]] }
  0x27   :  { %s3307_s17 = sld [smem:[#allocation8 + $0x2]] }
  0x28   :  { %s3313_s6 = sld [smem:[#allocation8 + $0x6]] }
  0x29   :  { %s3336_s18 = sld [smem:[#allocation11 + $0x2]] }
  0x2a   :  { %s3351_s19 = sld [smem:[#allocation8 + $0x3]] }
  0x2b   :  { %s3362_s20 = sld [smem:[#allocation8 + $0x7]] }
  0x2c   :  { %2506 = vset.pattern.permute.xlu1 %v5004_v6  ;;  %2502 = vset.pattern.permute.xlu2 %v5006_v7  ;;  %s3373_s0 = sld [smem:[#allocation11 + $0x3]] }
  0x2d   :  { %2501 = vset.pattern.permute.xlu0 %v5008_v8  ;;  %326 = vperm.xlu1 %2506, %v2949_v0   ;;  %s3573_s21 = sld [smem:[#allocation9 + $0x1]] }
  0x2e   :  { %276 = vperm.xlu2 %2502, %v2949_v0   ;;  %256 = vperm.xlu0 %2501, %v2949_v0   ;;  %s3578_s22 = sld [smem:[#allocation9 + $0x5]] }
  0x2f   :  { %s3592_s23 = sld [smem:[#allocation9 + $0x2]] }
  0x30   :  { %s3603_s4 = sld [smem:[#allocation9 + $0x6]] }
  0x31   :  { %s3612_s5 = sld [smem:[#allocation9]] }
  0x32   :  { %s3626_s24 = sld [smem:[#allocation9 + $0x4]] }
  0x33   :  { %s3644_s25 = sld [smem:[#allocation9 + $0x3]] }
  0x34   :  { %s3652_s26 = sld [smem:[#allocation9 + $0x7]] }
  0x35   :  { %2509 = vset.pattern.permute.xlu1 %v4999_v9  ;;  %v3201_v9 = vstv %s99_s11  ;;  %s2807_s11 = smov 40  }
  0x36   :  { %2505 = vset.pattern.permute.xlu2 %v5003_v10  ;;  %2503 = vset.pattern.permute.xlu0 %v5005_v11  ;;  %5064 = vst [vmem:[#allocation33_spill] sm:$0xff] %v3201_v9 }
  0x37   :  { %356 = vperm.xlu1 %2509, %v2949_v0   ;;  %306 = vperm.xlu2 %2505, %v2949_v0  }
  0x38   :  { %286 = vperm.xlu0 %2503, %v2949_v0  }
  0x3f   :  { %2511 = vset.pattern.permute.xlu1 %v5001_v12  ;;  %2507 = vset.pattern.permute.xlu2 %v5000_v13 }
  0x40   :  { %2508 = vset.pattern.permute.xlu0 %v5002_v14  ;;  %386 = vperm.xlu1 %2511, %v2949_v0  }
  0x41   :  { %336 = vperm.xlu2 %2507, %v2949_v0   ;;  %346 = vperm.xlu0 %2508, %v2949_v0  }
  0x48   :  { %2513 = vset.pattern.permute.xlu1 %v4993_v15 }
  0x49   :  { %2512 = vset.pattern.permute.xlu2 %v4996_v16  ;;  %2510 = vset.pattern.permute.xlu0 %v4997_v17 }
  0x4a   :  { %406 = vperm.xlu1 %2513, %v2949_v0   ;;  %396 = vperm.xlu2 %2512, %v2949_v0  }
  0x4b   :  { %376 = vperm.xlu0 %2510, %v2949_v0  }
  0x52   :  { %2516 = vset.pattern.permute.xlu1 %v4998_v18  ;;  %2514 = vset.pattern.permute.xlu2 %v4991_v19 }
  0x53   :  { %2515 = vset.pattern.permute.xlu0 %v4989_v20  ;;  %436 = vperm.xlu1 %2516, %v2949_v0  }
  0x54   :  { %416 = vperm.xlu2 %2514, %v2949_v0   ;;  %426 = vperm.xlu0 %2515, %v2949_v0  }
  0x5b   :  { %2518 = vset.pattern.permute.xlu1 %v4995_v22 }
  0x5c   :  { %2517 = vset.pattern.permute.xlu2 %v4988_v21  ;;  %466 = vperm.xlu1 %2518, %v2949_v0  }
  0x5d   :  { %446 = vperm.xlu2 %2517, %v2949_v0   ;;  %2520 = vset.pattern.permute.xlu0 %v4986_v25  ;;  %v218_v25 = vlaneseq }
  0x5f   :  { %v3167_v19 = vand.u32 127, %v218_v25 }
  0x61   :  { %vm461_vm0 = vcmp.lt.s32.totalorder %v3167_v19, 127  ;;  %vm321_vm1 = vcmp.lt.s32.totalorder %v3167_v19, 19  ;;  %vm271_vm2 = vcmp.lt.s32.totalorder %v3167_v19, 20  ;;  %vm220_vm3 = vcmp.lt.s32.totalorder %v3167_v19, 21 }
  0x62   :  { %vm371_vm4 = vcmp.lt.s32.totalorder %v3167_v19, 1  ;;  %vm511_vm5 = vcmp.lt.s32.totalorder %v3167_v19, 109  ;;  %vm561_vm6 = vcmp.lt.s32.totalorder %v3167_v19, 108  ;;  %vm611_vm7 = vcmp.lt.s32.totalorder %v3167_v19, 107 }
  0x63   :  { %vm878_vm8 = vcmp.lt.s32.totalorder %v3167_v19, 42  ;;  %vm929_vm9 = vcmp.lt.s32.totalorder %v3167_v19, 41  ;;  %vm979_vm10 = vcmp.lt.s32.totalorder %v3167_v19, 40  ;;  %vm1029_vm11 = vcmp.lt.s32.totalorder %v3167_v19, 39 }
  0x64   :  { %2521 = vset.pattern.permute.xlu1 %v4983_v48  ;;  %vm1079_vm12 = vcmp.lt.s32.totalorder %v3167_v19, 38  ;;  %vm1129_vm13 = vcmp.lt.s32.totalorder %v3167_v19, 22  ;;  %vm1326_vm14 = vcmp.lt.s32.totalorder %v3167_v19, 18  ;;  %vm1376_vm15 = vcmp.lt.s32.totalorder %v3167_v19, 2 }
  0x65   :  { %2519 = vset.pattern.permute.xlu2 %v4985_v23 }
  0x66   :  { %476 = vperm.xlu2 %2519, %v2949_v0  }
  0x6e   :  { %2524 = vset.pattern.permute.xlu2 %v4981_v51 }
  0x75   :  { %v3035_v43 = vpop.permute.xlu2 %226 }
  0x7e   :  { %v3048_v47 = vpop.permute.xlu2 %246 }
  0x7f   :  { %5055 = vst [vmem:[#allocation24_spill] sm:$0xff] %v3048_v47 }
  0x88   :  { %v3056_v49 = vpop.permute.xlu2 %276 }
  0x8c   :  { %v3074_v54 = vpop.permute.xlu1 %236 }
  0x8d   :  { %v187_v24 = vpop.permute.xlu0 %186  ;;  %5056 = vst [vmem:[#allocation25_spill] sm:$0xff] %v3074_v54 }
  0x8e   :  { %v189_v29 = vmul.f32 %v187_v24, %v3005_v26  ;;  %v191_v30 = vmul.f32 %v187_v24, %v3007_v27  ;;  %v190_v37 = vmul.f32 %v187_v24, %v3016_v31 }
  0x91   :  { %v3065_v52 = vpop.permute.xlu2 %306 }
  0x96   :  { %v3083_v56 = vpop.permute.xlu1 %296 }
  0x97   :  { %v194_v32 = vpop.permute.xlu0 %193  ;;  %5057 = vst [vmem:[#allocation26_spill] sm:$0xff] %v3083_v56 }
  0x98   :  { %v196_v33 = vadd.f32 %v194_v32, %v189_v29  ;;  %v198_v34 = vadd.f32 %v194_v32, %v191_v30  ;;  %v197_v40 = vadd.f32 %v194_v32, %v190_v37  ;;  %v4979_v29 = vmov 28  }
  0x9a   :  { %v199_v38 = vmax.f32 %v196_v33, 0.0  ;;  %v201_v39 = vmax.f32 %v198_v34, 0.0  ;;  %v200_v44 = vmax.f32 %v197_v40, 0.0  ;;  %v4980_v33 = vmov 27  }
  0x9b   :  { %v3081_v55 = vpop.permute.xlu2 %336  ;;  %v4987_v40 = vmov 30  }
  0x9c   :  { %v3023_v41 = vmul.f32 %v5011_v35, %v199_v38  ;;  %v3027_v42 = vmul.f32 %v5009_v36, %v201_v39  ;;  %v3040_v46 = vmul.f32 %v5010_v45, %v200_v44  ;;  %v4978_v38 = vmov 31  }
  0x9e   :  { %5053 = vst [vmem:[#allocation22_spill] sm:$0xff] %v3023_v41  ;;  %319 = vrot.lane.b32.xlu0 %v3027_v42, %s2784_s1  ;;  %216 = vrot.lane.b32.xlu2 %v3027_v42, %s2785_s7 }
  0x9f   :  { %212 = vrot.lane.b32.xlu1 %v3023_v41, %s2785_s7  ;;  %5054 = vst [vmem:[#allocation23_spill] sm:$0xff] %v3040_v46  ;;  %v3096_v59 = vpop.permute.xlu1 %326 }
  0xa0   :  { %v3106_v61 = vpop.permute.xlu0 %256 }
  0xa4   :  { %v3092_v58 = vpop.permute.xlu2 %396 }
  0xa5   :  { %5058 = vst [vmem:[#allocation27_spill] sm:$0xff] %v3092_v58 }
  0xa6   :  { %459 = vrot.lane.b32.xlu0 %v3027_v42, %s2786_s27  ;;  %267 = vrot.lane.b32.xlu2 %v3040_v46, %s2787_s28 }
  0xa7   :  { %214 = vrot.lane.b32.xlu1 %v3040_v46, %s2785_s7 }
  0xa9   :  { %v3109_v63 = vpop.permute.xlu1 %356 }
  0xaa   :  { %v3117_v30 = vpop.permute.xlu0 %286 }
  0xae   :  { %486 = vperm.xlu0 %2520, %v2949_v0   ;;  %317 = vrot.lane.b32.xlu2 %v3040_v46, %s2784_s1  ;;  %v3100_v60 = vpop.permute.xlu2 %416 }
  0xaf   :  { %265 = vrot.lane.b32.xlu1 %v3023_v41, %s2787_s28  ;;  %5059 = vst [vmem:[#allocation28_spill] sm:$0xff] %v3100_v60  ;;  %v3207_v13 = vmul.f32 %v3100_v60, %v3027_v42 }
  0xb3   :  { %v3126_v34 = vpop.permute.xlu0 %346 }
  0xb6   :  { %2522 = vset.pattern.permute.xlu0 %v4982_v50  ;;  %365 = vrot.lane.b32.xlu2 %v3023_v41, %s2790_s29  ;;  %v4990_v50 = vmov 32  }
  0xb7   :  { %269 = vrot.lane.b32.xlu1 %v3027_v42, %s2787_s28  ;;  %516 = vperm.xlu0 %2522, %v2949_v0   ;;  %v3111_v24 = vpop.permute.xlu2 %446 }
  0xbd   :  { %v3135_v44 = vpop.permute.xlu0 %376 }
  0xbe   :  { %369 = vrot.lane.b32.xlu2 %v3027_v42, %s2790_s29 }
  0xbf   :  { %315 = vrot.lane.b32.xlu1 %v3023_v41, %s2784_s1  ;;  %557 = vrot.lane.b32.xlu0 %v3040_v46, %s2792_s30 }
  0xc0   :  { %2527 = vset.pattern.permute.xlu0 %v4977_v53  ;;  %v3122_v32 = vpop.permute.xlu2 %476 }
  0xc6   :  { %457 = vrot.lane.b32.xlu2 %v3040_v46, %s2786_s27 }
  0xc7   :  { %367 = vrot.lane.b32.xlu1 %v3040_v46, %s2790_s29  ;;  %576 = vperm.xlu0 %2527, %v2949_v0  }
  0xce   :  { %505 = vrot.lane.b32.xlu2 %v3023_v41, %s2794_s9 }
  0xcf   :  { %455 = vrot.lane.b32.xlu1 %v3023_v41, %s2786_s27  ;;  %609 = vrot.lane.b32.xlu0 %v3027_v42, %s2795_s10 }
  0xd0   :  { %2532 = vset.pattern.permute.xlu0 %v4976_v57 }
  0xd6   :  { %509 = vrot.lane.b32.xlu2 %v3027_v42, %s2794_s9 }
  0xd7   :  { %496 = vperm.xlu1 %2521, %v2949_v0   ;;  %636 = vperm.xlu0 %2532, %v2949_v0  }
  0xde   :  { %536 = vperm.xlu2 %2524, %v2949_v0  }
  0xdf   :  { %507 = vrot.lane.b32.xlu1 %v3040_v46, %s2794_s9  ;;  %2537 = vset.pattern.permute.xlu0 %v2761_v2  ;;  %v3119_v2 = vpop.permute.xlu1 %386 }
  0xe0   :  { %2523 = vset.pattern.permute.xlu1 %v4992_v62 }
  0xe6   :  { %555 = vrot.lane.b32.xlu2 %v3023_v41, %s2792_s30 }
  0xe7   :  { %526 = vperm.xlu1 %2523, %v2949_v0   ;;  %2526 = vset.pattern.permute.xlu2 %v4979_v29  ;;  %v3128_v37 = vpop.permute.xlu1 %406 }
  0xee   :  { %566 = vperm.xlu2 %2526, %v2949_v0  }
  0xef   :  { %2525 = vset.pattern.permute.xlu1 %v4980_v33  ;;  %v3137_v57 = vpop.permute.xlu1 %436  ;;  %v3148_v33 = vpop.permute.xlu0 %426 }
  0xf0   :  { %546 = vperm.xlu1 %2525, %v2949_v0   ;;  %5060 = vst [vmem:[#allocation29_spill] sm:$0xff] %v3137_v57  ;;  %v3215_v14 = vmul.f32 %v3137_v57, %v3023_v41  ;;  %v3219_v10 = vmul.f32 %v3137_v57, %v3027_v42  ;;  %v3240_v36 = vmul.f32 %v3148_v33, %v3027_v42 }
  0xf1   :  { %5061 = vst [vmem:[#allocation30_spill] sm:$0xff] %v3148_v33 }
  0xf6   :  { %2529 = vset.pattern.permute.xlu2 %v4978_v38  ;;  %v4984_v38 = vmov 33  }
  0xf7   :  { %596 = vperm.xlu2 %2529, %v2949_v0   ;;  %v3146_v29 = vpop.permute.xlu1 %466 }
  0xf8   :  { %559 = vrot.lane.b32.xlu1 %v3027_v42, %s2792_s30  ;;  %v217_v39 = vpop.permute.xlu2 %216 }
  0xf9   :  { %2528 = vset.pattern.permute.xlu1 %v4987_v40  ;;  %v4994_v40 = vmov 35  }
  0xff   :  { %607 = vrot.lane.b32.xlu2 %v3040_v46, %s2795_s10 }
 0x100   :  { %586 = vperm.xlu1 %2528, %v2949_v0   ;;  %v3142_v53 = vpop.permute.xlu2 %267  ;;  %2531 = vset.pattern.permute.xlu2 %v4984_v38 }
 0x107   :  { %626 = vperm.xlu2 %2531, %v2949_v0  }
 0x108   :  { %605 = vrot.lane.b32.xlu1 %v3023_v41, %s2795_s10  ;;  %v3152_v51 = vpop.permute.xlu2 %317 }
 0x109   :  { %2530 = vset.pattern.permute.xlu1 %v4990_v50 }
 0x10f   :  { %2534 = vset.pattern.permute.xlu2 %v2764_v5 }
 0x110   :  { %616 = vperm.xlu1 %2530, %v2949_v0   ;;  %v320_v48 = vpop.permute.xlu0 %319  ;;  %v3157_v38 = vpop.permute.xlu2 %365  ;;  %853 = vperm.xlu2 %2534, %v2954_v1  }
 0x111   :  { %v3160_v23 = vpop.permute.xlu1 %212  ;;  %v322_v6 = vsel %vm321_vm1, %v3152_v51, %v320_v48 }
 0x112   :  { %v331_v35 = vmul.f32 %v3096_v59, %v322_v6  ;;  %v341_v41 = vmul.f32 %v3081_v55, %v322_v6  ;;  %v351_v60 = vmul.f32 %v3126_v34, %v322_v6 }
 0x118   :  { %2533 = vset.pattern.permute.xlu1 %v4994_v40  ;;  %v3163_v21 = vpop.permute.xlu0 %459  ;;  %v370_v20 = vpop.permute.xlu2 %369  ;;  %2536 = vset.pattern.permute.xlu2 %v2762_v3 }
 0x119   :  { %646 = vperm.xlu1 %2533, %v2949_v0   ;;  %v215_v50 = vpop.permute.xlu1 %214 }
 0x11a   :  { %v221_v11 = vsel %vm220_vm3, %v215_v50, %v217_v39 }
 0x11b   :  { %v231_v28 = vmul.f32 %v3035_v43, %v221_v11  ;;  %v251_v33 = vmul.f32 %v3048_v47, %v221_v11  ;;  %v261_v31 = vmul.f32 %v3106_v61, %v221_v11 }
 0x120   :  { %v3170_v62 = vpop.permute.xlu2 %457  ;;  %v3172_v15 = vpop.permute.xlu0 %486 }
 0x121   :  { %v3178_v40 = vsel %vm461_vm0, %v3170_v62, %v3163_v21  ;;  %2535 = vset.pattern.permute.xlu1 %v5008_v8  ;;  %v266_v3 = vpop.permute.xlu1 %265 }
 0x122   :  { %5062 = vst [vmem:[#allocation31_spill] sm:$0xff] %v3178_v40  ;;  %v3183_v0 = vmul.f32 %v3172_v15, %v3178_v40  ;;  %860 = vperm.xlu1 %2535, %v2954_v1  }
 0x124   :  { %5063 = vst [vmem:[#allocation32_spill] sm:$0xff] %v3183_v0  ;;  %v241_v0 = vmul.f32 %v3074_v54, %v221_v11  ;;  %v3282_v11 = vsel %vm271_vm2, %v266_v3, %v3142_v53 }
 0x128   :  { %v3186_v25 = vpop.permute.xlu2 %505 }
 0x129   :  { %v270_v22 = vpop.permute.xlu1 %269  ;;  %v3189_v16 = vpop.permute.xlu0 %516 }
 0x12a   :  { %2538 = vset.pattern.permute.xlu1 %v2764_v5  ;;  %v272_v1 = vsel %vm271_vm2, %v3142_v53, %v270_v22  ;;  %v3203_v5 = vstv %s2340_s12  ;;  %v3211_v12 = vsel %vm271_vm2, %v270_v22, %v266_v3  ;;  %v3229_v22 = vsel %vm220_vm3, %v217_v39, %v3160_v23  ;;  %s2808_s12 = smov 39  }
 0x12b   :  { %5065 = vst [vmem:[#allocation34_spill] sm:$0xff] %v3203_v5  ;;  %v281_v7 = vmul.f32 %v3056_v49, %v272_v1  ;;  %v291_v4 = vmul.f32 %v3117_v30, %v272_v1  ;;  %v299_v45 = vmul.f32 %v3083_v56, %v3211_v12  ;;  %v301_v39 = vmul.f32 %v3083_v56, %v272_v1 }
 0x12c   :  { %v249_v57 = vmul.f32 %v3048_v47, %v3229_v22  ;;  %v311_v40 = vmul.f32 %v3065_v52, %v272_v1  ;;  %v3268_v1 = vsel %vm371_vm4, %v370_v20, %v3157_v38 }
 0x12d   :  { %v284_v46 = vadd.f32 %v281_v7, %v231_v28  ;;  %v294_v27 = vadd.f32 %v291_v4, %v241_v0  ;;  %v304_v26 = vadd.f32 %v301_v39, %v251_v33  ;;  %v399_v0 = vmul.f32 %v3092_v58, %v3268_v1 }
 0x12e   :  { %v302_v9 = vadd.f32 %v299_v45, %v249_v57  ;;  %v314_v28 = vadd.f32 %v311_v40, %v261_v31 }
 0x12f   :  { %v334_v57 = vadd.f32 %v331_v35, %v284_v46  ;;  %v344_v33 = vadd.f32 %v341_v41, %v294_v27  ;;  %v354_v31 = vadd.f32 %v351_v60, %v304_v26  ;;  %v280_v27 = vmul.f32 %v3056_v49, %v3282_v11 }
 0x130   :  { %v3191_v17 = vpop.permute.xlu2 %509  ;;  %v279_v46 = vmul.f32 %v3056_v49, %v3211_v12 }
 0x131   :  { %v3195_v18 = vpop.permute.xlu1 %315 }
 0x132   :  { %v3236_v8 = vsel %vm321_vm1, %v320_v48, %v3195_v18  ;;  %v3250_v48 = vpop.permute.xlu0 %557  ;;  %v3321_v40 = vsel %vm321_vm1, %v3195_v18, %v3152_v51 }
 0x133   :  { %5066 = vst [vmem:[#allocation35_spill] sm:$0xff] %v3250_v48  ;;  %v349_v56 = vmul.f32 %v3126_v34, %v3236_v8 }
 0x135   :  { %v352_v45 = vadd.f32 %v349_v56, %v302_v9  ;;  %v3298_v9 = vsel %vm511_vm5, %v3191_v17, %v3186_v25 }
 0x136   :  { %5068 = vst [vmem:[#allocation37_spill] sm:$0xff] %v3298_v9 }
 0x137   :  { %v402_v53 = vadd.f32 %v399_v0, %v352_v45 }
 0x138   :  { %v3258_v5 = vpop.permute.xlu2 %536 }
 0x139   :  { %5067 = vst [vmem:[#allocation36_spill] sm:$0xff] %v3258_v5  ;;  %v368_v54 = vpop.permute.xlu1 %367  ;;  %v3273_v5 = vsel %vm220_vm3, %v3160_v23, %v215_v50  ;;  %v361_v23 = vmul.f32 %v3109_v63, %v322_v6  ;;  %v229_v50 = vmul.f32 %v3035_v43, %v3229_v22 }
 0x13a   :  { %v372_v47 = vsel %vm371_vm4, %v368_v54, %v370_v20  ;;  %v230_v6 = vmul.f32 %v3035_v43, %v3273_v5  ;;  %v521_v43 = vmul.f32 %v3189_v16, %v3298_v9  ;;  %v3326_v49 = vsel %vm371_vm4, %v3157_v38, %v368_v54  ;;  %v3328_v3 = vpop.permute.xlu0 %576  ;;  %v5088_v9 = vld [vmem:[#allocation34_spill] sm:$0xff] }
 0x13b   :  { %v381_v4 = vmul.f32 %v3135_v44, %v372_v47  ;;  %v391_v7 = vmul.f32 %v3119_v2, %v372_v47  ;;  %v401_v20 = vmul.f32 %v3092_v58, %v372_v47  ;;  %v364_v56 = vadd.f32 %v361_v23, %v314_v28  ;;  %5070 = vst [vmem:[#allocation39_spill] sm:$0xff] %v3328_v3 }
 0x13d   :  { %v384_v35 = vadd.f32 %v381_v4, %v334_v57  ;;  %v394_v41 = vadd.f32 %v391_v7, %v344_v33  ;;  %v404_v26 = vadd.f32 %v401_v20, %v354_v31  ;;  %v411_v7 = vmul.f32 %v3128_v37, %v372_v47 }
 0x13e   :  { %v3371_v57 = vstv %s3277_s13  ;;  %v283_v31 = vadd.f32 %v280_v27, %v230_v6  ;;  %v289_v27 = vmul.f32 %v3117_v30, %v3211_v12  ;;  %s2809_s13 = smov 38  }
 0x13f   :  { %v424_v38 = vadd.f32 %v3207_v13, %v384_v35  ;;  %v434_v47 = vadd.f32 %v3240_v36, %v394_v41  ;;  %v444_v20 = vadd.f32 %v3219_v10, %v404_v26  ;;  %v329_v13 = vmul.f32 %v3096_v59, %v3236_v8 }
 0x140   :  { %v3311_v60 = vpop.permute.xlu2 %555  ;;  %v330_v36 = vmul.f32 %v3096_v59, %v3321_v40  ;;  %v282_v35 = vadd.f32 %v279_v46, %v229_v50  ;;  %v380_v59 = vmul.f32 %v3135_v44, %v3326_v49  ;;  %v126_v26 = vstv %s3290_s15  ;;  %s2811_s15 = smov 18  }
 0x141   :  { %5069 = vst [vmem:[#allocation38_spill] sm:$0xff] %v3311_v60  ;;  %v3334_v39 = vsel %vm561_vm6, %v3311_v60, %v3250_v48  ;;  %v456_v4 = vpop.permute.xlu1 %455  ;;  %v3397_v50 = vstv %s3336_s18  ;;  %s4811_s18 = sld [smem:[#allocation9 + $0xc]] }
 0x142   :  { %v3341_v18 = vmul.f32 %v3328_v3, %v3334_v39  ;;  %v3346_v51 = vsel %vm461_vm0, %v456_v4, %v3170_v62  ;;  %v464_v54 = vsel %vm461_vm0, %v3163_v21, %v456_v4  ;;  %v442_v62 = vadd.f32 %v3215_v14, %v402_v53  ;;  %5075 = vst [vmem:[#allocation44_spill] sm:$0xff] %v3397_v50 }
 0x143   :  { %v471_v28 = vmul.f32 %v3146_v29, %v464_v54  ;;  %v481_v45 = vmul.f32 %v3122_v32, %v464_v54  ;;  %v489_v23 = vmul.f32 %v3172_v15, %v3346_v51  ;;  %v491_v21 = vmul.f32 %v3172_v15, %v464_v54 }
 0x144   :  { %v414_v15 = vadd.f32 %v411_v7, %v364_v56  ;;  %v121_v53 = vstv %s3285_s14  ;;  %v3386_v4 = vstv %s3301_s16  ;;  %v451_v56 = vmul.f32 %v3111_v24, %v3027_v42  ;;  %v5077_v42 = vld [vmem:[#allocation18_spill] sm:$0xff]  ;;  %s2810_s14 = smov 22   ;;  %s2846_s16 = smov 88  }
 0x145   :  { %v474_v10 = vadd.f32 %v471_v28, %v424_v38  ;;  %v3368_v14 = vadd.f32 %v481_v45, %v434_v47  ;;  %v3375_v33 = vadd.f32 %v489_v23, %v442_v62  ;;  %v3377_v0 = vadd.f32 %v491_v21, %v444_v20  ;;  %v5078_v20 = vld [vmem:[#allocation33_spill] sm:$0xff] }
 0x146   :  { %v142_v7 = vstv %s3307_s17  ;;  %v3392_v38 = vstv %s3313_s6  ;;  %v332_v47 = vadd.f32 %v329_v13, %v282_v35  ;;  %v333_v28 = vadd.f32 %v330_v36, %v283_v31  ;;  %v5079_v13 = vld [vmem:[#allocation21_spill] sm:$0xff]  ;;  %s2849_s17 = smov 87   ;;  %s2852_s6 = smov 86  }
 0x147   :  { %5071 = vst [vmem:[#allocation40_spill] sm:$0xff] %v3368_v14  ;;  %v3381_v41 = vadd.f32 %v521_v43, %v474_v10  ;;  %v454_v46 = vadd.f32 %v451_v56, %v414_v15  ;;  %v3403_v45 = vstv %s3351_s19  ;;  %v101_v62 = vmul.f32 %v5078_v20, %v5077_v42  ;;  %v5080_v10 = vld [vmem:[#allocation25_spill] sm:$0xff]  ;;  %s4836_s19 = sld [smem:[#allocation9 + $0x9]] }
 0x148   :  { %5072 = vst [vmem:[#allocation41_spill] sm:$0xff] %v3375_v33  ;;  %v379_v23 = vmul.f32 %v3135_v44, %v3268_v1  ;;  %v383_v21 = vadd.f32 %v380_v59, %v333_v28  ;;  %v102_v36 = vmul.f32 %v5078_v20, %v5079_v13  ;;  %v239_v31 = vmul.f32 %v5080_v10, %v3229_v22  ;;  %v5084_v33 = vld [vmem:[#allocation28_spill] sm:$0xff]  ;;  %v3422_v28 = vpop.permute.xlu2 %566 }
 0x149   :  { %5073 = vst [vmem:[#allocation42_spill] sm:$0xff] %v3377_v0  ;;  %v3394_v6 = vpop.permute.xlu1 %496  ;;  %v339_v15 = vmul.f32 %v3081_v55, %v3236_v8  ;;  %v5083_v0 = vld [vmem:[#allocation23_spill] sm:$0xff]  ;;  %v3425_v50 = vstv %s3362_s20  ;;  %v3428_v3 = vstv %s3373_s0  ;;  %v123_v14 = vmul.f32 %v121_v53, %v5079_v13  ;;  %s4840_s20 = sld [smem:[#allocation9 + $0xd]] }
 0x14a   :  { %5074 = vst [vmem:[#allocation43_spill] sm:$0xff] %v3381_v41  ;;  %v501_v43 = vmul.f32 %v3394_v6, %v464_v54  ;;  %v5082_v54 = vld [vmem:[#allocation19_spill] sm:$0xff]  ;;  %v122_v41 = vmul.f32 %v121_v53, %v5077_v42  ;;  %v420_v44 = vmul.f32 %v5084_v33, %v5083_v0  ;;  %v382_v59 = vadd.f32 %v379_v23, %v332_v47  ;;  %s4845_s0 = sld [smem:[#allocation9 + $0xa]] }
 0x14b   :  { %5076 = vst [vmem:[#allocation45_spill] sm:$0xff] %v3403_v45  ;;  %v103_v56 = vmul.f32 %v5078_v20, %v5082_v54  ;;  %v292_v60 = vadd.f32 %v289_v27, %v239_v31  ;;  %v469_v48 = vmul.f32 %v3146_v29, %v3346_v51  ;;  %v106_v47 = vadd.f32 %v5088_v9, %v101_v62  ;;  %v5089_v27 = vld [vmem:[#allocation31_spill] sm:$0xff] }
 0x14c   :  { %v3415_v35 = vadd.f32 %v501_v43, %v454_v46  ;;  %5085 = vst [vmem:[#allocation33_spill] sm:$0xff] %v3425_v50  ;;  %v124_v46 = vmul.f32 %v121_v53, %v5082_v54  ;;  %v5087_v43 = vld [vmem:[#allocation22_spill] sm:$0xff]  ;;  %v107_v23 = vadd.f32 %v5088_v9, %v102_v36  ;;  %v143_v50 = vmul.f32 %v142_v7, %v5077_v42 }
 0x14d   :  { %5086 = vst [vmem:[#allocation21_spill] sm:$0xff] %v3428_v3  ;;  %v419_v20 = vmul.f32 %v5084_v33, %v5087_v43  ;;  %v342_v0 = vadd.f32 %v339_v15, %v292_v60  ;;  %v108_v3 = vadd.f32 %v5088_v9, %v103_v56  ;;  %v127_v58 = vadd.f32 %v126_v26, %v122_v41 }
 0x14e   :  { %5081 = vst [vmem:[#allocation18_spill] sm:$0xff] %v3415_v35  ;;  %v423_v35 = vadd.f32 %v420_v44, %v383_v21  ;;  %v470_v53 = vmul.f32 %v3146_v29, %v5089_v27  ;;  %v389_v33 = vmul.f32 %v3119_v2, %v3268_v1  ;;  %v309_v21 = vmul.f32 %v3065_v52, %v3211_v12 }
 0x14f   :  { %v422_v31 = vadd.f32 %v419_v20, %v382_v59  ;;  %v128_v15 = vadd.f32 %v126_v26, %v123_v14  ;;  %v129_v12 = vadd.f32 %v126_v26, %v124_v46  ;;  %v259_v56 = vmul.f32 %v3106_v61, %v3229_v22 }
 0x150   :  { %v473_v29 = vadd.f32 %v470_v53, %v423_v35  ;;  %v359_v44 = vmul.f32 %v3109_v63, %v3236_v8  ;;  %v144_v35 = vmul.f32 %v142_v7, %v5079_v13  ;;  %v145_v59 = vmul.f32 %v142_v7, %v5082_v54 }
 0x151   :  { %v508_v45 = vpop.permute.xlu1 %507  ;;  %v472_v60 = vadd.f32 %v469_v48, %v422_v31  ;;  %v479_v22 = vmul.f32 %v3122_v32, %v3346_v51  ;;  %v3475_v26 = vadd.f32 %v3392_v38, %v143_v50  ;;  %v312_v8 = vadd.f32 %v309_v21, %v259_v56  ;;  %v3477_v46 = vpop.permute.xlu2 %596 }
 0x152   :  { %v3449_v62 = vsel %vm511_vm5, %v508_v45, %v3191_v17  ;;  %v3454_v9 = vsel %vm511_vm5, %v3186_v25, %v508_v45  ;;  %v392_v17 = vadd.f32 %v389_v33, %v342_v0  ;;  %v569_v25 = vmul.f32 %v3422_v28, %v3334_v39 }
 0x153   :  { %v519_v41 = vmul.f32 %v3189_v16, %v3454_v9  ;;  %v520_v36 = vmul.f32 %v3189_v16, %v3449_v62  ;;  %v5091_v16 = vld [vmem:[#allocation30_spill] sm:$0xff]  ;;  %v109_v0 = vmax.f32 %v106_v47, 0.0  ;;  %v110_v53 = vmax.f32 %v107_v23, 0.0 }
 0x154   :  { %v429_v14 = vmul.f32 %v5091_v16, %v5087_v43  ;;  %v111_v31 = vmax.f32 %v108_v3, 0.0  ;;  %v130_v33 = vmax.f32 %v127_v58, 0.0  ;;  %v131_v7 = vmax.f32 %v128_v15, 0.0 }
 0x155   :  { %v522_v48 = vadd.f32 %v519_v41, %v472_v60  ;;  %v3466_v45 = vadd.f32 %v520_v36, %v473_v29  ;;  %v132_v29 = vmax.f32 %v129_v12, 0.0  ;;  %v290_v41 = vmul.f32 %v3117_v30, %v3282_v11 }
 0x156   :  { %v432_v60 = vadd.f32 %v429_v14, %v392_v17  ;;  %v362_v36 = vadd.f32 %v359_v44, %v312_v8  ;;  %v3484_v47 = vadd.f32 %v3392_v38, %v144_v35  ;;  %v3487_v50 = vadd.f32 %v3392_v38, %v145_v59  ;;  %v5092_v35 = vld [vmem:[#allocation26_spill] sm:$0xff] }
 0x157   :  { %5090 = vst [vmem:[#allocation25_spill] sm:$0xff] %v3466_v45  ;;  %v3479_v20 = vadd.f32 %v569_v25, %v522_v48  ;;  %v114_v3 = vmul.f32 %v3371_v57, %v109_v0  ;;  %v409_v58 = vmul.f32 %v3128_v37, %v3268_v1  ;;  %v240_v23 = vmul.f32 %v5080_v10, %v3273_v5 }
 0x158   :  { %v482_v21 = vadd.f32 %v479_v22, %v432_v60  ;;  %v340_v30 = vmul.f32 %v3081_v55, %v3321_v40  ;;  %v115_v15 = vmul.f32 %v3371_v57, %v110_v53  ;;  %v3499_v12 = vmul.f32 %v3371_v57, %v111_v31 }
 0x159   :  { %v527_v45 = vpop.permute.xlu1 %526  ;;  %v135_v38 = vmul.f32 %v3386_v4, %v130_v33  ;;  %v293_v44 = vadd.f32 %v290_v41, %v240_v23  ;;  %v310_v25 = vmul.f32 %v3065_v52, %v3282_v11  ;;  %v412_v48 = vadd.f32 %v409_v58, %v362_v36  ;;  %v3530_v60 = vpop.permute.xlu2 %607 }
 0x15a   :  { %v529_v56 = vmul.f32 %v527_v45, %v3454_v9  ;;  %v390_v1 = vmul.f32 %v3119_v2, %v3326_v49  ;;  %v136_v10 = vmul.f32 %v3386_v4, %v131_v7  ;;  %v449_v55 = vmul.f32 %v3111_v24, %v5087_v43 }
 0x15b   :  { %v300_v59 = vmul.f32 %v5092_v35, %v3282_v11  ;;  %v260_v22 = vmul.f32 %v3106_v61, %v3273_v5  ;;  %v343_v0 = vadd.f32 %v340_v30, %v293_v44  ;;  %v360_v52 = vmul.f32 %v3109_v63, %v3321_v40  ;;  %v5093_v11 = vld [vmem:[#allocation24_spill] sm:$0xff] }
 0x15c   :  { %v532_v17 = vadd.f32 %v529_v56, %v482_v21  ;;  %v499_v2 = vmul.f32 %v3394_v6, %v3346_v51  ;;  %v3521_v8 = vmul.f32 %v3386_v4, %v132_v29  ;;  %v151_v43 = vmax.f32 %v3475_v26, 0.0  ;;  %v5094_v51 = vld [vmem:[#allocation45_spill] sm:$0xff] }
 0x15d   :  { %v250_v53 = vmul.f32 %v5093_v11, %v3273_v5  ;;  %v313_v31 = vadd.f32 %v310_v25, %v260_v22  ;;  %v393_v61 = vadd.f32 %v390_v1, %v343_v0  ;;  %v410_v33 = vmul.f32 %v3128_v37, %v3326_v49  ;;  %v5095_v5 = vld [vmem:[#allocation27_spill] sm:$0xff]  ;;  %v5098_v11 = vld [vmem:[#allocation29_spill] sm:$0xff] }
 0x15e   :  { %v3512_v14 = vadd.f32 %v3341_v18, %v532_v17  ;;  %v350_v18 = vmul.f32 %v3126_v34, %v3321_v40  ;;  %v452_v63 = vadd.f32 %v449_v55, %v412_v48  ;;  %v164_v7 = vmul.f32 %v5094_v51, %v5077_v42  ;;  %v5096_v34 = vld [vmem:[#allocation23_spill] sm:$0xff]  ;;  %v5107_v26 = vld [vmem:[#allocation21_spill] sm:$0xff] }
 0x15f   :  { %v165_v29 = vmul.f32 %v5094_v51, %v5079_v13  ;;  %v303_v41 = vadd.f32 %v300_v59, %v250_v53  ;;  %v400_v36 = vmul.f32 %v5095_v5, %v3326_v49  ;;  %v430_v40 = vmul.f32 %v5091_v16, %v5096_v34  ;;  %v5097_v16 = vld [vmem:[#allocation33_spill] sm:$0xff] }
 0x160   :  { %v363_v56 = vadd.f32 %v360_v52, %v313_v31  ;;  %v502_v37 = vadd.f32 %v499_v2, %v452_v63  ;;  %v3544_v23 = vadd.f32 %v135_v38, %v114_v3  ;;  %v152_v30 = vmax.f32 %v3484_v47, 0.0 }
 0x161   :  { %v166_v17 = vmul.f32 %v5094_v51, %v5082_v54  ;;  %v353_v44 = vadd.f32 %v350_v18, %v303_v41  ;;  %v433_v49 = vadd.f32 %v430_v40, %v393_v61  ;;  %v599_v48 = vmul.f32 %v3477_v46, %v3334_v39  ;;  %v5099_v18 = vld [vmem:[#allocation37_spill] sm:$0xff]  ;;  %v3580_v51 = vpop.permute.xlu2 %626  ;;  %v5101_v41 = vld [vmem:[#allocation38_spill] sm:$0xff] }
 0x162   :  { %v3538_v21 = vpop.permute.xlu1 %546  ;;  %v413_v25 = vadd.f32 %v410_v33, %v363_v56  ;;  %v169_v55 = vadd.f32 %v5097_v16, %v164_v7  ;;  %v170_v35 = vadd.f32 %v5097_v16, %v165_v29  ;;  %v450_v3 = vmul.f32 %v3111_v24, %v5096_v34  ;;  %v3575_v33 = vpop.permute.xlu0 %609  ;;  %v5100_v7 = vld [vmem:[#allocation35_spill] sm:$0xff] }
 0x163   :  { %v549_v58 = vmul.f32 %v3538_v21, %v3454_v9  ;;  %v403_v38 = vadd.f32 %v400_v36, %v353_v44  ;;  %v480_v47 = vmul.f32 %v3122_v32, %v5089_v27  ;;  %v500_v59 = vmul.f32 %v3394_v6, %v5089_v27  ;;  %v5102_v36 = vld [vmem:[#allocation40_spill] sm:$0xff]  ;;  %v5103_v56 = vld [vmem:[#allocation39_spill] sm:$0xff] }
 0x164   :  { %v530_v22 = vmul.f32 %v527_v45, %v3449_v62  ;;  %v3562_v52 = vadd.f32 %v136_v10, %v115_v15  ;;  %v153_v2 = vmax.f32 %v3487_v50, 0.0  ;;  %v440_v53 = vmul.f32 %v5098_v11, %v5096_v34 }
 0x165   :  { %v552_v1 = vadd.f32 %v549_v58, %v502_v37  ;;  %v531_v24 = vmul.f32 %v527_v45, %v5099_v18  ;;  %v3569_v31 = vadd.f32 %v5097_v16, %v166_v17  ;;  %v453_v32 = vadd.f32 %v450_v3, %v413_v25  ;;  %v5104_v17 = vld [vmem:[#allocation36_spill] sm:$0xff]  ;;  %v5105_v16 = vld [vmem:[#allocation25_spill] sm:$0xff] }
 0x166   :  { %v483_v61 = vadd.f32 %v480_v47, %v433_v49  ;;  %v550_v6 = vmul.f32 %v3538_v21, %v3449_v62  ;;  %v172_v27 = vmax.f32 %v169_v55, 0.0  ;;  %v173_v15 = vmax.f32 %v170_v35, 0.0  ;;  %v5106_v3 = vld [vmem:[#allocation44_spill] sm:$0xff] }
 0x167   :  { %v3560_v0 = vadd.f32 %v599_v48, %v552_v1  ;;  %v443_v10 = vadd.f32 %v440_v53, %v403_v38  ;;  %v503_v50 = vadd.f32 %v500_v59, %v453_v32  ;;  %v534_v34 = vadd.f32 %v531_v24, %v5102_v36 }
 0x168   :  { %v533_v63 = vadd.f32 %v530_v22, %v483_v61  ;;  %v539_v44 = vmul.f32 %v5104_v17, %v3454_v9  ;;  %v3600_v25 = vsel %vm611_vm7, %v3530_v60, %v3575_v33  ;;  %v3617_v38 = vmul.f32 %v5106_v3, %v151_v43 }
 0x169   :  { %v553_v49 = vadd.f32 %v550_v6, %v503_v50  ;;  %v630_v1 = vmul.f32 %v3580_v51, %v3600_v25  ;;  %v3620_v47 = vmul.f32 %v5106_v3, %v152_v30  ;;  %v540_v59 = vmul.f32 %v5104_v17, %v3449_v62  ;;  %v5108_v62 = vld [vmem:[#allocation32_spill] sm:$0xff] }
 0x16a   :  { %v560_v45 = vpop.permute.xlu1 %559  ;;  %v3629_v11 = vmul.f32 %v5106_v3, %v153_v2  ;;  %v174_v53 = vmax.f32 %v3569_v31, 0.0  ;;  %v3633_v24 = vmul.f32 %v5107_v26, %v172_v27  ;;  %v3636_v30 = vmul.f32 %v5107_v26, %v173_v15  ;;  %v5109_v2 = vld [vmem:[#allocation41_spill] sm:$0xff]  ;;  %v637_v50 = vpop.permute.xlu0 %636 }
 0x16b   :  { %v562_v29 = vsel %vm561_vm6, %v5100_v7, %v560_v45  ;;  %v564_v5 = vsel %vm561_vm6, %v560_v45, %v5101_v41  ;;  %v541_v32 = vmul.f32 %v5104_v17, %v5099_v18  ;;  %v493_v61 = vadd.f32 %v5108_v62, %v443_v10 }
 0x16c   :  { %v570_v40 = vmul.f32 %v3422_v28, %v562_v29  ;;  %v580_v37 = vmul.f32 %v5103_v56, %v562_v29  ;;  %v581_v58 = vmul.f32 %v5103_v56, %v564_v5  ;;  %v600_v48 = vmul.f32 %v3477_v46, %v562_v29 }
 0x16d   :  { %v3642_v6 = vstv %s3573_s21  ;;  %v542_v45 = vadd.f32 %v539_v44, %v5109_v2  ;;  %v551_v27 = vmul.f32 %v3538_v21, %v5099_v18  ;;  %v543_v41 = vadd.f32 %v540_v59, %v493_v61  ;;  %v5112_v59 = vld [vmem:[#allocation43_spill] sm:$0xff]  ;;  %s4865_s21 = sld [smem:[#allocation9 + $0xe]] }
 0x16e   :  { %v3608_v55 = vadd.f32 %v570_v40, %v5105_v16  ;;  %v583_v35 = vadd.f32 %v580_v37, %v533_v63  ;;  %v3610_v9 = vadd.f32 %v581_v58, %v534_v34  ;;  %v3624_v22 = vadd.f32 %v600_v48, %v553_v49  ;;  %v5110_v58 = vld [vmem:[#allocation42_spill] sm:$0xff] }
 0x16f   :  { %v3650_v63 = vstv %s3578_s22  ;;  %v571_v10 = vmul.f32 %v3422_v28, %v564_v5  ;;  %v601_v40 = vmul.f32 %v3477_v46, %v564_v5  ;;  %v640_v37 = vmul.f32 %v637_v50, %v3600_v25  ;;  %v5111_v48 = vld [vmem:[#allocation18_spill] sm:$0xff]  ;;  %s4895_s22 = sld [smem:[#allocation9 + $0xf]] }
 0x170   :  { %v633_v43 = vadd.f32 %v630_v1, %v583_v35  ;;  %v544_v17 = vadd.f32 %v541_v32, %v5110_v58  ;;  %v554_v1 = vadd.f32 %v551_v27, %v5111_v48  ;;  %v3667_v35 = vstv %s3612_s5 }
 0x171   :  { %v3673_v62 = vadd.f32 %v571_v10, %v5112_v59  ;;  %v3723_v59 = vadd.f32 %v3620_v47, %v3562_v52 }
 0x172   :  { %v708_v7 = vrot.slane %v633_v43, 2  ;;  %v587_v15 = vpop.permute.xlu1 %586  ;;  %v717_v21 = vrot.slane %v633_v43, 4  ;;  %v726_v16 = vrot.slane %v633_v43, 6  ;;  %v3675_v32 = vadd.f32 %v601_v40, %v554_v1 }
 0x173   :  { %v589_v36 = vmul.f32 %v587_v15, %v3334_v39  ;;  %v590_v34 = vmul.f32 %v587_v15, %v562_v29  ;;  %v591_v18 = vmul.f32 %v587_v15, %v564_v5  ;;  %v3661_v39 = vstv %s3592_s23  ;;  %v854_v15 = vpop.permute.xlu2 %853  ;;  %s2365_s23 = sld [smem:[#allocation11 + $0x4]] }
 0x174   :  { %v714_v56 = vadd.f32 %v708_v7, %v633_v43  ;;  %v3664_v29 = vstv %s3603_s4  ;;  %v3670_v5 = vstv %s3626_s24  ;;  %v3678_v7 = vstv %s3644_s25  ;;  %s2885_s4 = smov [#allocation12]  }
 0x175   :  { %v592_v44 = vadd.f32 %v589_v36, %v542_v45  ;;  %v593_v49 = vadd.f32 %v590_v34, %v543_v41  ;;  %v594_v2 = vadd.f32 %v591_v18, %v544_v17  ;;  %v3682_v34 = vstv %s3652_s26  ;;  %s2325_s5 = sshll.u32 %s2885_s4, 4  ;;  %s2327_s26 = sshll.u32 %s4975_s8, 4  ;;  %s2326_s5 = int_to_ptr.vmem [resolvable:$true] %s2325_s5  ;;  %s2328_s26 = int_to_ptr.hbm [resolvable:$true] %s2327_s26 }
 0x176   :  { %v723_v28 = vadd.f32 %v717_v21, %v714_v56  ;;  %v3685_v56 = vmul.f32 %v854_v15, %v5077_v42  ;;  %v3688_v10 = vmul.f32 %v854_v15, %v5079_v13 }
 0x177   :  { %v643_v46 = vadd.f32 %v640_v37, %v593_v49  ;;  %v3701_v37 = vmul.f32 %v854_v15, %v5082_v54  ;;  %v3716_v54 = vadd.f32 %v3617_v38, %v3544_v23 }
 0x178   :  { %v732_v61 = vadd.f32 %v726_v16, %v723_v28 }
 0x179   :  { %v757_v45 = vrot.slane %v643_v46, 2  ;;  %v766_v27 = vrot.slane %v643_v46, 4  ;;  %v775_v43 = vrot.slane %v643_v46, 6 }
 0x17a   :  { %v737_v41 = vmul.f32 %v3642_v6, %v732_v61  ;;  %v606_v36 = vpop.permute.xlu1 %605 }
 0x17b   :  { %v763_v40 = vadd.f32 %v757_v45, %v643_v46  ;;  %v3693_v21 = vsel %vm611_vm7, %v606_v36, %v3530_v60  ;;  %v3698_v18 = vsel %vm611_vm7, %v3575_v33, %v606_v36  ;;  %v140_v33 = vadd.f32 %v3521_v8, %v3499_v12 }
 0x17c   :  { %v3704_v42 = vadd.f32 %v3650_v63, %v737_v41  ;;  %v629_v13 = vmul.f32 %v3580_v51, %v3693_v21  ;;  %v631_v58 = vmul.f32 %v3580_v51, %v3698_v18  ;;  %v639_v60 = vmul.f32 %v637_v50, %v3693_v21 }
 0x17d   :  { %v772_v17 = vadd.f32 %v766_v27, %v763_v40  ;;  %v641_v49 = vmul.f32 %v637_v50, %v3698_v18  ;;  %v3726_v50 = vadd.f32 %v3629_v11, %v140_v33 }
 0x17e   :  { %v745_v48 = vmax.f32 %v3704_v42, 0.0  ;;  %v632_v1 = vadd.f32 %v629_v13, %v3512_v14  ;;  %v634_v28 = vadd.f32 %v631_v58, %v3610_v9  ;;  %v642_v16 = vadd.f32 %v639_v60, %v592_v44 }
 0x17f   :  { %v781_v51 = vadd.f32 %v775_v43, %v772_v17  ;;  %v644_v46 = vadd.f32 %v641_v49, %v594_v2 }
 0x180   :  { %v707_v12 = vrot.slane %v632_v1, 2  ;;  %v709_v8 = vrot.slane %v634_v28, 2  ;;  %v716_v23 = vrot.slane %v632_v1, 4  ;;  %v718_v38 = vrot.slane %v634_v28, 4 }
 0x181   :  { %v786_v61 = vmul.f32 %v3661_v39, %v781_v51  ;;  %v725_v45 = vrot.slane %v632_v1, 6  ;;  %v727_v14 = vrot.slane %v634_v28, 6  ;;  %v756_v27 = vrot.slane %v642_v16, 2 }
 0x182   :  { %v713_v9 = vadd.f32 %v707_v12, %v632_v1  ;;  %v715_v44 = vadd.f32 %v709_v8, %v634_v28  ;;  %v758_v43 = vrot.slane %v644_v46, 2  ;;  %v765_v2 = vrot.slane %v642_v16, 4  ;;  %v617_v15 = vpop.permute.xlu1 %616 }
 0x183   :  { %v3730_v52 = vadd.f32 %v3664_v29, %v786_v61  ;;  %v762_v47 = vadd.f32 %v756_v27, %v642_v16  ;;  %v767_v11 = vrot.slane %v644_v46, 4  ;;  %v774_v41 = vrot.slane %v642_v16, 6 }
 0x184   :  { %v722_v36 = vadd.f32 %v716_v23, %v713_v9  ;;  %v724_v40 = vadd.f32 %v718_v38, %v715_v44  ;;  %v764_v13 = vadd.f32 %v758_v43, %v644_v46  ;;  %v776_v58 = vrot.slane %v644_v46, 6 }
 0x185   :  { %v794_v60 = vmax.f32 %v3730_v52, 0.0  ;;  %v771_v17 = vadd.f32 %v765_v2, %v762_v47  ;;  %v619_v49 = vmul.f32 %v617_v15, %v3693_v21  ;;  %v620_v33 = vmul.f32 %v617_v15, %v3600_v25 }
 0x186   :  { %v731_v1 = vadd.f32 %v725_v45, %v722_v36  ;;  %v733_v28 = vadd.f32 %v727_v14, %v724_v40  ;;  %v773_v51 = vadd.f32 %v767_v11, %v764_v13  ;;  %v621_v12 = vmul.f32 %v617_v15, %v3698_v18 }
 0x187   :  { %v780_v8 = vadd.f32 %v774_v41, %v771_v17  ;;  %v622_v61 = vadd.f32 %v619_v49, %v3479_v20  ;;  %v623_v16 = vadd.f32 %v620_v33, %v3608_v55  ;;  %v179_v46 = vmul.f32 %v5107_v26, %v174_v53 }
 0x188   :  { %v736_v23 = vmul.f32 %v3642_v6, %v731_v1  ;;  %v738_v38 = vmul.f32 %v3642_v6, %v733_v28  ;;  %v782_v27 = vadd.f32 %v776_v58, %v773_v51  ;;  %v624_v45 = vadd.f32 %v621_v12, %v3673_v62 }
 0x189   :  { %v785_v14 = vmul.f32 %v3661_v39, %v780_v8  ;;  %v658_v9 = vrot.slane %v622_v61, 2  ;;  %v659_v44 = vrot.slane %v623_v16, 2  ;;  %v667_v43 = vrot.slane %v622_v61, 4 }
 0x18a   :  { %v3746_v20 = vadd.f32 %v3650_v63, %v736_v23  ;;  %v3749_v55 = vadd.f32 %v3650_v63, %v738_v38  ;;  %v787_v31 = vmul.f32 %v3661_v39, %v782_v27  ;;  %v660_v53 = vrot.slane %v624_v45, 2 }
 0x18b   :  { %v3753_v2 = vadd.f32 %v3664_v29, %v785_v14  ;;  %v664_v6 = vadd.f32 %v658_v9, %v622_v61  ;;  %v665_v15 = vadd.f32 %v659_v44, %v623_v16  ;;  %v668_v62 = vrot.slane %v623_v16, 4  ;;  %v647_v47 = vpop.permute.xlu1 %646 }
 0x18c   :  { %v744_v11 = vmax.f32 %v3746_v20, 0.0  ;;  %v746_v41 = vmax.f32 %v3749_v55, 0.0  ;;  %v3758_v36 = vadd.f32 %v3664_v29, %v787_v31  ;;  %v666_v40 = vadd.f32 %v660_v53, %v624_v45 }
 0x18d   :  { %v793_v63 = vmax.f32 %v3753_v2, 0.0  ;;  %v669_v13 = vrot.slane %v624_v45, 4  ;;  %v673_v39 = vadd.f32 %v667_v43, %v664_v6  ;;  %v674_v58 = vadd.f32 %v668_v62, %v665_v15 }
 0x18e   :  { %v676_v17 = vrot.slane %v622_v61, 6  ;;  %v677_v49 = vrot.slane %v623_v16, 6  ;;  %v678_v33 = vrot.slane %v624_v45, 6  ;;  %v649_v1 = vmul.f32 %v647_v47, %v3693_v21 }
 0x18f   :  { %v675_v28 = vadd.f32 %v669_v13, %v666_v40  ;;  %v650_v51 = vmul.f32 %v647_v47, %v3600_v25  ;;  %v651_v12 = vmul.f32 %v647_v47, %v3698_v18  ;;  %v180_v29 = vadd.f32 %v3633_v24, %v3716_v54 }
 0x190   :  { %v682_v8 = vadd.f32 %v676_v17, %v673_v39  ;;  %v683_v23 = vadd.f32 %v677_v49, %v674_v58  ;;  %v652_v38 = vadd.f32 %v649_v1, %v3560_v0  ;;  %v181_v27 = vadd.f32 %v3636_v30, %v3723_v59 }
 0x191   :  { %v684_v61 = vadd.f32 %v678_v33, %v675_v28  ;;  %v653_v16 = vadd.f32 %v650_v51, %v3624_v22  ;;  %v654_v21 = vadd.f32 %v651_v12, %v3675_v32  ;;  %v182_v45 = vadd.f32 %v179_v46, %v3726_v50 }
 0x192   :  { %v687_v25 = vmul.f32 %v3667_v35, %v682_v8  ;;  %v688_v18 = vmul.f32 %v3667_v35, %v683_v23  ;;  %v805_v14 = vrot.slane %v652_v38, 2  ;;  %v814_v24 = vrot.slane %v652_v38, 4 }
 0x193   :  { %v689_v54 = vmul.f32 %v3667_v35, %v684_v61  ;;  %v806_v9 = vrot.slane %v653_v16, 2  ;;  %v807_v0 = vrot.slane %v654_v21, 2  ;;  %v815_v44 = vrot.slane %v653_v16, 4 }
 0x194   :  { %v692_v30 = vadd.f32 %v3670_v5, %v687_v25  ;;  %v693_v59 = vadd.f32 %v3670_v5, %v688_v18  ;;  %v811_v22 = vadd.f32 %v805_v14, %v652_v38  ;;  %v816_v43 = vrot.slane %v654_v21, 4  ;;  %v861_v53 = vpop.permute.xlu1 %860  ;;  %v5113_v14 = vld [vmem:[#allocation20_spill] sm:$0xff] }
 0x195   :  { %v694_v32 = vadd.f32 %v3670_v5, %v689_v54  ;;  %v812_v50 = vadd.f32 %v806_v9, %v653_v16  ;;  %v813_v46 = vadd.f32 %v807_v0, %v654_v21  ;;  %v823_v31 = vrot.slane %v652_v38, 6 }
 0x196   :  { %v695_v6 = vmax.f32 %v692_v30, 0.0  ;;  %v696_v15 = vmax.f32 %v693_v59, 0.0  ;;  %v820_v62 = vadd.f32 %v814_v24, %v811_v22  ;;  %v824_v47 = vrot.slane %v653_v16, 6 }
 0x197   :  { %v697_v35 = vmax.f32 %v694_v32, 0.0  ;;  %v821_v40 = vadd.f32 %v815_v44, %v812_v50  ;;  %v822_v13 = vadd.f32 %v816_v43, %v813_v46  ;;  %v825_v39 = vrot.slane %v654_v21, 6 }
 0x198   :  { %v698_v58 = vmul.f32 %v695_v6, %v3371_v57  ;;  %v699_v17 = vmul.f32 %v696_v15, %v3371_v57  ;;  %v829_v49 = vadd.f32 %v823_v31, %v820_v62  ;;  %v863_v33 = vadd.f32 %v861_v53, %v3685_v56 }
 0x199   :  { %v700_v5 = vmul.f32 %v697_v35, %v3371_v57  ;;  %v830_v1 = vadd.f32 %v824_v47, %v821_v40  ;;  %v831_v28 = vadd.f32 %v825_v39, %v822_v13  ;;  %v864_v51 = vadd.f32 %v861_v53, %v3688_v10 }
 0x19a   :  { %v834_v12 = vmul.f32 %v3678_v7, %v829_v49  ;;  %v865_v8 = vadd.f32 %v861_v53, %v3701_v37  ;;  %v866_v23 = vmax.f32 %v863_v33, 0.0  ;;  %v701_v38 = vadd.f32 %v698_v58, %v180_v29 }
 0x19b   :  { %v835_v61 = vmul.f32 %v3678_v7, %v830_v1  ;;  %v836_v16 = vmul.f32 %v3678_v7, %v831_v28  ;;  %v867_v21 = vmax.f32 %v864_v51, 0.0  ;;  %v702_v25 = vadd.f32 %v699_v17, %v181_v27 }
 0x19c   :  { %v839_v56 = vadd.f32 %v3682_v34, %v834_v12  ;;  %v868_v18 = vmax.f32 %v865_v8, 0.0  ;;  %v5114_v24 = vperm.slane %v5113_v14, 0  ;;  %v703_v10 = vadd.f32 %v700_v5, %v182_v45 }
 0x19d   :  { %v840_v9 = vadd.f32 %v3682_v34, %v835_v61  ;;  %v841_v37 = vadd.f32 %v3682_v34, %v836_v16  ;;  %v5115_v29 = vperm.slane %v5113_v14, 1  ;;  %v747_v7 = vmul.f32 %v744_v11, %v3386_v4 }
 0x19e   :  { %v3790_v54 = vmul.f32 %v866_v23, %v5114_v24  ;;  %v842_v27 = vmax.f32 %v839_v56, 0.0  ;;  %v5116_v44 = vperm.slane %v5113_v14, 2  ;;  %v748_v34 = vmul.f32 %v745_v48, %v3386_v4 }
 0x19f   :  { %v3796_v0 = vmul.f32 %v867_v21, %v5115_v29  ;;  %v749_v45 = vmul.f32 %v746_v41, %v3386_v4  ;;  %v843_v59 = vmax.f32 %v840_v9, 0.0  ;;  %v750_v20 = vadd.f32 %v747_v7, %v701_v38 }
 0x1a0   :  { %v3803_v30 = vmul.f32 %v868_v18, %v5116_v44  ;;  %872 = vrot.lane.b32.xlu2 %v3790_v54, %s2805_s2  ;;  %v795_v11 = vmax.f32 %v3758_v36, 0.0  ;;  %v796_v22 = vmul.f32 %v793_v63, %v5106_v3  ;;  %v751_v43 = vadd.f32 %v748_v34, %v702_v25  ;;  %v3825_v63 = vld [vmem:[#allocation6] sm:$0xff] }
 0x1a1   :  { %874 = vrot.lane.b32.xlu0 %v3796_v0, %s2805_s2  ;;  %v752_v32 = vadd.f32 %v749_v45, %v703_v10  ;;  %v797_v42 = vmul.f32 %v794_v60, %v5106_v3  ;;  %v844_v48 = vmax.f32 %v841_v37, 0.0  ;;  %v845_v50 = vmul.f32 %v842_v27, %v5107_v26 }
 0x1a2   :  { %876 = vrot.lane.b32.xlu1 %v3803_v30, %s2805_s2  ;;  %v798_v55 = vmul.f32 %v795_v11, %v5106_v3  ;;  %v799_v41 = vadd.f32 %v796_v22, %v750_v20  ;;  %v846_v36 = vmul.f32 %v843_v59, %v5107_v26  ;;  %v5117_v60 = vmov 3  }
 0x1a3   :  { %v800_v46 = vadd.f32 %v797_v42, %v751_v43  ;;  %v847_v2 = vmul.f32 %v844_v48, %v5107_v26  ;;  %v5118_v15 = vmov 6   ;;  %v5119_v62 = vmov 4  }
 0x1a4   :  { %v801_v31 = vadd.f32 %v798_v55, %v752_v32  ;;  %v3827_v53 = vadd.f32 %v845_v50, %v799_v41  ;;  %v5120_v47 = vmov 5   ;;  %v5121_v35 = vmov 8  }
 0x1a5   :  { %v3829_v6 = vadd.f32 %v846_v36, %v800_v46  ;;  %v5122_v40 = vmov 7   ;;  %v5123_v13 = vmov 10   ;;  %v5124_v39 = vmov 13  }
 0x1a6   :  { %v3831_v52 = vadd.f32 %v847_v2, %v801_v31  ;;  %v5125_v58 = vmov 9   ;;  %v5126_v17 = vmov 11   ;;  %v5127_v49 = vmov 18  }
 0x1a7   :  { %v5128_v33 = vmov 12   ;;  %v5129_v5 = vmov 14   ;;  %v5130_v1 = vmov 20   ;;  %v5131_v28 = vmov 15  }
 0x1a8   :  { %884 = vperm.xlu2 %2536, %v3825_v63   ;;  %v5132_v51 = vmov 25   ;;  %v5133_v12 = vmov 16   ;;  %v5134_v23 = vmov 17   ;;  %v5135_v61 = vmov 19  }
 0x1a9   :  { %894 = vperm.xlu0 %2537, %v3825_v63   ;;  %v5136_v16 = vmov 30   ;;  %v5137_v25 = vmov 22   ;;  %v5138_v56 = vmov 21   ;;  %v5139_v18 = vmov 32  }
 0x1aa   :  { %904 = vperm.xlu1 %2538, %v3825_v63   ;;  %v5140_v45 = vmov 23   ;;  %v2812_v59 = vmov 37   ;;  %v5141_v22 = vmov 24   ;;  %v5142_v46 = vmov 26  }
 0x1b0   :  { %2539 = vset.pattern.permute.xlu2 %v5117_v60 }
 0x1b1   :  { %927 = vrot.lane.b32.xlu0 %v3803_v30, %s2806_s3  ;;  %914 = vperm.xlu2 %2539, %v3825_v63  }
 0x1b2   :  { %923 = vrot.lane.b32.xlu1 %v3790_v54, %s2806_s3  ;;  %2542 = vset.pattern.permute.xlu0 %v5118_v15 }
 0x1b3   :  { %2540 = vset.pattern.permute.xlu1 %v5119_v62 }
 0x1b9   :  { %954 = vperm.xlu0 %2542, %v3825_v63   ;;  %925 = vrot.lane.b32.xlu2 %v3796_v0, %s2806_s3 }
 0x1ba   :  { %934 = vperm.xlu1 %2540, %v3825_v63   ;;  %2541 = vset.pattern.permute.xlu2 %v5120_v47 }
 0x1c1   :  { %2544 = vset.pattern.permute.xlu0 %v5121_v35  ;;  %944 = vperm.xlu2 %2541, %v3825_v63  }
 0x1c2   :  { %2543 = vset.pattern.permute.xlu1 %v5122_v40  ;;  %984 = vperm.xlu0 %2544, %v3825_v63  }
 0x1c3   :  { %964 = vperm.xlu1 %2543, %v3825_v63  }
 0x1c9   :  { %973 = vrot.lane.b32.xlu2 %v3790_v54, %s2807_s11 }
 0x1ca   :  { %1025 = vrot.lane.b32.xlu0 %v3796_v0, %s2808_s12  ;;  %2546 = vset.pattern.permute.xlu2 %v5123_v13 }
 0x1cb   :  { %975 = vrot.lane.b32.xlu1 %v3796_v0, %s2807_s11  ;;  %2549 = vset.pattern.permute.xlu0 %v5124_v39 }
 0x1cc   :  { %2545 = vset.pattern.permute.xlu1 %v5125_v58 }
 0x1d1   :  { %977 = vrot.lane.b32.xlu2 %v3803_v30, %s2807_s11 }
 0x1d2   :  { %1044 = vperm.xlu0 %2549, %v3825_v63  }
 0x1d3   :  { %994 = vperm.xlu1 %2545, %v3825_v63  }
 0x1d9   :  { %1004 = vperm.xlu2 %2546, %v3825_v63  }
 0x1da   :  { %1077 = vrot.lane.b32.xlu0 %v3803_v30, %s2809_s13 }
 0x1db   :  { %2547 = vset.pattern.permute.xlu1 %v5126_v17  ;;  %2554 = vset.pattern.permute.xlu0 %v5127_v49  ;;  %v2814_v49 = vmov 42  }
 0x1dc   :  { %1014 = vperm.xlu1 %2547, %v3825_v63  }
 0x1e1   :  { %1023 = vrot.lane.b32.xlu2 %v3790_v54, %s2808_s12 }
 0x1e2   :  { %1104 = vperm.xlu0 %2554, %v3825_v63   ;;  %2548 = vset.pattern.permute.xlu2 %v5128_v33 }
 0x1e4   :  { %1027 = vrot.lane.b32.xlu1 %v3803_v30, %s2808_s12 }
 0x1e5   :  { %2550 = vset.pattern.permute.xlu1 %v5129_v5 }
 0x1e9   :  { %1034 = vperm.xlu2 %2548, %v3825_v63  }
 0x1ea   :  { %2556 = vset.pattern.permute.xlu0 %v5130_v1 }
 0x1eb   :  { %1134 = vperm.xlu0 %2556, %v3825_v63  }
 0x1ec   :  { %1054 = vperm.xlu1 %2550, %v3825_v63  }
 0x1f1   :  { %2551 = vset.pattern.permute.xlu2 %v5131_v28 }
 0x1f2   :  { %1064 = vperm.xlu2 %2551, %v3825_v63  }
 0x1f3   :  { %1175 = vrot.lane.b32.xlu0 %v3796_v0, %s2785_s7 }
 0x1f4   :  { %1073 = vrot.lane.b32.xlu1 %v3790_v54, %s2809_s13  ;;  %2561 = vset.pattern.permute.xlu0 %v5132_v51  ;;  %v5143_v51 = vmov 27  }
 0x1f5   :  { %2552 = vset.pattern.permute.xlu1 %v5133_v12 }
 0x1fa   :  { %1075 = vrot.lane.b32.xlu2 %v3796_v0, %s2809_s13  ;;  %v873_v8 = vpop.permute.xlu2 %872 }
 0x1fb   :  { %1193 = vperm.xlu0 %2561, %v3825_v63   ;;  %2553 = vset.pattern.permute.xlu2 %v5134_v23 }
 0x1fc   :  { %1084 = vperm.xlu1 %2552, %v3825_v63  }
 0x202   :  { %1094 = vperm.xlu2 %2553, %v3825_v63   ;;  %v3886_v38 = vpop.permute.xlu2 %884 }
 0x203   :  { %1226 = vrot.lane.b32.xlu0 %v3803_v30, %s2787_s28 }
 0x204   :  { %2555 = vset.pattern.permute.xlu1 %v5135_v61  ;;  %2566 = vset.pattern.permute.xlu0 %v5136_v16 }
 0x205   :  { %1114 = vperm.xlu1 %2555, %v3825_v63  }
 0x20a   :  { %1123 = vrot.lane.b32.xlu2 %v3790_v54, %s2810_s14 }
 0x20b   :  { %1252 = vperm.xlu0 %2566, %v3825_v63   ;;  %v3895_v21 = vpop.permute.xlu2 %914  ;;  %2558 = vset.pattern.permute.xlu2 %v5137_v25 }
 0x20d   :  { %1125 = vrot.lane.b32.xlu1 %v3796_v0, %s2810_s14 }
 0x20e   :  { %2557 = vset.pattern.permute.xlu1 %v5138_v56 }
 0x212   :  { %1127 = vrot.lane.b32.xlu2 %v3803_v30, %s2810_s14 }
 0x213   :  { %2568 = vset.pattern.permute.xlu0 %v5139_v18  ;;  %v875_v14 = vpop.permute.xlu0 %874  ;;  %v926_v24 = vpop.permute.xlu2 %925 }
 0x214   :  { %v877_v10 = vpop.permute.xlu1 %876  ;;  %1281 = vperm.xlu0 %2568, %v3825_v63   ;;  %v3910_v37 = vsel %vm878_vm8, %v873_v8, %v875_v14 }
 0x215   :  { %1144 = vperm.xlu1 %2557, %v3825_v63   ;;  %v879_v9 = vsel %vm878_vm8, %v875_v14, %v877_v10  ;;  %v3934_v42 = vsel %vm878_vm8, %v877_v10, %v873_v8  ;;  %v5144_v10 = vmov 28   ;;  %vm2314_vm8 = vcmask 1041408  }
 0x216   :  { %v889_v58 = vmul.f32 %v3886_v38, %v879_v9  ;;  %v887_v12 = vmul.f32 %v3886_v38, %v3934_v42  ;;  %v919_v18 = vmul.f32 %v3895_v21, %v879_v9 }
 0x21a   :  { %1154 = vperm.xlu2 %2558, %v3825_v63  }
 0x21b   :  { %v895_v29 = vpop.permute.xlu0 %894  ;;  %v3912_v7 = vpop.permute.xlu2 %944 }
 0x21c   :  { %v3914_v27 = vpop.permute.xlu1 %904  ;;  %v3917_v44 = vmul.f32 %v895_v29, %v3910_v37  ;;  %v899_v34 = vmul.f32 %v895_v29, %v879_v9  ;;  %1322 = vrot.lane.b32.xlu0 %v3796_v0, %s2811_s15  ;;  %v897_v41 = vmul.f32 %v895_v29, %v3934_v42 }
 0x21d   :  { %2559 = vset.pattern.permute.xlu1 %v5140_v45  ;;  %2573 = vset.pattern.permute.xlu0 %v2812_v59  ;;  %v908_v31 = vmul.f32 %v3914_v27, %v3910_v37  ;;  %v909_v47 = vmul.f32 %v3914_v27, %v879_v9  ;;  %v2815_v59 = vmov 44  }
 0x21e   :  { %1164 = vperm.xlu1 %2559, %v3825_v63  }
 0x222   :  { %1173 = vrot.lane.b32.xlu2 %v3790_v54, %s2785_s7 }
 0x223   :  { %v928_v20 = vpop.permute.xlu0 %927  ;;  %v3926_v11 = vpop.permute.xlu2 %973  ;;  %2560 = vset.pattern.permute.xlu2 %v5141_v22  ;;  %v888_v22 = vmul.f32 %v3886_v38, %v3910_v37 }
 0x224   :  { %v930_v43 = vsel %vm929_vm9, %v926_v24, %v928_v20  ;;  %v924_v32 = vpop.permute.xlu1 %923  ;;  %1341 = vperm.xlu0 %2573, %v3825_v63  }
 0x225   :  { %v949_v48 = vmul.f32 %v3912_v7, %v930_v43  ;;  %v3939_v55 = vsel %vm929_vm9, %v928_v20, %v924_v32  ;;  %v3956_v60 = vsel %vm929_vm9, %v924_v32, %v926_v24  ;;  %v5145_v20 = vmov 29  }
 0x226   :  { %v947_v50 = vmul.f32 %v3912_v7, %v3939_v55  ;;  %1177 = vrot.lane.b32.xlu1 %v3803_v30, %s2785_s7  ;;  %s2813_s7 = smov 2   ;;  %vm2316_vm9 = vcmask 1043456  }
 0x227   :  { %v3946_v36 = vadd.f32 %v949_v48, %v899_v34  ;;  %2562 = vset.pattern.permute.xlu1 %v5142_v46 }
 0x228   :  { %v3949_v2 = vadd.f32 %v947_v50, %v897_v41 }
 0x22a   :  { %1183 = vperm.xlu2 %2560, %v3825_v63  }
 0x22b   :  { %v955_v15 = vpop.permute.xlu0 %954  ;;  %v978_v62 = vpop.permute.xlu2 %977 }
 0x22c   :  { %v3960_v35 = vmul.f32 %v955_v15, %v3939_v55  ;;  %v958_v40 = vmul.f32 %v955_v15, %v3956_v60  ;;  %v959_v13 = vmul.f32 %v955_v15, %v930_v43  ;;  %v935_v39 = vpop.permute.xlu1 %934  ;;  %1374 = vrot.lane.b32.xlu0 %v3803_v30, %s2813_s7  ;;  %v3982_v23 = vsel %vm979_vm10, %v978_v62, %v3926_v11 }
 0x22d   :  { %v939_v17 = vmul.f32 %v935_v39, %v930_v43  ;;  %2578 = vset.pattern.permute.xlu0 %v2814_v49  ;;  %v937_v28 = vmul.f32 %v935_v39, %v3939_v55  ;;  %v938_v34 = vmul.f32 %v935_v39, %v3956_v60  ;;  %v948_v15 = vmul.f32 %v3912_v7, %v3956_v60 }
 0x22e   :  { %v3966_v33 = vadd.f32 %v958_v40, %v908_v31  ;;  %v3968_v5 = vadd.f32 %v959_v13, %v909_v47  ;;  %1203 = vperm.xlu1 %2562, %v3825_v63  }
 0x22f   :  { %v942_v1 = vadd.f32 %v939_v17, %v889_v58  ;;  %v940_v16 = vadd.f32 %v937_v28, %v887_v12  ;;  %v941_v41 = vadd.f32 %v938_v34, %v888_v22  ;;  %v2816_v58 = vmov 49  }
 0x230   :  { %v951_v7 = vadd.f32 %v948_v15, %v3917_v44  ;;  %v5148_v34 = vmov 33  }
 0x232   :  { %2563 = vset.pattern.permute.xlu2 %v5143_v51 }
 0x233   :  { %1213 = vperm.xlu2 %2563, %v3825_v63   ;;  %v3977_v8 = vpop.permute.xlu2 %1004 }
 0x234   :  { %1401 = vperm.xlu0 %2578, %v3825_v63   ;;  %v985_v61 = vpop.permute.xlu0 %984 }
 0x235   :  { %v987_v25 = vmul.f32 %v985_v61, %v3982_v23  ;;  %v3986_v56 = vpop.permute.xlu1 %964 }
 0x236   :  { %v969_v14 = vmul.f32 %v3986_v56, %v930_v43  ;;  %1222 = vrot.lane.b32.xlu1 %v3790_v54, %s2787_s28  ;;  %v968_v12 = vmul.f32 %v3986_v56, %v3956_v60  ;;  %v2817_v60 = vmov 54  }
 0x237   :  { %v3992_v24 = vadd.f32 %v987_v25, %v940_v16  ;;  %2564 = vset.pattern.permute.xlu1 %v5144_v10  ;;  %v5147_v16 = vmov 34   ;;  %v918_v25 = vmul.f32 %v3895_v21, %v3910_v37 }
 0x238   :  { %v3995_v29 = vadd.f32 %v969_v14, %v919_v18 }
 0x239   :  { %v971_v14 = vadd.f32 %v968_v12, %v918_v25 }
 0x23b   :  { %1224 = vrot.lane.b32.xlu2 %v3796_v0, %s2787_s28  ;;  %v4000_v45 = vpop.permute.xlu2 %1023  ;;  %s2832_s28 = smov 106  }
 0x23c   :  { %2580 = vset.pattern.permute.xlu0 %v2815_v59  ;;  %v1026_v9 = vpop.permute.xlu0 %1025  ;;  %2565 = vset.pattern.permute.xlu2 %v5145_v20 }
 0x23d   :  { %v976_v43 = vpop.permute.xlu1 %975  ;;  %1430 = vperm.xlu0 %2580, %v3825_v63  }
 0x23e   :  { %v4008_v32 = vsel %vm979_vm10, %v976_v43, %v978_v62  ;;  %v4013_v48 = vsel %vm979_vm10, %v3926_v11, %v976_v43  ;;  %1232 = vperm.xlu1 %2564, %v3825_v63   ;;  %v4024_v62 = vsel %vm1029_vm11, %v4000_v45, %v1026_v9 }
 0x23f   :  { %v988_v50 = vmul.f32 %v985_v61, %v4013_v48  ;;  %v989_v46 = vmul.f32 %v985_v61, %v4008_v32  ;;  %v1008_v12 = vmul.f32 %v3977_v8, %v4013_v48 }
 0x241   :  { %v991_v38 = vadd.f32 %v988_v50, %v941_v41  ;;  %v992_v31 = vadd.f32 %v989_v46, %v942_v1  ;;  %v5146_v1 = vmov 31  }
 0x243   :  { %1242 = vperm.xlu2 %2565, %v3825_v63   ;;  %v4027_v11 = vpop.permute.xlu2 %1034 }
 0x244   :  { %v1045_v47 = vpop.permute.xlu0 %1044  ;;  %v1038_v40 = vmul.f32 %v4027_v11, %v4024_v62 }
 0x245   :  { %v1048_v13 = vmul.f32 %v1045_v47, %v4024_v62  ;;  %v995_v39 = vpop.permute.xlu1 %994  ;;  %2585 = vset.pattern.permute.xlu0 %v2816_v58 }
 0x246   :  { %v998_v17 = vmul.f32 %v995_v39, %v4013_v48  ;;  %v4034_v49 = vadd.f32 %v1038_v40, %v991_v38  ;;  %2567 = vset.pattern.permute.xlu1 %v5146_v1  ;;  %1480 = vperm.xlu0 %2585, %v3825_v63   ;;  %v997_v20 = vmul.f32 %v995_v39, %v3982_v23 }
 0x247   :  { %1262 = vperm.xlu1 %2567, %v3825_v63   ;;  %v999_v43 = vmul.f32 %v995_v39, %v4008_v32 }
 0x248   :  { %v1001_v28 = vadd.f32 %v998_v17, %v951_v7 }
 0x249   :  { %v1002_v7 = vadd.f32 %v999_v43, %v3946_v36 }
 0x24a   :  { %v4039_v51 = vadd.f32 %v1048_v13, %v1001_v28  ;;  %v1000_v13 = vadd.f32 %v997_v20, %v3949_v2 }
 0x24b   :  { %1271 = vrot.lane.b32.xlu2 %v3790_v54, %s2784_s1 }
 0x24c   :  { %v4045_v44 = vpop.permute.xlu0 %1077  ;;  %v4047_v61 = vpop.permute.xlu2 %1064  ;;  %2570 = vset.pattern.permute.xlu2 %v5147_v16 }
 0x24d   :  { %v1068_v37 = vmul.f32 %v4047_v61, %v4024_v62 }
 0x24e   :  { %v4052_v18 = vpop.permute.xlu1 %1014  ;;  %1513 = vrot.lane.b32.xlu0 %v3803_v30, %s2786_s27 }
 0x24f   :  { %v1018_v10 = vmul.f32 %v4052_v18, %v4013_v48  ;;  %1273 = vrot.lane.b32.xlu1 %v3796_v0, %s2784_s1  ;;  %2590 = vset.pattern.permute.xlu0 %v2817_v60  ;;  %v1019_v46 = vmul.f32 %v4052_v18, %v4008_v32 }
 0x250   :  { %2569 = vset.pattern.permute.xlu1 %v5148_v34 }
 0x251   :  { %v1021_v59 = vadd.f32 %v1018_v10, %v971_v14  ;;  %v1022_v2 = vadd.f32 %v1019_v46, %v3995_v29  ;;  %v1009_v14 = vmul.f32 %v3977_v8, %v4008_v32  ;;  %v2818_v32 = vmov 56  }
 0x253   :  { %v4065_v22 = vadd.f32 %v1068_v37, %v1021_v59  ;;  %1275 = vrot.lane.b32.xlu2 %v3803_v30, %s2784_s1  ;;  %v1012_v48 = vadd.f32 %v1009_v14, %v3968_v5  ;;  %v5149_v37 = vmov 35   ;;  %v1007_v5 = vmul.f32 %v3977_v8, %v3982_v23  ;;  %s2820_s1 = smov 110  }
 0x254   :  { %v1105_v41 = vpop.permute.xlu0 %1104  ;;  %v1076_v50 = vpop.permute.xlu2 %1075 }
 0x255   :  { %v4075_v38 = vsel %vm1079_vm12, %v1076_v50, %v4045_v44 }
 0x256   :  { %v1028_v15 = vpop.permute.xlu1 %1027  ;;  %v1109_v40 = vmul.f32 %v1105_v41, %v4075_v38  ;;  %1539 = vperm.xlu0 %2590, %v3825_v63  }
 0x257   :  { %v1030_v58 = vsel %vm1029_vm11, %v1026_v9, %v1028_v15  ;;  %v4084_v39 = vsel %vm1029_vm11, %v1028_v15, %v4000_v45  ;;  %1291 = vperm.xlu1 %2569, %v3825_v63  }
 0x258   :  { %v1039_v17 = vmul.f32 %v4027_v11, %v1030_v58  ;;  %v1047_v1 = vmul.f32 %v1045_v47, %v4084_v39  ;;  %v1049_v28 = vmul.f32 %v1045_v47, %v1030_v58  ;;  %v1069_v9 = vmul.f32 %v4047_v61, %v1030_v58 }
 0x259   :  { %v1011_v47 = vadd.f32 %v1008_v12, %v3966_v33  ;;  %v907_v33 = vmul.f32 %v3914_v27, %v3934_v42 }
 0x25a   :  { %v1042_v45 = vadd.f32 %v1039_v17, %v992_v31  ;;  %v1050_v16 = vadd.f32 %v1047_v1, %v1000_v13  ;;  %v1052_v25 = vadd.f32 %v1049_v28, %v1002_v7  ;;  %v4097_v10 = vadd.f32 %v1069_v9, %v1022_v2 }
 0x25b   :  { %1301 = vperm.xlu2 %2570, %v3825_v63   ;;  %v960_v46 = vadd.f32 %v3960_v35, %v907_v33 }
 0x25c   :  { %v4100_v36 = vpop.permute.xlu2 %1094 }
 0x25d   :  { %v1099_v29 = vmul.f32 %v4100_v36, %v4075_v38  ;;  %v1010_v7 = vadd.f32 %v1007_v5, %v960_v46  ;;  %v1135_v2 = vpop.permute.xlu0 %1134 }
 0x25e   :  { %v1055_v60 = vpop.permute.xlu1 %1054  ;;  %2592 = vset.pattern.permute.xlu0 %v2818_v32 }
 0x25f   :  { %v1058_v31 = vmul.f32 %v1055_v60, %v4024_v62  ;;  %v1059_v34 = vmul.f32 %v1055_v60, %v1030_v58  ;;  %v4107_v59 = vadd.f32 %v1099_v29, %v1052_v25  ;;  %2571 = vset.pattern.permute.xlu1 %v5149_v37  ;;  %1569 = vperm.xlu0 %2592, %v3825_v63   ;;  %v2819_v58 = vmov 36  }
 0x260   :  { %1311 = vperm.xlu1 %2571, %v3825_v63   ;;  %v1057_v15 = vmul.f32 %v1055_v60, %v4084_v39  ;;  %v917_v37 = vmul.f32 %v3895_v21, %v3934_v42 }
 0x261   :  { %v1061_v20 = vadd.f32 %v1058_v31, %v1011_v47  ;;  %v1062_v43 = vadd.f32 %v1059_v34, %v1012_v48  ;;  %v967_v34 = vmul.f32 %v3986_v56, %v3939_v55  ;;  %v1067_v55 = vmul.f32 %v4047_v61, %v4084_v39 }
 0x263   :  { %1320 = vrot.lane.b32.xlu2 %v3790_v54, %s2811_s15  ;;  %v4118_v62 = vadd.f32 %v1109_v40, %v1062_v43  ;;  %v1060_v40 = vadd.f32 %v1057_v15, %v1010_v7  ;;  %v2823_v43 = vmov 39   ;;  %v970_v5 = vadd.f32 %v967_v34, %v917_v37 }
 0x264   :  { %v4122_v13 = vpop.permute.xlu2 %1123  ;;  %2572 = vset.pattern.permute.xlu2 %v2819_v58  ;;  %v2828_v34 = vmov 43  }
 0x266   :  { %v1074_v17 = vpop.permute.xlu1 %1073 }
 0x267   :  { %v4126_v27 = vsel %vm1079_vm12, %v1074_v17, %v1076_v50  ;;  %v1082_v8 = vsel %vm1079_vm12, %v4045_v44, %v1074_v17  ;;  %1610 = vrot.lane.b32.xlu0 %v3796_v0, %s2820_s1  ;;  %v2821_v50 = vmov 61   ;;  %v2822_v44 = vmov 38  }
 0x268   :  { %v1097_v1 = vmul.f32 %v4100_v36, %v1082_v8  ;;  %v1107_v35 = vmul.f32 %v1105_v41, %v1082_v8  ;;  %v1108_v28 = vmul.f32 %v1105_v41, %v4126_v27  ;;  %1324 = vrot.lane.b32.xlu1 %v3803_v30, %s2811_s15  ;;  %2597 = vset.pattern.permute.xlu0 %v2821_v50 }
 0x269   :  { %2574 = vset.pattern.permute.xlu1 %v2822_v44  ;;  %v1037_v41 = vmul.f32 %v4027_v11, %v4084_v39  ;;  %v2825_v39 = vmov 40  }
 0x26a   :  { %v4137_v9 = vadd.f32 %v1097_v1, %v1050_v16  ;;  %v4140_v12 = vadd.f32 %v1107_v35, %v1060_v40  ;;  %v4142_v25 = vadd.f32 %v1108_v28, %v1061_v20  ;;  %v4163_v20 = vpop.permute.xlu0 %1175 }
 0x26b   :  { %1331 = vperm.xlu2 %2572, %v3825_v63   ;;  %v1040_v47 = vadd.f32 %v1037_v41, %v3992_v24  ;;  %v1017_v24 = vmul.f32 %v4052_v18, %v3982_v23  ;;  %v2824_v18 = vmov 66  }
 0x26c   :  { %v1128_v14 = vpop.permute.xlu2 %1127 }
 0x26d   :  { %v4150_v29 = vsel %vm1129_vm13, %v1128_v14, %v4122_v13 }
 0x26e   :  { %v1085_v16 = vpop.permute.xlu1 %1084  ;;  %v1137_v31 = vmul.f32 %v1135_v2, %v4150_v29 }
 0x26f   :  { %v1087_v60 = vmul.f32 %v1085_v16, %v1082_v8  ;;  %v1089_v48 = vmul.f32 %v1085_v16, %v4075_v38  ;;  %1629 = vperm.xlu0 %2597, %v3825_v63   ;;  %v1088_v7 = vmul.f32 %v1085_v16, %v4126_v27 }
 0x270   :  { %1351 = vperm.xlu1 %2574, %v3825_v63  }
 0x271   :  { %v1090_v11 = vadd.f32 %v1087_v60, %v1040_v47  ;;  %v1092_v32 = vadd.f32 %v1089_v48, %v1042_v45  ;;  %v1020_v45 = vadd.f32 %v1017_v24, %v970_v5  ;;  %v1091_v28 = vadd.f32 %v1088_v7, %v4034_v49 }
 0x272   :  { %v1098_v47 = vmul.f32 %v4100_v36, %v4126_v27  ;;  %v2829_v24 = vmov 46  }
 0x273   :  { %2575 = vset.pattern.permute.xlu2 %v2823_v43  ;;  %v4165_v33 = vadd.f32 %v1137_v31, %v1090_v11  ;;  %v1070_v21 = vadd.f32 %v1067_v55, %v1020_v45 }
 0x274   :  { %1361 = vperm.xlu2 %2575, %v3825_v63   ;;  %v4170_v56 = vpop.permute.xlu2 %1154  ;;  %v1101_v49 = vadd.f32 %v1098_v47, %v4039_v51 }
 0x277   :  { %v1115_v46 = vpop.permute.xlu1 %1114  ;;  %1662 = vrot.lane.b32.xlu0 %v3803_v30, %s2794_s9 }
 0x278   :  { %v1117_v42 = vmul.f32 %v1115_v46, %v1082_v8  ;;  %v1119_v23 = vmul.f32 %v1115_v46, %v4075_v38  ;;  %1370 = vrot.lane.b32.xlu1 %v3790_v54, %s2813_s7  ;;  %2602 = vset.pattern.permute.xlu0 %v2824_v18  ;;  %v4186_v38 = vpop.permute.xlu0 %1193  ;;  %v2826_v8 = vmov 41   ;;  %v1118_v37 = vmul.f32 %v1115_v46, %v4126_v27 }
 0x279   :  { %2576 = vset.pattern.permute.xlu1 %v2825_v39 }
 0x27a   :  { %v4177_v15 = vadd.f32 %v1117_v42, %v1070_v21  ;;  %v4180_v61 = vadd.f32 %v1119_v23, %v4097_v10  ;;  %v1121_v55 = vadd.f32 %v1118_v37, %v4065_v22  ;;  %v2830_v21 = vmov 73  }
 0x27b   :  { %v2831_v23 = vmov 45  }
 0x27c   :  { %1372 = vrot.lane.b32.xlu2 %v3796_v0, %s2813_s7  ;;  %v4184_v58 = vpop.permute.xlu2 %1173 }
 0x27d   :  { %v4193_v17 = vsel %vm220_vm3, %v4184_v58, %v4163_v20  ;;  %2577 = vset.pattern.permute.xlu2 %v2826_v8 }
 0x27e   :  { %v1197_v10 = vmul.f32 %v4186_v38, %v4193_v17 }
 0x27f   :  { %v1126_v40 = vpop.permute.xlu1 %1125  ;;  %1688 = vperm.xlu0 %2602, %v3825_v63  }
 0x280   :  { %v1130_v1 = vsel %vm1129_vm13, %v1126_v40, %v1128_v14  ;;  %v1131_v35 = vsel %vm1129_vm13, %v4122_v13, %v1126_v40  ;;  %1381 = vperm.xlu1 %2576, %v3825_v63   ;;  %v4216_v36 = vpop.permute.xlu0 %1226 }
 0x281   :  { %v1138_v50 = vmul.f32 %v1135_v2, %v1131_v35  ;;  %v1139_v44 = vmul.f32 %v1135_v2, %v1130_v1  ;;  %v2827_v2 = vmov 68  }
 0x283   :  { %v1141_v41 = vadd.f32 %v1138_v50, %v1091_v28  ;;  %v4205_v16 = vadd.f32 %v1139_v44, %v1092_v32  ;;  %v1157_v28 = vmul.f32 %v4170_v56, %v4150_v29  ;;  %v1158_v50 = vmul.f32 %v4170_v56, %v1131_v35 }
 0x284   :  { %1391 = vperm.xlu2 %2577, %v3825_v63   ;;  %v1184_v14 = vpop.permute.xlu2 %1183  ;;  %v1159_v44 = vmul.f32 %v4170_v56, %v1130_v1 }
 0x285   :  { %v1187_v60 = vmul.f32 %v1184_v14, %v4193_v17 }
 0x287   :  { %v4211_v13 = vadd.f32 %v1187_v60, %v1141_v41  ;;  %v1145_v48 = vpop.permute.xlu1 %1144  ;;  %2604 = vset.pattern.permute.xlu0 %v2827_v2 }
 0x288   :  { %v1148_v31 = vmul.f32 %v1145_v48, %v1131_v35  ;;  %2579 = vset.pattern.permute.xlu1 %v2828_v34  ;;  %1717 = vperm.xlu0 %2604, %v3825_v63   ;;  %v1147_v27 = vmul.f32 %v1145_v48, %v4150_v29  ;;  %v1149_v46 = vmul.f32 %v1145_v48, %v1130_v1  ;;  %v4234_v39 = vpop.permute.xlu0 %1252 }
 0x289   :  { %1411 = vperm.xlu1 %2579, %v3825_v63  }
 0x28a   :  { %v1151_v11 = vadd.f32 %v1148_v31, %v1101_v49  ;;  %v1150_v47 = vadd.f32 %v1147_v27, %v4137_v9  ;;  %v1152_v60 = vadd.f32 %v1149_v46, %v4107_v59 }
 0x28c   :  { %1420 = vrot.lane.b32.xlu2 %v3790_v54, %s2790_s29  ;;  %v4220_v32 = vadd.f32 %v1197_v10, %v1151_v11 }
 0x28d   :  { %v1214_v51 = vpop.permute.xlu2 %1213  ;;  %2582 = vset.pattern.permute.xlu2 %v2829_v24 }
 0x28e   :  { %v1217_v43 = vmul.f32 %v1214_v51, %v4193_v17 }
 0x290   :  { %v1165_v5 = vpop.permute.xlu1 %1164  ;;  %1758 = vrot.lane.b32.xlu0 %v3796_v0, %s2795_s10 }
 0x291   :  { %v1168_v45 = vmul.f32 %v1165_v5, %v1131_v35  ;;  %1422 = vrot.lane.b32.xlu1 %v3796_v0, %s2790_s29  ;;  %2609 = vset.pattern.permute.xlu0 %v2830_v21  ;;  %v1167_v8 = vmul.f32 %v1165_v5, %v4150_v29  ;;  %v1169_v10 = vmul.f32 %v1165_v5, %v1130_v1  ;;  %v2834_v21 = vmov 78  }
 0x292   :  { %2581 = vset.pattern.permute.xlu1 %v2831_v23  ;;  %v1162_v5 = vadd.f32 %v1159_v44, %v4118_v62 }
 0x293   :  { %v1171_v42 = vadd.f32 %v1168_v45, %v1121_v55  ;;  %v1170_v59 = vadd.f32 %v1167_v8, %v4177_v15  ;;  %v1172_v9 = vadd.f32 %v1169_v10, %v4180_v61  ;;  %v2833_v45 = vmov 47   ;;  %v1282_v10 = vpop.permute.xlu0 %1281 }
 0x294   :  { %1424 = vrot.lane.b32.xlu2 %v3803_v30, %s2790_s29  ;;  %s2841_s29 = smov 89  }
 0x295   :  { %v1225_v18 = vpop.permute.xlu2 %1224  ;;  %v4232_v22 = vadd.f32 %v1217_v43, %v1171_v42  ;;  %v1161_v43 = vadd.f32 %v1158_v50, %v4142_v25 }
 0x296   :  { %v4239_v7 = vsel %vm271_vm2, %v1225_v18, %v4216_v36 }
 0x297   :  { %v1257_v40 = vmul.f32 %v4234_v39, %v4239_v7 }
 0x298   :  { %v1178_v41 = vpop.permute.xlu1 %1177  ;;  %1776 = vperm.xlu0 %2609, %v3825_v63  }
 0x299   :  { %v1179_v48 = vsel %vm220_vm3, %v4163_v20, %v1178_v41  ;;  %v1181_v49 = vsel %vm220_vm3, %v1178_v41, %v4184_v58  ;;  %1440 = vperm.xlu1 %2581, %v3825_v63   ;;  %v2836_v41 = vmov 50   ;;  %vm1861_vm3 = vcmp.lt.s32.totalorder %v3167_v19, 90 }
 0x29a   :  { %v1186_v29 = vmul.f32 %v1184_v14, %v1181_v49  ;;  %v1188_v31 = vmul.f32 %v1184_v14, %v1179_v48  ;;  %v1196_v35 = vmul.f32 %v4186_v38, %v1181_v49  ;;  %v1198_v56 = vmul.f32 %v4186_v38, %v1179_v48 }
 0x29b   :  { %v1216_v1 = vmul.f32 %v1214_v51, %v1181_v49  ;;  %v1218_v20 = vmul.f32 %v1214_v51, %v1179_v48  ;;  %v1160_v51 = vadd.f32 %v1157_v28, %v4140_v12  ;;  %v2835_v12 = vmov 48  }
 0x29c   :  { %v1199_v2 = vadd.f32 %v1196_v35, %v1150_v47  ;;  %1450 = vperm.xlu2 %2582, %v3825_v63   ;;  %v1201_v58 = vadd.f32 %v1198_v56, %v1152_v60  ;;  %v1189_v34 = vadd.f32 %v1186_v29, %v4165_v33  ;;  %v1191_v14 = vadd.f32 %v1188_v31, %v4205_v16 }
 0x29d   :  { %v1243_v11 = vpop.permute.xlu2 %1242  ;;  %v4265_v37 = vadd.f32 %v1216_v1, %v1170_v59  ;;  %v4267_v38 = vadd.f32 %v1218_v20, %v1172_v9  ;;  %v2838_v9 = vmov 80  }
 0x29e   :  { %v1247_v24 = vmul.f32 %v1243_v11, %v4239_v7 }
 0x2a0   :  { %v4270_v15 = vadd.f32 %v1247_v24, %v1201_v58  ;;  %v1204_v61 = vpop.permute.xlu1 %1203  ;;  %1809 = vrot.lane.b32.xlu0 %v3803_v30, %s2832_s28  ;;  %v2839_v24 = vmov 52  }
 0x2a1   :  { %v1206_v55 = vmul.f32 %v1204_v61, %v1181_v49  ;;  %v1207_v33 = vmul.f32 %v1204_v61, %v4193_v17  ;;  %v1208_v16 = vmul.f32 %v1204_v61, %v1179_v48  ;;  %2583 = vset.pattern.permute.xlu1 %v2833_v45  ;;  %2614 = vset.pattern.permute.xlu0 %v2834_v21  ;;  %v2837_v48 = vmov 51  }
 0x2a2   :  { %1460 = vperm.xlu1 %2583, %v3825_v63  }
 0x2a3   :  { %v1209_v42 = vadd.f32 %v1206_v55, %v1160_v51  ;;  %v1210_v23 = vadd.f32 %v1207_v33, %v1161_v43  ;;  %v1211_v27 = vadd.f32 %v1208_v16, %v1162_v5  ;;  %v2840_v51 = vmov 53  }
 0x2a4   :  { %2584 = vset.pattern.permute.xlu2 %v2835_v12  ;;  %v2842_v55 = vmov 85  }
 0x2a5   :  { %v4279_v62 = vadd.f32 %v1257_v40, %v1211_v27  ;;  %1470 = vperm.xlu2 %2584, %v3825_v63   ;;  %v4282_v25 = vpop.permute.xlu2 %1271 }
 0x2a8   :  { %v1223_v17 = vpop.permute.xlu1 %1222  ;;  %1836 = vperm.xlu0 %2614, %v3825_v63  }
 0x2a9   :  { %v1229_v46 = vsel %vm271_vm2, %v1223_v17, %v1225_v18  ;;  %v1230_v8 = vsel %vm271_vm2, %v4216_v36, %v1223_v17  ;;  %vm1811_vm2 = vcmp.lt.s32.totalorder %v3167_v19, 106 }
 0x2aa   :  { %v1245_v28 = vmul.f32 %v1243_v11, %v1230_v8  ;;  %v1246_v50 = vmul.f32 %v1243_v11, %v1229_v46  ;;  %v1255_v40 = vmul.f32 %v4234_v39, %v1230_v8  ;;  %v1256_v44 = vmul.f32 %v4234_v39, %v1229_v46  ;;  %2586 = vset.pattern.permute.xlu1 %v2836_v41 }
 0x2ab   :  { %1490 = vperm.xlu1 %2586, %v3825_v63  }
 0x2ac   :  { %v4292_v47 = vadd.f32 %v1256_v44, %v1210_v23  ;;  %v1258_v18 = vadd.f32 %v1255_v40, %v1209_v42  ;;  %v4295_v60 = vadd.f32 %v1245_v28, %v1199_v2  ;;  %v4298_v36 = vadd.f32 %v1246_v50, %v4220_v32  ;;  %v4310_v2 = vpop.permute.xlu0 %1322 }
 0x2ad   :  { %2587 = vset.pattern.permute.xlu2 %v2837_v48  ;;  %v1276_v49 = vpop.permute.xlu2 %1275 }
 0x2ae   :  { %v4303_v29 = vsel %vm321_vm1, %v1276_v49, %v4282_v25  ;;  %1500 = vperm.xlu2 %2587, %v3825_v63  }
 0x2af   :  { %v1284_v39 = vmul.f32 %v1282_v10, %v4303_v29 }
 0x2b0   :  { %v1233_v31 = vpop.permute.xlu1 %1232  ;;  %2616 = vset.pattern.permute.xlu0 %v2838_v9  ;;  %v2848_v9 = vmov 57  }
 0x2b1   :  { %v1235_v35 = vmul.f32 %v1233_v31, %v1230_v8  ;;  %v1236_v56 = vmul.f32 %v1233_v31, %v1229_v46  ;;  %v1237_v59 = vmul.f32 %v1233_v31, %v4239_v7  ;;  %1866 = vperm.xlu0 %2616, %v3825_v63  }
 0x2b3   :  { %v1238_v32 = vadd.f32 %v1235_v35, %v1189_v34  ;;  %v1239_v1 = vadd.f32 %v1236_v56, %v4211_v13  ;;  %v1240_v20 = vadd.f32 %v1237_v59, %v1191_v14  ;;  %1509 = vrot.lane.b32.xlu1 %v3790_v54, %s2786_s27 }
 0x2b4   :  { %2588 = vset.pattern.permute.xlu1 %v2839_v24  ;;  %v4331_v42 = vpop.permute.xlu0 %1341 }
 0x2b5   :  { %v4314_v58 = vadd.f32 %v1284_v39, %v1238_v32  ;;  %v1302_v11 = vpop.permute.xlu2 %1301 }
 0x2b6   :  { %v1304_v61 = vmul.f32 %v1302_v11, %v4303_v29  ;;  %1511 = vrot.lane.b32.xlu2 %v3796_v0, %s2786_s27  ;;  %s2844_s27 = smov 126  }
 0x2b7   :  { %2589 = vset.pattern.permute.xlu2 %v2840_v51 }
 0x2b8   :  { %v4319_v34 = vadd.f32 %v1304_v61, %v1258_v18 }
 0x2b9   :  { %v1263_v13 = vpop.permute.xlu1 %1262  ;;  %1907 = vrot.lane.b32.xlu0 %v3796_v0, %s2841_s29 }
 0x2ba   :  { %v1265_v14 = vmul.f32 %v1263_v13, %v1230_v8  ;;  %v1266_v43 = vmul.f32 %v1263_v13, %v1229_v46  ;;  %v1267_v5 = vmul.f32 %v1263_v13, %v4239_v7  ;;  %2621 = vset.pattern.permute.xlu0 %v2842_v55  ;;  %v2843_v8 = vmov 55  }
 0x2bb   :  { %1519 = vperm.xlu1 %2588, %v3825_v63  }
 0x2bc   :  { %v1268_v33 = vadd.f32 %v1265_v14, %v4265_v37  ;;  %v1269_v16 = vadd.f32 %v1266_v43, %v4232_v22  ;;  %v1270_v45 = vadd.f32 %v1267_v5, %v4267_v38  ;;  %v4371_v32 = vpop.permute.xlu0 %1374 }
 0x2bd   :  { %v4329_v21 = vpop.permute.xlu2 %1320 }
 0x2be   :  { %v4337_v7 = vsel %vm1326_vm14, %v4329_v21, %v4310_v2  ;;  %1529 = vperm.xlu2 %2589, %v3825_v63  }
 0x2bf   :  { %v1345_v37 = vmul.f32 %v4331_v42, %v4337_v7 }
 0x2c1   :  { %v1274_v23 = vpop.permute.xlu1 %1273  ;;  %1926 = vperm.xlu0 %2621, %v3825_v63  }
 0x2c2   :  { %v1277_v22 = vsel %vm321_vm1, %v1274_v23, %v1276_v49  ;;  %v1278_v38 = vsel %vm321_vm1, %v4282_v25, %v1274_v23  ;;  %vm1564_vm1 = vcmp.lt.s32.totalorder %v3167_v19, 126 }
 0x2c3   :  { %v1285_v27 = vmul.f32 %v1282_v10, %v1278_v38  ;;  %v1286_v12 = vmul.f32 %v1282_v10, %v1277_v22  ;;  %v1305_v17 = vmul.f32 %v1302_v11, %v1278_v38  ;;  %v1306_v46 = vmul.f32 %v1302_v11, %v1277_v22  ;;  %2591 = vset.pattern.permute.xlu1 %v2843_v8  ;;  %v4378_v11 = vld [vmem:[#allocation6] sm:$0xff] }
 0x2c4   :  { %1549 = vperm.xlu1 %2591, %v3825_v63   ;;  %v2845_v10 = vmov 58   ;;  %v1402_v14 = vpop.permute.xlu0 %1401  ;;  %v2851_v8 = vmov 60  }
 0x2c5   :  { %v4348_v28 = vadd.f32 %v1286_v12, %v1240_v20  ;;  %v1288_v50 = vadd.f32 %v1285_v27, %v1239_v1  ;;  %v1332_v40 = vpop.permute.xlu2 %1331  ;;  %v4352_v44 = vadd.f32 %v1305_v17, %v4292_v47  ;;  %v4355_v41 = vadd.f32 %v1306_v46, %v4279_v62 }
 0x2c6   :  { %v1335_v25 = vmul.f32 %v1332_v40, %v4337_v7  ;;  %1558 = vrot.lane.b32.xlu2 %v3790_v54, %s2844_s27  ;;  %v2847_v62 = vmov 92  }
 0x2c7   :  { %2594 = vset.pattern.permute.xlu2 %v2845_v10 }
 0x2c8   :  { %v4359_v18 = vadd.f32 %v1335_v25, %v1288_v50 }
 0x2c9   :  { %v1292_v48 = vpop.permute.xlu1 %1291  ;;  %1959 = vrot.lane.b32.xlu0 %v3803_v30, %s2846_s16 }
 0x2ca   :  { %v1294_v63 = vmul.f32 %v1292_v48, %v4303_v29  ;;  %v1295_v49 = vmul.f32 %v1292_v48, %v1278_v38  ;;  %v1296_v39 = vmul.f32 %v1292_v48, %v1277_v22  ;;  %2626 = vset.pattern.permute.xlu0 %v2847_v62 }
 0x2cc   :  { %v1297_v47 = vadd.f32 %v1294_v63, %v4295_v60  ;;  %v1298_v31 = vadd.f32 %v1295_v49, %v4298_v36  ;;  %v1299_v35 = vadd.f32 %v1296_v39, %v4270_v15  ;;  %1560 = vrot.lane.b32.xlu1 %v3796_v0, %s2844_s27 }
 0x2cd   :  { %2593 = vset.pattern.permute.xlu1 %v2848_v9 }
 0x2ce   :  { %v4368_v56 = vadd.f32 %v1345_v37, %v1298_v31  ;;  %1562 = vrot.lane.b32.xlu2 %v3803_v30, %s2844_s27  ;;  %v1362_v59 = vpop.permute.xlu2 %1361  ;;  %v2853_v31 = vmov 62  }
 0x2cf   :  { %v1365_v1 = vmul.f32 %v1362_v59, %v4337_v7 }
 0x2d1   :  { %2007 = vrot.lane.b32.xlu0 %v3796_v0, %s2849_s17 }
 0x2d2   :  { %v1312_v60 = vpop.permute.xlu1 %1311 }
 0x2d3   :  { %v1314_v15 = vmul.f32 %v1312_v60, %v4303_v29  ;;  %v1315_v36 = vmul.f32 %v1312_v60, %v1278_v38  ;;  %v1316_v20 = vmul.f32 %v1312_v60, %v1277_v22  ;;  %v2850_v38 = vmov 59  }
 0x2d4   :  { %1579 = vperm.xlu1 %2593, %v4378_v11   ;;  %v2854_v60 = vmov 63  }
 0x2d5   :  { %v1317_v24 = vadd.f32 %v1314_v15, %v1268_v33  ;;  %v1318_v61 = vadd.f32 %v1315_v36, %v1269_v16  ;;  %v1319_v51 = vadd.f32 %v1316_v20, %v1270_v45 }
 0x2d6   :  { %1589 = vperm.xlu2 %2594, %v4378_v11   ;;  %v1373_v13 = vpop.permute.xlu2 %1372 }
 0x2d7   :  { %v4385_v43 = vsel %vm1376_vm15, %v1373_v13, %v4371_v32  ;;  %v4388_v5 = vadd.f32 %v1365_v1, %v1318_v61 }
 0x2d8   :  { %v1406_v29 = vmul.f32 %v1402_v14, %v4385_v43 }
 0x2d9   :  { %2016 = vperm.xlu0 %2626, %v4378_v11  }
 0x2da   :  { %v1325_v55 = vpop.permute.xlu1 %1324 }
 0x2db   :  { %v1327_v33 = vsel %vm1326_vm14, %v4310_v2, %v1325_v55  ;;  %v1329_v16 = vsel %vm1326_vm14, %v1325_v55, %v4329_v21  ;;  %v1431_v55 = vpop.permute.xlu0 %1430 }
 0x2dc   :  { %v1334_v45 = vmul.f32 %v1332_v40, %v1329_v16  ;;  %v1336_v37 = vmul.f32 %v1332_v40, %v1327_v33  ;;  %v1344_v23 = vmul.f32 %v4331_v42, %v1329_v16  ;;  %v1346_v22 = vmul.f32 %v4331_v42, %v1327_v33  ;;  %2595 = vset.pattern.permute.xlu1 %v2850_v38 }
 0x2dd   :  { %v1364_v27 = vmul.f32 %v1362_v59, %v1329_v16  ;;  %v1366_v12 = vmul.f32 %v1362_v59, %v1327_v33  ;;  %1599 = vperm.xlu1 %2595, %v4378_v11   ;;  %v2856_v38 = vmov 65  }
 0x2de   :  { %1608 = vrot.lane.b32.xlu2 %v3790_v54, %s2820_s1  ;;  %v1392_v2 = vpop.permute.xlu2 %1391  ;;  %v1347_v17 = vadd.f32 %v1344_v23, %v1297_v47  ;;  %v1349_v46 = vadd.f32 %v1346_v22, %v1299_v35  ;;  %v1337_v50 = vadd.f32 %v1334_v45, %v4314_v58  ;;  %v1339_v42 = vadd.f32 %v1336_v37, %v4348_v28 }
 0x2df   :  { %v1396_v21 = vmul.f32 %v1392_v2, %v4385_v43  ;;  %2596 = vset.pattern.permute.xlu2 %v2851_v8  ;;  %v1367_v40 = vadd.f32 %v1364_v27, %v1317_v24  ;;  %v1369_v25 = vadd.f32 %v1366_v12, %v1319_v51 }
 0x2e1   :  { %v4405_v10 = vadd.f32 %v1396_v21, %v1349_v46  ;;  %2055 = vrot.lane.b32.xlu0 %v3790_v54, %s2852_s6 }
 0x2e2   :  { %v1352_v48 = vpop.permute.xlu1 %1351 }
 0x2e3   :  { %v1354_v63 = vmul.f32 %v1352_v48, %v1329_v16  ;;  %v1355_v49 = vmul.f32 %v1352_v48, %v4337_v7  ;;  %v1356_v39 = vmul.f32 %v1352_v48, %v1327_v33 }
 0x2e5   :  { %v1357_v62 = vadd.f32 %v1354_v63, %v4319_v34  ;;  %v1358_v47 = vadd.f32 %v1355_v49, %v4352_v44  ;;  %v1359_v58 = vadd.f32 %v1356_v39, %v4355_v41  ;;  %1612 = vrot.lane.b32.xlu1 %v3803_v30, %s2820_s1 }
 0x2e6   :  { %1619 = vperm.xlu2 %2596, %v4378_v11   ;;  %v1421_v28 = vpop.permute.xlu2 %1420  ;;  %2598 = vset.pattern.permute.xlu1 %v2853_v31 }
 0x2e7   :  { %v4416_v35 = vadd.f32 %v1406_v29, %v1359_v58 }
 0x2ea   :  { %v1371_v59 = vpop.permute.xlu1 %1370 }
 0x2eb   :  { %v1378_v7 = vsel %vm1376_vm15, %v1371_v59, %v1373_v13  ;;  %v1379_v34 = vsel %vm1376_vm15, %v4371_v32, %v1371_v59 }
 0x2ec   :  { %v1394_v44 = vmul.f32 %v1392_v2, %v1379_v34  ;;  %v1395_v41 = vmul.f32 %v1392_v2, %v1378_v7  ;;  %v1404_v9 = vmul.f32 %v1402_v14, %v1379_v34  ;;  %v1405_v1 = vmul.f32 %v1402_v14, %v1378_v7 }
 0x2ed   :  { %1639 = vperm.xlu1 %2598, %v4378_v11  }
 0x2ee   :  { %2599 = vset.pattern.permute.xlu2 %v2854_v60  ;;  %v1425_v15 = vpop.permute.xlu2 %1424  ;;  %v1408_v36 = vadd.f32 %v1405_v1, %v1358_v47  ;;  %v1407_v24 = vadd.f32 %v1404_v9, %v1357_v62  ;;  %v4429_v61 = vadd.f32 %v1394_v44, %v1347_v17  ;;  %v4432_v32 = vadd.f32 %v1395_v41, %v4368_v56  ;;  %v1481_v60 = vpop.permute.xlu0 %1480 }
 0x2ef   :  { %v4426_v20 = vsel %vm371_vm4, %v1425_v15, %v1421_v28  ;;  %1649 = vperm.xlu2 %2599, %v4378_v11   ;;  %v2855_v56 = vmov 64   ;;  %v2858_v44 = vmov 70  }
 0x2f0   :  { %v1433_v33 = vmul.f32 %v1431_v55, %v4426_v20 }
 0x2f2   :  { %v1382_v51 = vpop.permute.xlu1 %1381 }
 0x2f3   :  { %v1384_v13 = vmul.f32 %v1382_v51, %v1379_v34  ;;  %v1385_v14 = vmul.f32 %v1382_v51, %v1378_v7  ;;  %v1386_v29 = vmul.f32 %v1382_v51, %v4385_v43 }
 0x2f5   :  { %v1387_v16 = vadd.f32 %v1384_v13, %v1337_v50  ;;  %v1388_v45 = vadd.f32 %v1385_v14, %v4359_v18  ;;  %v1389_v37 = vadd.f32 %v1386_v29, %v1339_v42  ;;  %1658 = vrot.lane.b32.xlu1 %v3790_v54, %s2794_s9  ;;  %v1483_v14 = vmul.f32 %v1481_v60, %v3790_v54 }
 0x2f6   :  { %v1451_v23 = vpop.permute.xlu2 %1450  ;;  %2600 = vset.pattern.permute.xlu1 %v2855_v56  ;;  %v1484_v29 = vmul.f32 %v1481_v60, %v3796_v0 }
 0x2f7   :  { %v1453_v22 = vmul.f32 %v1451_v23, %v4426_v20  ;;  %1660 = vrot.lane.b32.xlu2 %v3796_v0, %s2794_s9  ;;  %v1436_v27 = vadd.f32 %v1433_v33, %v1387_v16  ;;  %s2363_s9 = sld [smem:[#allocation9 + $0xb]] }
 0x2f8   :  { %2601 = vset.pattern.permute.xlu2 %v2856_v38  ;;  %v1514_v38 = vpop.permute.xlu0 %1513 }
 0x2f9   :  { %v4442_v12 = vadd.f32 %v1453_v22, %v1407_v24 }
 0x2fb   :  { %v1412_v2 = vpop.permute.xlu1 %1411 }
 0x2fc   :  { %v1414_v17 = vmul.f32 %v1412_v2, %v1379_v34  ;;  %v1415_v18 = vmul.f32 %v1412_v2, %v1378_v7  ;;  %v1416_v46 = vmul.f32 %v1412_v2, %v4385_v43 }
 0x2fd   :  { %1668 = vperm.xlu1 %2600, %v4378_v11  }
 0x2fe   :  { %v1417_v21 = vadd.f32 %v1414_v17, %v1367_v40  ;;  %v1418_v8 = vadd.f32 %v1415_v18, %v4388_v5  ;;  %v1419_v50 = vadd.f32 %v1416_v46, %v1369_v25  ;;  %v2857_v5 = vmov 67  }
 0x2ff   :  { %1678 = vperm.xlu2 %2601, %v4378_v11   ;;  %v1471_v42 = vpop.permute.xlu2 %1470 }
 0x300   :  { %v1473_v48 = vmul.f32 %v1471_v42, %v3790_v54  ;;  %v1474_v25 = vmul.f32 %v1471_v42, %v3796_v0  ;;  %v1475_v31 = vmul.f32 %v1471_v42, %v3803_v30 }
 0x302   :  { %v4449_v63 = vadd.f32 %v1473_v48, %v1436_v27 }
 0x303   :  { %v1423_v49 = vpop.permute.xlu1 %1422 }
 0x304   :  { %v1426_v39 = vsel %vm371_vm4, %v1423_v49, %v1425_v15  ;;  %v1427_v43 = vsel %vm371_vm4, %v1421_v28, %v1423_v49  ;;  %vm1911_vm4 = vcmp.lt.s32.totalorder %v3167_v19, 89 }
 0x305   :  { %v1434_v62 = vmul.f32 %v1431_v55, %v1427_v43  ;;  %v1435_v47 = vmul.f32 %v1431_v55, %v1426_v39  ;;  %v1454_v40 = vmul.f32 %v1451_v23, %v1427_v43  ;;  %v1455_v58 = vmul.f32 %v1451_v23, %v1426_v39  ;;  %2603 = vset.pattern.permute.xlu1 %v2857_v5 }
 0x306   :  { %1698 = vperm.xlu1 %2603, %v4378_v11   ;;  %v1485_v55 = vmul.f32 %v1481_v60, %v3803_v30 }
 0x307   :  { %1707 = vrot.lane.b32.xlu2 %v3790_v54, %s2792_s30  ;;  %v1437_v59 = vadd.f32 %v1434_v62, %v1388_v45  ;;  %v1438_v7 = vadd.f32 %v1435_v47, %v1389_v37  ;;  %v1457_v28 = vadd.f32 %v1454_v40, %v1408_v36  ;;  %v1458_v41 = vadd.f32 %v1455_v58, %v4416_v35 }
 0x308   :  { %v1501_v34 = vpop.permute.xlu2 %1500  ;;  %2606 = vset.pattern.permute.xlu2 %v2858_v44  ;;  %v2859_v45 = vmov 69  }
 0x309   :  { %v4461_v9 = vadd.f32 %v1474_v25, %v1437_v59  ;;  %v4463_v1 = vadd.f32 %v1475_v31, %v1438_v7  ;;  %v1504_v2 = vmul.f32 %v1501_v34, %v3796_v0  ;;  %v1505_v17 = vmul.f32 %v1501_v34, %v3803_v30 }
 0x30a   :  { %v2861_v31 = vmov 72  }
 0x30b   :  { %v1441_v15 = vpop.permute.xlu1 %1440 }
 0x30c   :  { %v1443_v24 = vmul.f32 %v1441_v15, %v4426_v20  ;;  %v1444_v51 = vmul.f32 %v1441_v15, %v1427_v43  ;;  %v1445_v13 = vmul.f32 %v1441_v15, %v1426_v39 }
 0x30e   :  { %v1446_v36 = vadd.f32 %v1443_v24, %v4429_v61  ;;  %v1447_v35 = vadd.f32 %v1444_v51, %v4432_v32  ;;  %v1448_v33 = vadd.f32 %v1445_v13, %v4405_v10  ;;  %1709 = vrot.lane.b32.xlu1 %v3796_v0, %s2792_s30  ;;  %v1503_v10 = vmul.f32 %v1501_v34, %v3790_v54 }
 0x30f   :  { %1711 = vrot.lane.b32.xlu2 %v3803_v30, %s2792_s30  ;;  %2605 = vset.pattern.permute.xlu1 %v2859_v45  ;;  %s2867_s30 = smov 90  }
 0x310   :  { %v1512_v16 = vpop.permute.xlu2 %1511  ;;  %v1486_v37 = vadd.f32 %v1483_v14, %v1446_v36  ;;  %v1488_v23 = vadd.f32 %v1485_v55, %v1448_v33  ;;  %v1487_v22 = vadd.f32 %v1484_v29, %v1447_v35 }
 0x311   :  { %v4484_v18 = vsel %vm461_vm0, %v1512_v16, %v1514_v38 }
 0x314   :  { %v1461_v56 = vpop.permute.xlu1 %1460 }
 0x315   :  { %v1463_v61 = vmul.f32 %v1461_v56, %v4426_v20  ;;  %v1464_v27 = vmul.f32 %v1461_v56, %v1427_v43  ;;  %v1465_v32 = vmul.f32 %v1461_v56, %v1426_v39 }
 0x316   :  { %1727 = vperm.xlu1 %2605, %v4378_v11  }
 0x317   :  { %1737 = vperm.xlu2 %2606, %v4378_v11   ;;  %v1466_v46 = vadd.f32 %v1463_v61, %v1417_v21  ;;  %v1467_v42 = vadd.f32 %v1464_v27, %v1418_v8  ;;  %v1468_v48 = vadd.f32 %v1465_v32, %v1419_v50  ;;  %v2860_v8 = vmov 71   ;;  %v1540_v50 = vpop.permute.xlu0 %1539 }
 0x318   :  { %v1530_v20 = vpop.permute.xlu2 %1529  ;;  %v1543_v59 = vmul.f32 %v1540_v50, %v4484_v18  ;;  %v2863_v27 = vmov 75  }
 0x319   :  { %v1533_v49 = vmul.f32 %v1530_v20, %v4484_v18  ;;  %v4487_v39 = vadd.f32 %v1503_v10, %v1466_v46  ;;  %v4489_v43 = vadd.f32 %v1504_v2, %v1467_v42  ;;  %v4491_v62 = vadd.f32 %v1505_v17, %v1468_v48 }
 0x31b   :  { %v4493_v47 = vadd.f32 %v1533_v49, %v1487_v22 }
 0x31d   :  { %v1491_v40 = vpop.permute.xlu1 %1490 }
 0x31e   :  { %v1493_v58 = vmul.f32 %v1491_v40, %v3790_v54  ;;  %v1494_v5 = vmul.f32 %v1491_v40, %v3796_v0  ;;  %v1495_v21 = vmul.f32 %v1491_v40, %v3803_v30  ;;  %2607 = vset.pattern.permute.xlu1 %v2860_v8 }
 0x31f   :  { %1756 = vrot.lane.b32.xlu2 %v3790_v54, %s2795_s10  ;;  %1747 = vperm.xlu1 %2607, %v4378_v11   ;;  %v1570_v22 = vpop.permute.xlu0 %1569 }
 0x320   :  { %v4501_v25 = vpop.permute.xlu2 %1558  ;;  %2608 = vset.pattern.permute.xlu2 %v2861_v31  ;;  %v1496_v7 = vadd.f32 %v1493_v58, %v4442_v12  ;;  %v1497_v34 = vadd.f32 %v1494_v5, %v1457_v28  ;;  %v1498_v44 = vadd.f32 %v1495_v21, %v1458_v41  ;;  %v2862_v41 = vmov 74  }
 0x322   :  { %v4505_v60 = vadd.f32 %v1543_v59, %v1497_v34 }
 0x325   :  { %v1510_v15 = vpop.permute.xlu1 %1509 }
 0x326   :  { %v1516_v24 = vsel %vm461_vm0, %v1510_v15, %v1512_v16  ;;  %v1517_v51 = vsel %vm461_vm0, %v1514_v38, %v1510_v15  ;;  %vm1614_vm0 = vcmp.lt.s32.totalorder %v3167_v19, 110 }
 0x327   :  { %1766 = vperm.xlu2 %2608, %v4378_v11   ;;  %v1532_v13 = vmul.f32 %v1530_v20, %v1516_v24  ;;  %v1534_v14 = vmul.f32 %v1530_v20, %v1517_v51  ;;  %v1542_v29 = vmul.f32 %v1540_v50, %v1516_v24  ;;  %v1544_v55 = vmul.f32 %v1540_v50, %v1517_v51 }
 0x328   :  { %1760 = vrot.lane.b32.xlu1 %v3803_v30, %s2795_s10  ;;  %v1563_v12 = vpop.permute.xlu2 %1562  ;;  %s4805_s10 = sld [smem:[#allocation9 + $0x8]] }
 0x329   :  { %v4518_v28 = vsel %vm1564_vm1, %v1563_v12, %v4501_v25  ;;  %2610 = vset.pattern.permute.xlu1 %v2862_v41  ;;  %v1545_v36 = vadd.f32 %v1542_v29, %v1496_v7  ;;  %v1547_v35 = vadd.f32 %v1544_v55, %v1498_v44  ;;  %v4520_v33 = vadd.f32 %v1532_v13, %v1486_v37 }
 0x32a   :  { %v4522_v16 = vadd.f32 %v1534_v14, %v1488_v23  ;;  %v1574_v32 = vmul.f32 %v1570_v22, %v4518_v28 }
 0x32d   :  { %v1520_v45 = vpop.permute.xlu1 %1519 }
 0x32e   :  { %v1522_v56 = vmul.f32 %v1520_v45, %v1516_v24  ;;  %v1523_v38 = vmul.f32 %v1520_v45, %v4484_v18  ;;  %v1524_v61 = vmul.f32 %v1520_v45, %v1517_v51 }
 0x32f   :  { %2611 = vset.pattern.permute.xlu2 %v2863_v27 }
 0x330   :  { %1786 = vperm.xlu1 %2610, %v4378_v11   ;;  %1796 = vperm.xlu2 %2611, %v4378_v11   ;;  %v1590_v10 = vpop.permute.xlu2 %1589  ;;  %v1525_v37 = vadd.f32 %v1522_v56, %v4449_v63  ;;  %v1526_v23 = vadd.f32 %v1523_v38, %v4461_v9  ;;  %v1527_v2 = vadd.f32 %v1524_v61, %v4463_v1  ;;  %v2864_v9 = vmov 76  }
 0x331   :  { %v1594_v17 = vmul.f32 %v1590_v10, %v4518_v28  ;;  %v2865_v1 = vmov 77  }
 0x332   :  { %v4532_v46 = vadd.f32 %v1574_v32, %v1527_v2 }
 0x333   :  { %v4534_v42 = vadd.f32 %v1594_v17, %v1547_v35  ;;  %v2866_v35 = vmov 79  }
 0x336   :  { %v1550_v48 = vpop.permute.xlu1 %1549 }
 0x337   :  { %v1552_v20 = vmul.f32 %v1550_v48, %v1516_v24  ;;  %v1553_v49 = vmul.f32 %v1550_v48, %v4484_v18  ;;  %v1554_v40 = vmul.f32 %v1550_v48, %v1517_v51  ;;  %v1611_v18 = vpop.permute.xlu0 %1610 }
 0x338   :  { %1805 = vrot.lane.b32.xlu1 %v3790_v54, %s2832_s28  ;;  %1807 = vrot.lane.b32.xlu2 %v3796_v0, %s2832_s28  ;;  %v4541_v63 = vpop.permute.xlu2 %1608 }
 0x339   :  { %2612 = vset.pattern.permute.xlu1 %v2864_v9  ;;  %2613 = vset.pattern.permute.xlu2 %v2865_v1  ;;  %v1555_v58 = vadd.f32 %v1552_v20, %v4487_v39  ;;  %v1556_v5 = vadd.f32 %v1553_v49, %v4489_v43  ;;  %v1557_v21 = vadd.f32 %v1554_v40, %v4491_v62  ;;  %v2870_v20 = vmov 94  }
 0x33a   :  { %v4550_v50 = vsel %vm1614_vm0, %v4541_v63, %v1611_v18  ;;  %2631 = vset.pattern.permute.xlu0 %v2870_v20 }
 0x33b   :  { %2036 = vperm.xlu0 %2631, %v4378_v11  }
 0x33e   :  { %v1561_v8 = vpop.permute.xlu1 %1560 }
 0x33f   :  { %v1565_v31 = vsel %vm1564_vm1, %v1561_v8, %v1563_v12  ;;  %v1566_v39 = vsel %vm1564_vm1, %v4501_v25, %v1561_v8  ;;  %v1630_v29 = vpop.permute.xlu0 %1629 }
 0x340   :  { %1816 = vperm.xlu1 %2612, %v4378_v11   ;;  %1826 = vperm.xlu2 %2613, %v4378_v11   ;;  %v1620_v43 = vpop.permute.xlu2 %1619  ;;  %v1572_v62 = vmul.f32 %v1570_v22, %v1566_v39  ;;  %v1573_v59 = vmul.f32 %v1570_v22, %v1565_v31  ;;  %v1592_v7 = vmul.f32 %v1590_v10, %v1566_v39 }
 0x341   :  { %v1593_v34 = vmul.f32 %v1590_v10, %v1565_v31  ;;  %v1622_v44 = vmul.f32 %v1620_v43, %v4550_v50  ;;  %v1632_v45 = vmul.f32 %v1630_v29, %v4550_v50 }
 0x342   :  { %v1576_v15 = vadd.f32 %v1573_v59, %v1526_v23  ;;  %v1575_v24 = vadd.f32 %v1572_v62, %v1525_v37  ;;  %v4560_v51 = vadd.f32 %v1592_v7, %v1545_v36 }
 0x343   :  { %v4563_v13 = vadd.f32 %v1593_v34, %v4505_v60  ;;  %v2868_v60 = vmov 82  }
 0x344   :  { %v4565_v14 = vadd.f32 %v1622_v44, %v1575_v24 }
 0x346   :  { %v1580_v25 = vpop.permute.xlu1 %1579 }
 0x347   :  { %v1582_v55 = vmul.f32 %v1580_v25, %v1566_v39  ;;  %v1583_v12 = vmul.f32 %v1580_v25, %v1565_v31  ;;  %v1584_v41 = vmul.f32 %v1580_v25, %v4518_v28  ;;  %v1663_v17 = vpop.permute.xlu0 %1662 }
 0x348   :  { %2615 = vset.pattern.permute.xlu1 %v2866_v35  ;;  %1855 = vrot.lane.b32.xlu2 %v3790_v54, %s2867_s30  ;;  %v2871_v35 = vmov 83  }
 0x349   :  { %1846 = vperm.xlu1 %2615, %v4378_v11   ;;  %v1650_v36 = vpop.permute.xlu2 %1649  ;;  %2618 = vset.pattern.permute.xlu2 %v2868_v60  ;;  %v1585_v22 = vadd.f32 %v1582_v55, %v4520_v33  ;;  %v1586_v56 = vadd.f32 %v1583_v12, %v4493_v47  ;;  %v1587_v38 = vadd.f32 %v1584_v41, %v4522_v16  ;;  %v2869_v33 = vmov 81  }
 0x34a   :  { %v1652_v61 = vmul.f32 %v1650_v36, %v4550_v50 }
 0x34b   :  { %v4575_v27 = vadd.f32 %v1632_v45, %v1585_v22 }
 0x34f   :  { %v1600_v32 = vpop.permute.xlu1 %1599  ;;  %v1689_v7 = vpop.permute.xlu0 %1688 }
 0x350   :  { %1859 = vrot.lane.b32.xlu2 %v3803_v30, %s2867_s30  ;;  %v1602_v10 = vmul.f32 %v1600_v32, %v1566_v39  ;;  %v1603_v37 = vmul.f32 %v1600_v32, %v1565_v31  ;;  %v1604_v23 = vmul.f32 %v1600_v32, %v4518_v28 }
 0x351   :  { %1857 = vrot.lane.b32.xlu1 %v3796_v0, %s2867_s30  ;;  %v1661_v2 = vpop.permute.xlu2 %1660 }
 0x352   :  { %2617 = vset.pattern.permute.xlu1 %v2869_v33  ;;  %v1605_v47 = vadd.f32 %v1602_v10, %v1555_v58  ;;  %v1606_v48 = vadd.f32 %v1603_v37, %v1556_v5  ;;  %v1607_v16 = vadd.f32 %v1604_v23, %v1557_v21  ;;  %v4586_v28 = vsel %vm511_vm5, %v1661_v2, %v1663_v17 }
 0x354   :  { %v4580_v49 = vadd.f32 %v1652_v61, %v1605_v47 }
 0x357   :  { %v1613_v40 = vpop.permute.xlu1 %1612 }
 0x358   :  { %1886 = vperm.xlu2 %2618, %v4378_v11   ;;  %v1615_v9 = vsel %vm1614_vm0, %v1611_v18, %v1613_v40  ;;  %v1617_v1 = vsel %vm1614_vm0, %v1613_v40, %v4541_v63  ;;  %v2874_v40 = vmov 87  }
 0x359   :  { %1876 = vperm.xlu1 %2617, %v4378_v11   ;;  %v1679_v58 = vpop.permute.xlu2 %1678  ;;  %v1623_v5 = vmul.f32 %v1620_v43, %v1615_v9  ;;  %v1624_v21 = vmul.f32 %v1620_v43, %v1617_v1  ;;  %v1633_v8 = vmul.f32 %v1630_v29, %v1615_v9  ;;  %v1634_v31 = vmul.f32 %v1630_v29, %v1617_v1 }
 0x35a   :  { %v1653_v39 = vmul.f32 %v1650_v36, %v1615_v9  ;;  %v1654_v62 = vmul.f32 %v1650_v36, %v1617_v1  ;;  %v1682_v59 = vmul.f32 %v1679_v58, %v4586_v28 }
 0x35b   :  { %v1637_v34 = vadd.f32 %v1634_v31, %v1587_v38  ;;  %v1636_v44 = vadd.f32 %v1633_v8, %v1586_v56  ;;  %v1626_v24 = vadd.f32 %v1623_v5, %v1576_v15  ;;  %v1627_v18 = vadd.f32 %v1624_v21, %v4532_v46 }
 0x35c   :  { %v4596_v25 = vadd.f32 %v1653_v39, %v1606_v48  ;;  %v4598_v63 = vadd.f32 %v1654_v62, %v1607_v16  ;;  %v2872_v15 = vmov 84   ;;  %v1692_v46 = vmul.f32 %v1689_v7, %v4586_v28 }
 0x35d   :  { %v4600_v55 = vadd.f32 %v1682_v59, %v1636_v44 }
 0x35f   :  { %v1640_v12 = vpop.permute.xlu1 %1639 }
 0x360   :  { %1905 = vrot.lane.b32.xlu2 %v3790_v54, %s2841_s29  ;;  %v1642_v43 = vmul.f32 %v1640_v12, %v4550_v50  ;;  %v1643_v29 = vmul.f32 %v1640_v12, %v1615_v9  ;;  %v1644_v41 = vmul.f32 %v1640_v12, %v1617_v1  ;;  %v1718_v50 = vpop.permute.xlu0 %1717 }
 0x361   :  { %2619 = vset.pattern.permute.xlu1 %v2871_v35  ;;  %v4605_v45 = vpop.permute.xlu2 %1707  ;;  %2620 = vset.pattern.permute.xlu2 %v2872_v15 }
 0x362   :  { %1896 = vperm.xlu1 %2619, %v4378_v11   ;;  %v1645_v36 = vadd.f32 %v1642_v43, %v4560_v51  ;;  %v1646_v60 = vadd.f32 %v1643_v29, %v4563_v13  ;;  %v1647_v22 = vadd.f32 %v1644_v41, %v4534_v42  ;;  %v2873_v13 = vmov 86  }
 0x363   :  { %v2876_v41 = vmov 89  }
 0x364   :  { %v4612_v56 = vadd.f32 %v1692_v46, %v1646_v60 }
 0x367   :  { %v1659_v38 = vpop.permute.xlu1 %1658 }
 0x368   :  { %1916 = vperm.xlu2 %2620, %v4378_v11   ;;  %v1665_v61 = vsel %vm511_vm5, %v1659_v38, %v1661_v2  ;;  %v1666_v32 = vsel %vm511_vm5, %v1663_v17, %v1659_v38  ;;  %v4631_v16 = vpop.permute.xlu0 %1758  ;;  %vm1961_vm5 = vcmp.lt.s32.totalorder %v3167_v19, 88 }
 0x369   :  { %v1712_v10 = vpop.permute.xlu2 %1711  ;;  %v1681_v37 = vmul.f32 %v1679_v58, %v1665_v61  ;;  %v1683_v23 = vmul.f32 %v1679_v58, %v1666_v32  ;;  %v1691_v51 = vmul.f32 %v1689_v7, %v1665_v61  ;;  %v1693_v33 = vmul.f32 %v1689_v7, %v1666_v32 }
 0x36a   :  { %1909 = vrot.lane.b32.xlu1 %v3803_v30, %s2841_s29  ;;  %v4624_v42 = vsel %vm561_vm6, %v1712_v10, %v4605_v45 }
 0x36b   :  { %2622 = vset.pattern.permute.xlu1 %v2873_v13  ;;  %v1694_v47 = vadd.f32 %v1691_v51, %v1645_v36  ;;  %v1696_v2 = vadd.f32 %v1693_v33, %v1647_v22  ;;  %v4627_v48 = vadd.f32 %v1681_v37, %v4575_v27  ;;  %v4629_v17 = vadd.f32 %v1683_v23, %v1637_v34 }
 0x36c   :  { %v1722_v27 = vmul.f32 %v1718_v50, %v4624_v42 }
 0x36f   :  { %v1669_v20 = vpop.permute.xlu1 %1668 }
 0x370   :  { %2623 = vset.pattern.permute.xlu2 %v2874_v40  ;;  %v1671_v9 = vmul.f32 %v1669_v20, %v1665_v61  ;;  %v1672_v1 = vmul.f32 %v1669_v20, %v4586_v28  ;;  %v1673_v58 = vmul.f32 %v1669_v20, %v1666_v32  ;;  %v4647_v44 = vpop.permute.xlu0 %1776  ;;  %v2877_v20 = vmov 93  }
 0x371   :  { %1946 = vperm.xlu2 %2623, %v4378_v11   ;;  %v1738_v5 = vpop.permute.xlu2 %1737 }
 0x372   :  { %1936 = vperm.xlu1 %2622, %v4378_v11   ;;  %v1742_v21 = vmul.f32 %v1738_v5, %v4624_v42  ;;  %v1674_v8 = vadd.f32 %v1671_v9, %v4565_v14  ;;  %v1675_v31 = vadd.f32 %v1672_v1, %v1626_v24  ;;  %v1676_v39 = vadd.f32 %v1673_v58, %v1627_v18 }
 0x373   :  { %v2875_v18 = vmov 88  }
 0x374   :  { %v4639_v62 = vadd.f32 %v1742_v21, %v1696_v2  ;;  %v4641_v59 = vadd.f32 %v1722_v27, %v1676_v39 }
 0x378   :  { %v1699_v7 = vpop.permute.xlu1 %1698 }
 0x379   :  { %1957 = vrot.lane.b32.xlu2 %v3796_v0, %s2846_s16  ;;  %v4645_v34 = vpop.permute.xlu2 %1756  ;;  %v1701_v12 = vmul.f32 %v1699_v7, %v1665_v61  ;;  %v1702_v43 = vmul.f32 %v1699_v7, %v4586_v28  ;;  %v1703_v29 = vmul.f32 %v1699_v7, %v1666_v32 }
 0x37a   :  { %1955 = vrot.lane.b32.xlu1 %v3790_v54, %s2846_s16  ;;  %v4656_v14 = vsel %vm611_vm7, %v4645_v34, %v4631_v16  ;;  %2625 = vset.pattern.permute.xlu2 %v2876_v41 }
 0x37b   :  { %v1779_v24 = vmul.f32 %v4647_v44, %v4656_v14  ;;  %2624 = vset.pattern.permute.xlu1 %v2875_v18  ;;  %v1704_v35 = vadd.f32 %v1701_v12, %v4580_v49  ;;  %v1705_v28 = vadd.f32 %v1702_v43, %v4596_v25  ;;  %v1706_v15 = vadd.f32 %v1703_v29, %v4598_v63 }
 0x380   :  { %v1710_v46 = vpop.permute.xlu1 %1709 }
 0x381   :  { %1976 = vperm.xlu2 %2625, %v4378_v11   ;;  %v1767_v36 = vpop.permute.xlu2 %1766  ;;  %v1713_v60 = vsel %vm561_vm6, %v1710_v46, %v1712_v10  ;;  %v1714_v22 = vsel %vm561_vm6, %v4605_v45, %v1710_v46  ;;  %vm2011_vm6 = vcmp.lt.s32.totalorder %v3167_v19, 87 }
 0x382   :  { %1966 = vperm.xlu1 %2624, %v4378_v11   ;;  %v1769_v38 = vmul.f32 %v1767_v36, %v4656_v14  ;;  %v1720_v49 = vmul.f32 %v1718_v50, %v1714_v22  ;;  %v1721_v61 = vmul.f32 %v1718_v50, %v1713_v60  ;;  %v1740_v25 = vmul.f32 %v1738_v5, %v1714_v22 }
 0x383   :  { %v1741_v32 = vmul.f32 %v1738_v5, %v1713_v60 }
 0x384   :  { %v1724_v63 = vadd.f32 %v1721_v61, %v1675_v31  ;;  %v1723_v37 = vadd.f32 %v1720_v49, %v1674_v8  ;;  %v4671_v23 = vadd.f32 %v1740_v25, %v1694_v47  ;;  %v2880_v61 = vmov 91  }
 0x385   :  { %v4674_v51 = vadd.f32 %v1741_v32, %v4612_v56  ;;  %v2878_v56 = vmov 90  }
 0x386   :  { %v4676_v10 = vadd.f32 %v1769_v38, %v1723_v37 }
 0x388   :  { %v1728_v33 = vpop.permute.xlu1 %1727 }
 0x389   :  { %2005 = vrot.lane.b32.xlu2 %v3790_v54, %s2849_s17  ;;  %v1730_v45 = vmul.f32 %v1728_v33, %v1714_v22  ;;  %v1731_v13 = vmul.f32 %v1728_v33, %v1713_v60  ;;  %v1732_v2 = vmul.f32 %v1728_v33, %v4624_v42 }
 0x38a   :  { %2009 = vrot.lane.b32.xlu1 %v3803_v30, %s2849_s17  ;;  %v1797_v50 = vpop.permute.xlu2 %1796  ;;  %2628 = vset.pattern.permute.xlu2 %v2877_v20 }
 0x38b   :  { %v1799_v47 = vmul.f32 %v1797_v50, %v4656_v14  ;;  %2627 = vset.pattern.permute.xlu1 %v2878_v56  ;;  %v1733_v40 = vadd.f32 %v1730_v45, %v4627_v48  ;;  %v1734_v9 = vadd.f32 %v1731_v13, %v4600_v55  ;;  %v1735_v54 = vadd.f32 %v1732_v2, %v4629_v17 }
 0x38c   :  { %v2879_v17 = vmov 99  }
 0x38d   :  { %v4687_v1 = vadd.f32 %v1779_v24, %v1733_v40  ;;  %2636 = vset.pattern.permute.xlu0 %v2879_v17 }
 0x391   :  { %2059 = vrot.lane.b32.xlu2 %v3803_v30, %s2852_s6  ;;  %v1748_v58 = vpop.permute.xlu1 %1747  ;;  %v1810_v30 = vpop.permute.xlu0 %1809 }
 0x392   :  { %2057 = vrot.lane.b32.xlu1 %v3796_v0, %s2852_s6  ;;  %v1808_v5 = vpop.permute.xlu2 %1807  ;;  %v1750_v21 = vmul.f32 %v1748_v58, %v1714_v22  ;;  %v1751_v27 = vmul.f32 %v1748_v58, %v1713_v60  ;;  %v1752_v8 = vmul.f32 %v1748_v58, %v4624_v42 }
 0x393   :  { %v4701_v0 = vsel %vm1811_vm2, %v1808_v5, %v1810_v30 }
 0x394   :  { %v1753_v31 = vadd.f32 %v1750_v21, %v1704_v35  ;;  %v1754_v48 = vadd.f32 %v1751_v27, %v1705_v28  ;;  %v1755_v39 = vadd.f32 %v1752_v8, %v1706_v15 }
 0x396   :  { %v4695_v55 = vadd.f32 %v1799_v47, %v1753_v31  ;;  %v2882_v47 = vmov 95  }
 0x399   :  { %2026 = vperm.xlu2 %2628, %v4378_v11  }
 0x39a   :  { %1986 = vperm.xlu1 %2627, %v4378_v11   ;;  %v1761_v42 = vpop.permute.xlu1 %1760  ;;  %v1827_v7 = vpop.permute.xlu2 %1826 }
 0x39b   :  { %v1762_v12 = vsel %vm611_vm7, %v4631_v16, %v1761_v42  ;;  %v1764_v43 = vsel %vm611_vm7, %v1761_v42, %v4645_v34  ;;  %v1830_v29 = vmul.f32 %v1827_v7, %v4701_v0  ;;  %vm2061_vm7 = vcmp.lt.s32.totalorder %v3167_v19, 86 }
 0x39c   :  { %v1770_v24 = vmul.f32 %v1767_v36, %v1762_v12  ;;  %v1771_v18 = vmul.f32 %v1767_v36, %v1764_v43  ;;  %v1780_v41 = vmul.f32 %v4647_v44, %v1762_v12  ;;  %v1781_v35 = vmul.f32 %v4647_v44, %v1764_v43 }
 0x39d   :  { %v1800_v28 = vmul.f32 %v1797_v50, %v1762_v12  ;;  %v1801_v15 = vmul.f32 %v1797_v50, %v1764_v43  ;;  %v2881_v36 = vmov 96  }
 0x39e   :  { %v1784_v46 = vadd.f32 %v1781_v35, %v1735_v54  ;;  %v1783_v60 = vadd.f32 %v1780_v41, %v1734_v9  ;;  %v1773_v22 = vadd.f32 %v1770_v24, %v1724_v63  ;;  %v1774_v38 = vadd.f32 %v1771_v18, %v4641_v59  ;;  %v1837_v59 = vpop.permute.xlu0 %1836 }
 0x39f   :  { %v4714_v16 = vadd.f32 %v1800_v28, %v1754_v48  ;;  %v4716_v49 = vadd.f32 %v1801_v15, %v1755_v39  ;;  %v1840_v33 = vmul.f32 %v1837_v59, %v4701_v0  ;;  %v2883_v9 = vmov 97  }
 0x3a0   :  { %v4718_v34 = vadd.f32 %v1830_v29, %v1783_v60  ;;  %v2884_v29 = vmov 98  }
 0x3a1   :  { %2630 = vset.pattern.permute.xlu2 %v2880_v61 }
 0x3a2   :  { %2629 = vset.pattern.permute.xlu1 %v2881_v36  ;;  %v1787_v25 = vpop.permute.xlu1 %1786  ;;  %1996 = vperm.xlu2 %2630, %v4378_v11   ;;  %v4721_v44 = vpop.permute.xlu2 %1855 }
 0x3a3   :  { %v1789_v32 = vmul.f32 %v1787_v25, %v4656_v14  ;;  %v1790_v63 = vmul.f32 %v1787_v25, %v1762_v12  ;;  %v1791_v37 = vmul.f32 %v1787_v25, %v1764_v43  ;;  %2066 = vperm.xlu1 %2629, %v4378_v11  }
 0x3a5   :  { %v1792_v45 = vadd.f32 %v1789_v32, %v4671_v23  ;;  %v1793_v13 = vadd.f32 %v1790_v63, %v4674_v51  ;;  %v1794_v2 = vadd.f32 %v1791_v37, %v4639_v62 }
 0x3a6   :  { %v1867_v39 = vpop.permute.xlu0 %1866 }
 0x3a7   :  { %v1843_v50 = vadd.f32 %v1840_v33, %v1793_v13 }
 0x3aa   :  { %v1806_v20 = vpop.permute.xlu1 %1805  ;;  %2633 = vset.pattern.permute.xlu2 %v2882_v47  ;;  %v1860_v14 = vpop.permute.xlu2 %1859 }
 0x3ab   :  { %v1813_v56 = vsel %vm1811_vm2, %v1806_v20, %v1808_v5  ;;  %v1814_v40 = vsel %vm1811_vm2, %v1810_v30, %v1806_v20  ;;  %2632 = vset.pattern.permute.xlu1 %v2883_v9  ;;  %v4737_v23 = vsel %vm1861_vm3, %v1860_v14, %v4721_v44  ;;  %2046 = vperm.xlu2 %2633, %v4378_v11  }
 0x3ac   :  { %v1829_v62 = vmul.f32 %v1827_v7, %v1813_v56  ;;  %v1831_v51 = vmul.f32 %v1827_v7, %v1814_v40  ;;  %v1839_v54 = vmul.f32 %v1837_v59, %v1813_v56  ;;  %v1841_v58 = vmul.f32 %v1837_v59, %v1814_v40  ;;  %2076 = vperm.xlu1 %2632, %v4378_v11  }
 0x3ad   :  { %v1871_v7 = vmul.f32 %v1867_v39, %v4737_v23 }
 0x3ae   :  { %v1842_v21 = vadd.f32 %v1839_v54, %v1792_v45  ;;  %v1844_v5 = vadd.f32 %v1841_v58, %v1794_v2  ;;  %v1832_v27 = vadd.f32 %v1829_v62, %v4687_v1  ;;  %v1834_v8 = vadd.f32 %v1831_v51, %v1784_v46 }
 0x3b2   :  { %v1817_v31 = vpop.permute.xlu1 %1816  ;;  %v1887_v48 = vpop.permute.xlu2 %1886 }
 0x3b3   :  { %v1819_v30 = vmul.f32 %v1817_v31, %v1813_v56  ;;  %v1820_v42 = vmul.f32 %v1817_v31, %v4701_v0  ;;  %v1821_v12 = vmul.f32 %v1817_v31, %v1814_v40  ;;  %v1891_v43 = vmul.f32 %v1887_v48, %v4737_v23  ;;  %2635 = vset.pattern.permute.xlu2 %v2879_v17 }
 0x3b4   :  { %2634 = vset.pattern.permute.xlu1 %v2884_v29  ;;  %2096 = vperm.xlu2 %2635, %v4378_v11  }
 0x3b5   :  { %v1822_v1 = vadd.f32 %v1819_v30, %v4676_v10  ;;  %v1823_v24 = vadd.f32 %v1820_v42, %v1773_v22  ;;  %v1824_v18 = vadd.f32 %v1821_v12, %v1774_v38  ;;  %2086 = vperm.xlu1 %2634, %v4378_v11   ;;  %v4749_v41 = vadd.f32 %v1891_v43, %v1844_v5  ;;  %v1908_v10 = vpop.permute.xlu0 %1907 }
 0x3b7   :  { %v1874_v35 = vadd.f32 %v1871_v7, %v1824_v18 }
 0x3ba   :  { %v1906_v28 = vpop.permute.xlu2 %1905 }
 0x3bb   :  { %v1847_v15 = vpop.permute.xlu1 %1846  ;;  %v1913_v11 = vsel %vm1911_vm4, %v1906_v28, %v1908_v10 }
 0x3bc   :  { %v1849_v46 = vmul.f32 %v1847_v15, %v1813_v56  ;;  %v1850_v17 = vmul.f32 %v1847_v15, %v4701_v0  ;;  %v1851_v60 = vmul.f32 %v1847_v15, %v1814_v40 }
 0x3bd   :  { %v1927_v40 = vpop.permute.xlu0 %1926 }
 0x3be   :  { %v1852_v61 = vadd.f32 %v1849_v46, %v4695_v55  ;;  %v1853_v36 = vadd.f32 %v1850_v17, %v4714_v16  ;;  %v1854_v25 = vadd.f32 %v1851_v60, %v4716_v49  ;;  %v1929_v9 = vmul.f32 %v1927_v40, %v1913_v11 }
 0x3c2   :  { %v4756_v22 = vpop.permute.xlu2 %1916 }
 0x3c3   :  { %v1858_v38 = vpop.permute.xlu1 %1857  ;;  %v1919_v0 = vmul.f32 %v4756_v22, %v1913_v11 }
 0x3c4   :  { %v1862_v32 = vsel %vm1861_vm3, %v1858_v38, %v1860_v14  ;;  %v1863_v55 = vsel %vm1861_vm3, %v4721_v44, %v1858_v38 }
 0x3c5   :  { %v1869_v16 = vmul.f32 %v1867_v39, %v1863_v55  ;;  %v1870_v49 = vmul.f32 %v1867_v39, %v1862_v32  ;;  %v1889_v63 = vmul.f32 %v1887_v48, %v1863_v55  ;;  %v1890_v37 = vmul.f32 %v1887_v48, %v1862_v32 }
 0x3c7   :  { %v4766_v59 = vadd.f32 %v1870_v49, %v1823_v24  ;;  %v1872_v33 = vadd.f32 %v1869_v16, %v1822_v1  ;;  %v1892_v45 = vadd.f32 %v1889_v63, %v1842_v21  ;;  %v4768_v13 = vadd.f32 %v1890_v37, %v1843_v50 }
 0x3c9   :  { %v4770_v2 = vadd.f32 %v1919_v0, %v1872_v33 }
 0x3cb   :  { %v1877_v20 = vpop.permute.xlu1 %1876  ;;  %v1947_v47 = vpop.permute.xlu2 %1946 }
 0x3cc   :  { %v1879_v14 = vmul.f32 %v1877_v20, %v1863_v55  ;;  %v1880_v56 = vmul.f32 %v1877_v20, %v1862_v32  ;;  %v1881_v44 = vmul.f32 %v1877_v20, %v4737_v23  ;;  %v1949_v39 = vmul.f32 %v1947_v47, %v1913_v11 }
 0x3ce   :  { %v1882_v62 = vadd.f32 %v1879_v14, %v1832_v27  ;;  %v1883_v51 = vadd.f32 %v1880_v56, %v4718_v34  ;;  %v1884_v54 = vadd.f32 %v1881_v44, %v1834_v8  ;;  %v1960_v27 = vpop.permute.xlu0 %1959 }
 0x3d0   :  { %v4774_v58 = vadd.f32 %v1929_v9, %v1882_v62 }
 0x3d3   :  { %v1958_v5 = vpop.permute.xlu2 %1957 }
 0x3d4   :  { %v1897_v21 = vpop.permute.xlu1 %1896  ;;  %v4798_v33 = vsel %vm1961_vm5, %v1958_v5, %v1960_v27 }
 0x3d5   :  { %v1899_v50 = vmul.f32 %v1897_v21, %v1863_v55  ;;  %v1900_v31 = vmul.f32 %v1897_v21, %v1862_v32  ;;  %v1901_v48 = vmul.f32 %v1897_v21, %v4737_v23 }
 0x3d7   :  { %v1902_v30 = vadd.f32 %v1899_v50, %v1852_v61  ;;  %v1903_v42 = vadd.f32 %v1900_v31, %v1853_v36  ;;  %v1904_v12 = vadd.f32 %v1901_v48, %v1854_v25  ;;  %v2008_v36 = vpop.permute.xlu0 %2007 }
 0x3d9   :  { %v4777_v43 = vadd.f32 %v1949_v39, %v1902_v30 }
 0x3db   :  { %v1977_v7 = vpop.permute.xlu2 %1976 }
 0x3dc   :  { %v1910_v29 = vpop.permute.xlu1 %1909 }
 0x3dd   :  { %v1914_v34 = vsel %vm1911_vm4, %v1910_v29, %v1906_v28 }
 0x3de   :  { %v1921_v8 = vmul.f32 %v4756_v22, %v1914_v34  ;;  %v1931_v1 = vmul.f32 %v1927_v40, %v1914_v34  ;;  %v1951_v24 = vmul.f32 %v1947_v47, %v1914_v34 }
 0x3df   :  { %v2017_v55 = vpop.permute.xlu0 %2016 }
 0x3e0   :  { %v1934_v18 = vadd.f32 %v1931_v1, %v1884_v54  ;;  %v1924_v15 = vadd.f32 %v1921_v8, %v1874_v35  ;;  %v4782_v46 = vadd.f32 %v1951_v24, %v1904_v12  ;;  %v1912_v35 = vsel %vm1911_vm4, %v1908_v10, %v1910_v29 }
 0x3e1   :  { %v1930_v37 = vmul.f32 %v1927_v40, %v1912_v35  ;;  %v1950_v20 = vmul.f32 %v1947_v47, %v1912_v35 }
 0x3e3   :  { %v2006_v23 = vpop.permute.xlu2 %2005  ;;  %v1933_v14 = vadd.f32 %v1930_v37, %v1883_v51  ;;  %v4849_v37 = vstv %s4811_s18 }
 0x3e4   :  { %v1937_v17 = vpop.permute.xlu1 %1936  ;;  %v2013_v40 = vsel %vm2011_vm6, %v2006_v23, %v2008_v36 }
 0x3e5   :  { %v1939_v60 = vmul.f32 %v1937_v17, %v1913_v11  ;;  %v1941_v61 = vmul.f32 %v1937_v17, %v1914_v34  ;;  %v1940_v9 = vmul.f32 %v1937_v17, %v1912_v35  ;;  %v4830_v34 = vstv %s2363_s9 }
 0x3e7   :  { %v4784_v25 = vadd.f32 %v1939_v60, %v1892_v45  ;;  %v4787_v38 = vadd.f32 %v1941_v61, %v4749_v41  ;;  %v4795_v49 = vpop.permute.xlu0 %2055  ;;  %v1920_v41 = vmul.f32 %v4756_v22, %v1912_v35  ;;  %v1980_v45 = vmul.f32 %v1977_v7, %v4798_v33 }
 0x3e8   :  { %v1943_v12 = vadd.f32 %v1940_v9, %v4768_v13 }
 0x3e9   :  { %v1983_v47 = vadd.f32 %v1980_v45, %v1933_v14  ;;  %v1923_v51 = vadd.f32 %v1920_v41, %v4766_v59 }
 0x3eb   :  { %v4789_v32 = vpop.permute.xlu2 %2059 }
 0x3ec   :  { %v1956_v28 = vpop.permute.xlu1 %1955  ;;  %v4825_v59 = vsel %vm2061_vm7, %v4789_v32, %v4795_v49 }
 0x3ed   :  { %v1963_v56 = vsel %vm1961_vm5, %v1956_v28, %v1958_v5  ;;  %v4803_v10 = vsel %vm1961_vm5, %v1960_v27, %v1956_v28  ;;  %v1953_v5 = vadd.f32 %v1950_v20, %v1903_v42 }
 0x3ee   :  { %v1979_v54 = vmul.f32 %v1977_v7, %v1963_v56  ;;  %v1981_v22 = vmul.f32 %v1977_v7, %v4803_v10  ;;  %v2019_v7 = vmul.f32 %v2017_v55, %v2013_v40 }
 0x3ef   :  { %v2037_v62 = vpop.permute.xlu0 %2036 }
 0x3f0   :  { %v4819_v29 = vmul.f32 %v2037_v62, %v2013_v40  ;;  %v1984_v42 = vadd.f32 %v1981_v22, %v1934_v18  ;;  %v1982_v27 = vadd.f32 %v1979_v54, %v4774_v58 }
 0x3f3   :  { %v4791_v0 = vpop.permute.xlu2 %2026 }
 0x3f4   :  { %v1967_v16 = vpop.permute.xlu1 %1966  ;;  %v2029_v30 = vmul.f32 %v4791_v0, %v2013_v40 }
 0x3f5   :  { %v1969_v44 = vmul.f32 %v1967_v16, %v1963_v56  ;;  %v1970_v31 = vmul.f32 %v1967_v16, %v4798_v33  ;;  %v1971_v48 = vmul.f32 %v1967_v16, %v4803_v10  ;;  %v4843_v16 = vstv %s4805_s10 }
 0x3f6   :  { %v4838_v58 = vadd.f32 %v2029_v30, %v1982_v27 }
 0x3f7   :  { %v1972_v39 = vadd.f32 %v1969_v44, %v4770_v2  ;;  %v1973_v18 = vadd.f32 %v1970_v31, %v1923_v51  ;;  %v1974_v17 = vadd.f32 %v1971_v48, %v1924_v15 }
 0x3f9   :  { %v2022_v60 = vadd.f32 %v2019_v7, %v1972_v39  ;;  %v4876_v7 = vstv %s4836_s19 }
 0x3fc   :  { %v2010_v11 = vpop.permute.xlu1 %2009  ;;  %v1997_v63 = vpop.permute.xlu2 %1996 }
 0x3fd   :  { %v2012_v2 = vsel %vm2011_vm6, %v2008_v36, %v2010_v11  ;;  %v2014_v13 = vsel %vm2011_vm6, %v2010_v11, %v2006_v23  ;;  %v1999_v8 = vmul.f32 %v1997_v63, %v1963_v56  ;;  %v2000_v1 = vmul.f32 %v1997_v63, %v4798_v33 }
 0x3fe   :  { %v2001_v24 = vmul.f32 %v1997_v63, %v4803_v10  ;;  %v2020_v23 = vmul.f32 %v2017_v55, %v2012_v2  ;;  %v2021_v35 = vmul.f32 %v2017_v55, %v2014_v13  ;;  %v2030_v11 = vmul.f32 %v4791_v0, %v2012_v2 }
 0x3ff   :  { %v2031_v15 = vmul.f32 %v4791_v0, %v2014_v13  ;;  %v2002_v41 = vadd.f32 %v1999_v8, %v4777_v43  ;;  %v2003_v45 = vadd.f32 %v2000_v1, %v1953_v5  ;;  %v2040_v14 = vmul.f32 %v2037_v62, %v2012_v2 }
 0x400   :  { %v2004_v20 = vadd.f32 %v2001_v24, %v4782_v46  ;;  %v2041_v44 = vmul.f32 %v2037_v62, %v2014_v13  ;;  %v2023_v51 = vadd.f32 %v2020_v23, %v1973_v18  ;;  %v2024_v5 = vadd.f32 %v2021_v35, %v1974_v17 }
 0x401   :  { %v4871_v48 = vadd.f32 %v2030_v11, %v1983_v47  ;;  %v4873_v39 = vadd.f32 %v2031_v15, %v1984_v42  ;;  %v4890_v35 = vstv %s4865_s21 }
 0x404   :  { %v2058_v21 = vpop.permute.xlu1 %2057 }
 0x405   :  { %v2047_v50 = vpop.permute.xlu2 %2046  ;;  %v4857_v9 = vsel %vm2061_vm7, %v2058_v21, %v4789_v32  ;;  %v4862_v55 = vsel %vm2061_vm7, %v4795_v49, %v2058_v21 }
 0x406   :  { %v2049_v61 = vmul.f32 %v2047_v50, %v2013_v40  ;;  %v2050_v36 = vmul.f32 %v2047_v50, %v2012_v2  ;;  %v2051_v28 = vmul.f32 %v2047_v50, %v2014_v13 }
 0x408   :  { %v2052_v54 = vadd.f32 %v2049_v61, %v2002_v41  ;;  %v2053_v0 = vadd.f32 %v2050_v36, %v2003_v45  ;;  %v2054_v22 = vadd.f32 %v2051_v28, %v2004_v20 }
 0x40c   :  { %v1987_v63 = vpop.permute.xlu1 %1986 }
 0x40d   :  { %v1989_v46 = vmul.f32 %v1987_v63, %v1963_v56  ;;  %v1990_v32 = vmul.f32 %v1987_v63, %v4798_v33  ;;  %v1991_v49 = vmul.f32 %v1987_v63, %v4803_v10  ;;  %v4879_v56 = vstv %s4840_s20 }
 0x40e   :  { %v2097_v40 = vpop.permute.xlu2 %2096  ;;  %v4882_v33 = vstv %s4845_s0 }
 0x40f   :  { %v2099_v43 = vmul.f32 %v2097_v40, %v4862_v55  ;;  %v2100_v62 = vmul.f32 %v2097_v40, %v4857_v9  ;;  %v2101_v19 = vmul.f32 %v2097_v40, %v4825_v59  ;;  %v1992_v27 = vadd.f32 %v1989_v46, %v4784_v25 }
 0x410   :  { %v1993_v10 = vadd.f32 %v1990_v32, %v1943_v12  ;;  %v1994_v8 = vadd.f32 %v1991_v49, %v4787_v38 }
 0x411   :  { %v2102_v21 = vadd.f32 %v2099_v43, %v2052_v54  ;;  %v2103_v50 = vadd.f32 %v2100_v62, %v2053_v0  ;;  %v2104_v31 = vadd.f32 %v2101_v19, %v2054_v22  ;;  %v4893_v38 = vadd.f32 %v4819_v29, %v1992_v27 }
 0x412   :  { %v4897_v0 = vadd.f32 %v2040_v14, %v1993_v10  ;;  %v4899_v22 = vadd.f32 %v2041_v44, %v1994_v8 }
 0x413   :  { %v2255_v30 = vrot.slane %v2102_v21, 2  ;;  %v2256_v2 = vrot.slane %v2103_v50, 2  ;;  %v2257_v13 = vrot.slane %v2104_v31, 2  ;;  %v2264_v47 = vrot.slane %v2102_v21, 4 }
 0x414   :  { %v2265_v24 = vrot.slane %v2103_v50, 4  ;;  %v2266_v28 = vrot.slane %v2104_v31, 4  ;;  %v2273_v41 = vrot.slane %v2102_v21, 6  ;;  %v2274_v45 = vrot.slane %v2103_v50, 6 }
 0x415   :  { %v2261_v1 = vadd.f32 %v2255_v30, %v2102_v21  ;;  %v2067_v42 = vpop.permute.xlu1 %2066  ;;  %v2262_v18 = vadd.f32 %v2256_v2, %v2103_v50  ;;  %v2263_v17 = vadd.f32 %v2257_v13, %v2104_v31  ;;  %v2275_v43 = vrot.slane %v2104_v31, 6 }
 0x416   :  { %v2069_v61 = vmul.f32 %v2067_v42, %v4862_v55  ;;  %v2070_v36 = vmul.f32 %v2067_v42, %v4857_v9  ;;  %v2071_v25 = vmul.f32 %v2067_v42, %v4825_v59  ;;  %v4908_v42 = vstv %s4895_s22 }
 0x417   :  { %v2270_v23 = vadd.f32 %v2264_v47, %v2261_v1  ;;  %v2271_v12 = vadd.f32 %v2265_v24, %v2262_v18  ;;  %v2272_v15 = vadd.f32 %v2266_v28, %v2263_v17 }
 0x418   :  { %v2072_v11 = vadd.f32 %v2069_v61, %v2022_v60  ;;  %v2073_v63 = vadd.f32 %v2070_v36, %v2023_v51  ;;  %v2074_v20 = vadd.f32 %v2071_v25, %v2024_v5 }
 0x419   :  { %v2279_v46 = vadd.f32 %v2273_v41, %v2270_v23  ;;  %v2280_v32 = vadd.f32 %v2274_v45, %v2271_v12  ;;  %v2281_v51 = vadd.f32 %v2275_v43, %v2272_v15 }
 0x41a   :  { %v2108_v40 = vrot.slane %v2072_v11, 2  ;;  %v2109_v54 = vrot.slane %v2073_v63, 2  ;;  %v2110_v60 = vrot.slane %v2074_v20, 2  ;;  %v2117_v29 = vrot.slane %v2072_v11, 4 }
 0x41b   :  { %v2118_v49 = vrot.slane %v2073_v63, 4  ;;  %v2119_v21 = vrot.slane %v2074_v20, 4  ;;  %v2126_v50 = vrot.slane %v2072_v11, 6  ;;  %v2127_v2 = vrot.slane %v2073_v63, 6 }
 0x41c   :  { %v2114_v62 = vadd.f32 %v2108_v40, %v2072_v11  ;;  %v2115_v19 = vadd.f32 %v2109_v54, %v2073_v63  ;;  %v2116_v30 = vadd.f32 %v2110_v60, %v2074_v20  ;;  %v2128_v14 = vrot.slane %v2074_v20, 6 }
 0x41d   :  { %v4905_v1 = vmul.f32 %v4830_v34, %v2279_v46  ;;  %v4914_v28 = vmul.f32 %v4830_v34, %v2280_v32  ;;  %v4917_v23 = vmul.f32 %v4830_v34, %v2281_v51 }
 0x41e   :  { %v2123_v5 = vadd.f32 %v2117_v29, %v2114_v62  ;;  %v2124_v27 = vadd.f32 %v2118_v49, %v2115_v19  ;;  %v2077_v10 = vpop.permute.xlu1 %2076  ;;  %v2125_v44 = vadd.f32 %v2119_v21, %v2116_v30 }
 0x41f   :  { %v2079_v31 = vmul.f32 %v2077_v10, %v4862_v55  ;;  %v2080_v13 = vmul.f32 %v2077_v10, %v4857_v9  ;;  %v2081_v8 = vmul.f32 %v2077_v10, %v4825_v59 }
 0x420   :  { %v2132_v47 = vadd.f32 %v2126_v50, %v2123_v5  ;;  %v2133_v24 = vadd.f32 %v2127_v2, %v2124_v27  ;;  %v2134_v18 = vadd.f32 %v2128_v14, %v2125_v44 }
 0x421   :  { %v2082_v17 = vadd.f32 %v2079_v31, %v4838_v58  ;;  %v2083_v61 = vadd.f32 %v2080_v13, %v4871_v48  ;;  %v2084_v36 = vadd.f32 %v2081_v8, %v4873_v39 }
 0x422   :  { %v2137_v25 = vmul.f32 %v4843_v16, %v2132_v47  ;;  %v2138_v12 = vmul.f32 %v4843_v16, %v2133_v24  ;;  %v2139_v11 = vmul.f32 %v4843_v16, %v2134_v18 }
 0x423   :  { %v2157_v63 = vrot.slane %v2082_v17, 2  ;;  %v2158_v15 = vrot.slane %v2083_v61, 2  ;;  %v2159_v41 = vrot.slane %v2084_v36, 2  ;;  %v2166_v39 = vrot.slane %v2082_v17, 4 }
 0x424   :  { %v2142_v58 = vadd.f32 %v4849_v37, %v2137_v25  ;;  %v2143_v48 = vadd.f32 %v4849_v37, %v2138_v12  ;;  %v2167_v45 = vrot.slane %v2083_v61, 4  ;;  %v2144_v20 = vadd.f32 %v4849_v37, %v2139_v11 }
 0x425   :  { %v2163_v40 = vadd.f32 %v2157_v63, %v2082_v17  ;;  %v2164_v34 = vadd.f32 %v2158_v15, %v2083_v61  ;;  %v2165_v54 = vadd.f32 %v2159_v41, %v2084_v36  ;;  %v2168_v32 = vrot.slane %v2084_v36, 4 }
 0x426   :  { %v2145_v43 = vmax.f32 %v2142_v58, 0.0  ;;  %v2146_v46 = vmax.f32 %v2143_v48, 0.0  ;;  %v2175_v60 = vrot.slane %v2082_v17, 6  ;;  %v2176_v19 = vrot.slane %v2083_v61, 6 }
 0x427   :  { %v2172_v62 = vadd.f32 %v2166_v39, %v2163_v40  ;;  %v2173_v16 = vadd.f32 %v2167_v45, %v2164_v34  ;;  %v2177_v29 = vrot.slane %v2084_v36, 6  ;;  %v2087_v49 = vpop.permute.xlu1 %2086  ;;  %v2174_v51 = vadd.f32 %v2168_v32, %v2165_v54 }
 0x428   :  { %v2089_v30 = vmul.f32 %v2087_v49, %v4862_v55  ;;  %v2090_v21 = vmul.f32 %v2087_v49, %v4857_v9  ;;  %v2091_v50 = vmul.f32 %v2087_v49, %v4825_v59  ;;  %v2147_v27 = vmax.f32 %v2144_v20, 0.0 }
 0x429   :  { %v2181_v37 = vadd.f32 %v2175_v60, %v2172_v62  ;;  %v2182_v5 = vadd.f32 %v2176_v19, %v2173_v16  ;;  %v2148_v2 = vmul.f32 %v2145_v43, %v3371_v57  ;;  %v2183_v14 = vadd.f32 %v2177_v29, %v2174_v51 }
 0x42a   :  { %v2092_v10 = vadd.f32 %v2089_v30, %v4893_v38  ;;  %v2093_v44 = vadd.f32 %v2090_v21, %v4897_v0  ;;  %v2094_v31 = vadd.f32 %v2091_v50, %v4899_v22  ;;  %v2149_v9 = vmul.f32 %v2146_v46, %v3371_v57 }
 0x42b   :  { %v2186_v13 = vmul.f32 %v4876_v7, %v2181_v37  ;;  %v2187_v55 = vmul.f32 %v4876_v7, %v2182_v5  ;;  %v2150_v59 = vmul.f32 %v2147_v27, %v3371_v57  ;;  %v2188_v8 = vmul.f32 %v4876_v7, %v2183_v14 }
 0x42c   :  { %v2206_v47 = vrot.slane %v2092_v10, 2  ;;  %v2207_v24 = vrot.slane %v2093_v44, 2  ;;  %v2208_v18 = vrot.slane %v2094_v31, 2  ;;  %v2215_v0 = vrot.slane %v2092_v10, 4 }
 0x42d   :  { %v2191_v17 = vadd.f32 %v4879_v56, %v2186_v13  ;;  %v2192_v38 = vadd.f32 %v4879_v56, %v2187_v55  ;;  %v2216_v61 = vrot.slane %v2093_v44, 4  ;;  %v2217_v12 = vrot.slane %v2094_v31, 4 }
 0x42e   :  { %v2212_v22 = vadd.f32 %v2206_v47, %v2092_v10  ;;  %v2213_v36 = vadd.f32 %v2207_v24, %v2093_v44  ;;  %v2214_v25 = vadd.f32 %v2208_v18, %v2094_v31  ;;  %v2224_v11 = vrot.slane %v2092_v10, 6 }
 0x42f   :  { %v2225_v63 = vrot.slane %v2093_v44, 6  ;;  %v2226_v15 = vrot.slane %v2094_v31, 6  ;;  %v2151_v57 = vadd.f32 %v2148_v2, %v3827_v53  ;;  %v2152_v48 = vadd.f32 %v2149_v9, %v3829_v6 }
 0x430   :  { %v2221_v41 = vadd.f32 %v2215_v0, %v2212_v22  ;;  %v2222_v7 = vadd.f32 %v2216_v61, %v2213_v36  ;;  %v2223_v58 = vadd.f32 %v2217_v12, %v2214_v25  ;;  %v2153_v39 = vadd.f32 %v2150_v59, %v3831_v52 }
 0x431   :  { %v2193_v45 = vadd.f32 %v4879_v56, %v2188_v8  ;;  %v2194_v20 = vmax.f32 %v2191_v17, 0.0  ;;  %v2195_v40 = vmax.f32 %v2192_v38, 0.0  ;;  %v2289_v46 = vadd.f32 %v4908_v42, %v4905_v1 }
 0x432   :  { %v2230_v34 = vadd.f32 %v2224_v11, %v2221_v41  ;;  %v2231_v54 = vadd.f32 %v2225_v63, %v2222_v7  ;;  %v2232_v43 = vadd.f32 %v2226_v15, %v2223_v58  ;;  %v2290_v6 = vadd.f32 %v4908_v42, %v4914_v28 }
 0x433   :  { %v2196_v32 = vmax.f32 %v2193_v45, 0.0  ;;  %v2197_v53 = vmul.f32 %v2194_v20, %v3386_v4  ;;  %v2198_v60 = vmul.f32 %v2195_v40, %v3386_v4  ;;  %v2291_v16 = vadd.f32 %v4908_v42, %v4917_v23 }
 0x434   :  { %v2235_v52 = vmul.f32 %v4882_v33, %v2230_v34  ;;  %v2236_v56 = vmul.f32 %v4882_v33, %v2231_v54  ;;  %v2237_v62 = vmul.f32 %v4882_v33, %v2232_v43  ;;  %v2292_v21 = vmax.f32 %v2289_v46, 0.0 }
 0x435   :  { %v2199_v19 = vmul.f32 %v2196_v32, %v3386_v4  ;;  %v2200_v1 = vadd.f32 %v2197_v53, %v2151_v57  ;;  %v2201_v29 = vadd.f32 %v2198_v60, %v2152_v48  ;;  %v2293_v50 = vmax.f32 %v2290_v6, 0.0 }
 0x436   :  { %v2241_v49 = vadd.f32 %v4890_v35, %v2236_v56  ;;  %v2240_v51 = vadd.f32 %v4890_v35, %v2235_v52  ;;  %v2242_v28 = vadd.f32 %v4890_v35, %v2237_v62  ;;  %v2294_v27 = vmax.f32 %v2291_v16, 0.0 }
 0x437   :  { %v2202_v30 = vadd.f32 %v2199_v19, %v2153_v39  ;;  %v2295_v2 = vmul.f32 %v2292_v21, %v5107_v26  ;;  %v2296_v14 = vmul.f32 %v2293_v50, %v5107_v26  ;;  %v2302_v13 = vstv %s2365_s23 }
 0x438   :  { %v2243_v37 = vmax.f32 %v2240_v51, 0.0  ;;  %v2244_v5 = vmax.f32 %v2241_v49, 0.0  ;;  %v2245_v33 = vmax.f32 %v2242_v28, 0.0  ;;  %v2297_v31 = vmul.f32 %v2294_v27, %v5107_v26 }
 0x43a   :  { %v2246_v42 = vmul.f32 %v2243_v37, %v5106_v3  ;;  %v2247_v4 = vmul.f32 %v2244_v5, %v5106_v3  ;;  %v2248_v23 = vmul.f32 %v2245_v33, %v5106_v3 }
 0x43c   :  { %v2249_v10 = vadd.f32 %v2246_v42, %v2200_v1  ;;  %v2250_v44 = vadd.f32 %v2247_v4, %v2201_v29  ;;  %v2251_v35 = vadd.f32 %v2248_v23, %v2202_v30 }
 0x43e   :  { %v2298_v55 = vadd.f32 %v2295_v2, %v2249_v10  ;;  %v2299_v9 = vadd.f32 %v2296_v14, %v2250_v44  ;;  %v2300_v59 = vadd.f32 %v2297_v31, %v2251_v35 }
 0x440   :  { %v2303_v8 = vadd.f32 %v2302_v13, %v2298_v55  ;;  %v2304_v47 = vadd.f32 %v2302_v13, %v2299_v9  ;;  %v2305_v24 = vadd.f32 %v2302_v13, %v2300_v59 }
 0x442   :  { %v2307_v18 = vmax.f32 %v2304_v47, 0.0  ;;  %v2308_v17 = vmax.f32 %v2305_v24, 0.0  ;;  %v2306_v3 = vmax.f32 %v2303_v8, 0.0 }
 0x444   :  { %v2312_v38 = vrot.slane %v2307_v18, 6  ;;  %v2313_v0 = vrot.slane %v2308_v17, 4 }
 0x446   :  { %v2315_v26 = vsel %vm2314_vm8, %v2306_v3, %v2312_v38 }
 0x447   :  { %v2317_v61 = vsel %vm2316_vm9, %v2315_v26, %v2313_v0 }
 0x448   :  { %2319 = vst [vmem:[#allocation12] sm:$0x3f] %v2317_v61 }
 0x449   :  { %2330 = dma.vmem_to_hbm [thread:$0]  %s2326_s5, 96, %s2328_s26, [#allocation4]  }
 0x44a   :  { %2754 = dma.done.wait [#allocation4], 96  }
 0x44b   :  { %2755 = vsyncadd [#allocation4], 4294967200 }
 0x44c   :  { %2335 = vsyncpa [#allocation3], 1 }
 0x44d   :  { %2336 = vsyncpa [#allocation7], 1 }
 0x44e   :  { %2337 = vsyncpa [#allocation4], 1 }
 0x44f   :  { %2338 = vsyncpa [#allocation5], 1 }
 0x450   :  { %2339 = vsyncpa [#allocation10], 1 }

</bundles_post_ra>
